<compile_context>
chip_gen: v6e
topology: v6e:2x2x1
jax: 0.10.0
libtpu: 0.0.40
codegen_flags: <defaults>
</compile_context>

<pallas_src>
import functools

import jax
import jax.numpy as jnp
from jax.experimental import pallas as pl
from jax.experimental.pallas import tpu as pltpu

LANE = 128
X_RESIDENT_MAX_BYTES = 6 * 1024 * 1024   # keep X fully resident in VMEM below this size


def _round_up(x, m):
    return (x + m - 1) // m * m


def _choose_tiles(n_nodes):
    """(tm, tk, n_pad): DMA-efficient blocks; n_pad is a multiple of tk (= 2*tm), which also
    guarantees >= 2 row tiles so the 'parallel' axis can shard over both TCs on v7x."""
    if n_nodes <= 2048:
        tm, tk = 256, 512
    else:
        tm, tk = 512, 1024
    n_pad = _round_up(max(n_nodes, 2 * tm), tk)
    return tm, tk, n_pad


def _vmem_limit_bytes():
    """~3/4 of physical VMEM: ~48 MiB on v7x (64 MiB/TC), ~96 MiB on v5e/v6e (128 MiB)."""
    phys = 64 * 1024 * 1024
    try:
        info = pltpu.get_tpu_info()
        phys = int(getattr(info, "vmem_capacity_bytes", phys))
    except Exception:
        pass
    return int(phys * 3 // 4)


# ----------------------------- Pallas kernel ----------------------------------
def fused_gcn_layer_kernel(a_ref, x_ref, w_ref, b_ref, dr_ref, dk_ref, o_ref, *scratch,
                           apply_relu, x_resident, tk, acc_in_output):
    """One fused GCN layer:  o = act( D^-1/2 A_hat D^-1/2 (X @ W) + b ).

    Grid = (row tiles, K tiles); K is the reduction axis (innermost, "arbitrary").
      a_ref : [tm, tk]               int8  raw A_hat edge-count block (i, k)
      x_ref : [n_pad, C_in] / [tk, C_in]  bf16 features (resident or streamed per K block)
      w_ref : [C_in, C_out]          bf16  weights (resident)
      b_ref : [1, C_out]             f32   bias (resident)
      dr_ref: [tm, 1]                f32   D^-1/2 for this row tile's output rows
      dk_ref: [tk, 1]                f32   D^-1/2 for this K block's rows
      o_ref : [tm, C_out]            output block (resident across K)
      scratch: optional [tm, C_out] f32 accumulator (omitted when the output itself is f32).
    """
    k = pl.program_id(1)
    acc_ref = o_ref if acc_in_output else scratch[0]

    @pl.when(k == 0)
    def _init():
        acc_ref[...] = jnp.zeros_like(acc_ref)

    if x_resident:
        start = pl.multiple_of(k * tk, tk)
        x_blk = x_ref[pl.ds(start, tk), :]
    else:
        x_blk = x_ref[...]

    # Feature transform for this K block (bf16 MXU, f32 accumulate), then fold the
    # "column side" D^-1/2 of A_norm into the Z rows in f32.
    z = jnp.dot(x_blk, w_ref[...], preferred_element_type=jnp.float32)
    z = z * dk_ref[...]

    # int8 is a storage format only; convert via f32 on the VPU (the pass is DMA-bound on A).
    a = a_ref[...].astype(jnp.float32).astype(jnp.bfloat16)
    acc_ref[...] += jnp.dot(a, z.astype(jnp.bfloat16), preferred_element_type=jnp.float32)

    @pl.when(k == pl.num_programs(1) - 1)
    def _finalize():
        out = acc_ref[...] * dr_ref[...] + b_ref[...]   # row-side D^-1/2 + bias, f32 (v5e-safe)
        if apply_relu:
            out = jnp.maximum(out, 0.0)
        o_ref[...] = out.astype(o_ref.dtype)


# ------------------------------ pallas_call wrapper ----------------------------
def gcn_layer(a_int8, x_p, w_p, b_p, d_inv_sqrt, *, tm, tk, apply_relu, out_dtype, vmem_limit):
    n_pad = a_int8.shape[0]
    c_in_p = x_p.shape[1]
    c_out_p = w_p.shape[1]
    out_dtype = jnp.dtype(out_dtype)
    acc_in_output = out_dtype == jnp.float32
    x_resident = n_pad * c_in_p * x_p.dtype.itemsize <= X_RESIDENT_MAX_BYTES

    if x_resident:
        x_spec = pl.BlockSpec((n_pad, c_in_p), lambda i, k: (0, 0))   # DMA'd once, stays in VMEM
    else:
        x_spec = pl.BlockSpec((tk, c_in_p), lambda i, k: (k, 0))      # streamed per K block

    scratch_shapes = [] if acc_in_output else [pltpu.VMEM((tm, c_out_p), jnp.float32)]

    kernel = functools.partial(
        fused_gcn_layer_kernel,
        apply_relu=apply_relu,
        x_resident=x_resident,
        tk=tk,
        acc_in_output=acc_in_output,
    )

    n_row_tiles = n_pad // tm
    flops = 2 * n_pad * n_pad * c_out_p + 2 * n_row_tiles * n_pad * c_in_p * c_out_p
    x_bytes = n_pad * c_in_p * 2 if x_resident else n_row_tiles * n_pad * c_in_p * 2
    bytes_accessed = (n_pad * n_pad                      # int8 adjacency
                      + x_bytes
                      + c_in_p * c_out_p * 2
                      + n_pad * c_out_p * out_dtype.itemsize
                      + 2 * n_pad * 4)

    return pl.pallas_call(
        kernel,
        out_shape=jax.ShapeDtypeStruct((n_pad, c_out_p), out_dtype),
        grid_spec=pltpu.PrefetchScalarGridSpec(
            num_scalar_prefetch=0,
            grid=(n_row_tiles, n_pad // tk),
            in_specs=[
                pl.BlockSpec((tm, tk), lambda i, k: (i, k)),           # A_hat block (int8)
                x_spec,                                                # X / h
                pl.BlockSpec((c_in_p, c_out_p), lambda i, k: (0, 0)),  # W (resident)
                pl.BlockSpec((1, c_out_p), lambda i, k: (0, 0)),       # bias (resident)
                pl.BlockSpec((tm, 1), lambda i, k: (i, 0)),            # D^-1/2 for output rows
                pl.BlockSpec((tk, 1), lambda i, k: (k, 0)),            # D^-1/2 for K-block rows
            ],
            out_specs=pl.BlockSpec((tm, c_out_p), lambda i, k: (i, 0)),
            scratch_shapes=scratch_shapes,
        ),
        compiler_params=pltpu.CompilerParams(
            dimension_semantics=("parallel", "arbitrary"),
            vmem_limit_bytes=vmem_limit,
        ),
        cost_estimate=pl.CostEstimate(
            flops=int(flops), transcendentals=0, bytes_accessed=int(bytes_accessed)),
    )(a_int8, x_p, w_p, b_p, d_inv_sqrt, d_inv_sqrt)


# ------------------------------ JAX glue ---------------------------------------
def build_gcn_inputs(edge_index, num_nodes, n_pad):
    """Padded int8 A_hat (raw edge counts + remaining self loops) and f32 D^-1/2 column."""
    src, dst = edge_index[0], edge_index[1]
    ones = jnp.ones(src.shape[0], jnp.int32)
    # Messages flow src -> dst (PyG source_to_target): A_hat[dst, src] += 1.
    a_hat = jnp.zeros((n_pad, n_pad), jnp.int32).at[dst, src].add(ones)
    # add_remaining_self_loops: keep existing self loops, add a weight-1 loop where missing.
    idx = jnp.arange(num_nodes)
    diag = a_hat[idx, idx]
    a_hat = a_hat.at[idx, idx].add(jnp.where(diag == 0, 1, 0).astype(jnp.int32))
    deg = jnp.sum(a_hat, axis=1).astype(jnp.float32)              # padded rows stay 0
    d_inv_sqrt = jnp.where(deg > 0, jax.lax.rsqrt(deg), 0.0)
    # TODO(synk): int8 is exact for edge multiplicity <= 127; for genuinely sparse graphs
    # replace the dense O(N^2) build with CSR blocks via PrefetchScalarGridSpec + pl.when skips.
    return a_hat.astype(jnp.int8), d_inv_sqrt[:, None]


def gnn_model_forward(x, edge_index, params):
    """Pallas-backed inference forward of GNNModel(c_in, c_hidden, c_out, num_layers=2, 'GCN')."""
    n_nodes, c_in = x.shape
    w1, b1, w2, b2 = params["w1"], params["b1"], params["w2"], params["b2"]
    c_hidden, c_out = w1.shape[1], w2.shape[1]

    tm, tk, n_pad = _choose_tiles(n_nodes)
    c_in_p = _round_up(c_in, LANE)
    c_h_p = _round_up(c_hidden, LANE)
    c_out_p = _round_up(c_out, LANE)
    vmem_limit = _vmem_limit_bytes()

    a_int8, d_inv_sqrt = build_gcn_inputs(edge_index, n_nodes, n_pad)

    x_p = jnp.zeros((n_pad, c_in_p), jnp.bfloat16).at[:n_nodes, :c_in].set(
        x.astype(jnp.bfloat16))
    w1_p = jnp.zeros((c_in_p, c_h_p), jnp.bfloat16).at[:c_in, :c_hidden].set(
        w1.astype(jnp.bfloat16))
    b1_p = jnp.zeros((1, c_h_p), jnp.float32).at[:, :c_hidden].set(b1.reshape(1, -1))
    w2_p = jnp.zeros((c_h_p, c_out_p), jnp.bfloat16).at[:c_hidden, :c_out].set(
        w2.astype(jnp.bfloat16))
    b2_p = jnp.zeros((1, c_out_p), jnp.float32).at[:, :c_out].set(b2.reshape(1, -1))

    # Layer 1: h = ReLU(A_norm @ (X @ W1) + b1).  Dropout(p=0.1) is identity at inference.
    # TODO(synk): training-mode dropout would mask with pltpu.prng_seed / prng_random_bits.
    h = gcn_layer(a_int8, x_p, w1_p, b1_p, d_inv_sqrt, tm=tm, tk=tk,
                  apply_relu=True, out_dtype=jnp.bfloat16, vmem_limit=vmem_limit)

    # Layer 2: out = A_norm @ (h @ W2) + b2   (f32 output accumulates directly in o_ref).
    out = gcn_layer(a_int8, h, w2_p, b2_p, d_inv_sqrt, tm=tm, tk=tk,
                    apply_relu=False, out_dtype=jnp.float32, vmem_limit=vmem_limit)

    return out[:n_nodes, :c_out]


def init_params(key, c_in, c_hidden, c_out):
    """Deterministic glorot-style init matching GCNConv parameter shapes."""
    k1, k2 = jax.random.split(key)

    def glorot(k, fan_in, fan_out):
        limit = jnp.sqrt(6.0 / (fan_in + fan_out))
        return jax.random.uniform(k, (fan_in, fan_out), jnp.float32, -limit, limit)

    return {
        "w1": glorot(k1, c_in, c_hidden),
        "b1": jnp.zeros((1, c_hidden), jnp.float32),
        "w2": glorot(k2, c_hidden, c_out),
        "b2": jnp.zeros((1, c_out), jnp.float32),
    }


def reference_forward(x, edge_index, params):
    """Pure-JAX f32 reference with identical gcn_norm / self-loop semantics."""
    n = x.shape[0]
    src, dst = edge_index[0], edge_index[1]
    adj = jnp.zeros((n, n), jnp.float32).at[dst, src].add(jnp.ones(src.shape[0], jnp.float32))
    idx = jnp.arange(n)
    diag = adj[idx, idx]
    adj = adj.at[idx, idx].add(jnp.where(diag == 0.0, 1.0, 0.0))
    deg = jnp.sum(adj, axis=1)
    d = jnp.where(deg > 0, jax.lax.rsqrt(deg), 0.0)
    a_norm = d[:, None] * adj * d[None, :]
    h = jnp.maximum(a_norm @ (x @ params["w1"]) + params["b1"], 0.0)
    return a_norm @ (h @ params["w2"]) + params["b2"]


# --------------------------------- main ----------------------------------------
if __name__ == "__main__":
    key = jax.random.PRNGKey(0)
    k_x, k_e, k_p = jax.random.split(key, 3)

    N_NODES, C_IN, C_HIDDEN, C_OUT = 16, 16, 32, 4

    # node features
    x = jax.random.normal(k_x, (N_NODES, C_IN), jnp.float32)

    # deterministic small graph: ring edges + a few random chords (PyG edge_index [2, E])
    ring_src = jnp.arange(N_NODES, dtype=jnp.int32)
    ring_dst = (ring_src + 1) % N_NODES
    extra_src = jax.random.randint(k_e, (8,), 0, N_NODES, dtype=jnp.int32)
    extra_dst = (extra_src + 3) % N_NODES
    edge_index = jnp.stack(
        [jnp.concatenate([ring_src, extra_src]),
         jnp.concatenate([ring_dst, extra_dst])],
        axis=0,
    )

    params = init_params(k_p, C_IN, C_HIDDEN, C_OUT)

    fwd = jax.jit(gnn_model_forward)
    out = jax.block_until_ready(fwd(x, edge_index, params))
    assert out.shape == (N_NODES, C_OUT)

    ref = reference_forward(x, edge_index, params)
    assert jnp.all(jnp.isfinite(out))
    # bf16 X/W/h on the MXU -> loose tolerance vs the f32 reference (A_hat itself is exact int8)
    assert jnp.allclose(out, ref, atol=1e-1, rtol=1e-1)

    print("KERNEL_OK")
</pallas_src>

<mosaic_0001>
module attributes {stable_mosaic.version = 11 : i64} {
  func.func private @main(%arg0: i32) attributes {dimension_semantics = [#tpu.dimension_semantics<core_parallel>], iteration_bounds = array<i64: 2>, tpu.core_type = #tpu.core_type<sc_scalar_subcore>, window_params = []} {
    return
  }
}

module attributes {stable_mosaic.version = 11 : i64} {
  func.func private @main(%arg0: i32) attributes {dimension_semantics = [#tpu.dimension_semantics<core_parallel>], iteration_bounds = array<i64: 2>, tpu.core_type = #tpu.core_type<sc_scalar_subcore>, window_params = []} {
    return
  }
}

module attributes {stable_mosaic.version = 11 : i64} {
  func.func @fused_gcn_layer_kernel(%arg0: i32, %arg1: i32, %arg2: memref<256x512xi8, #tpu.memory_space<vmem>>, %arg3: memref<512x128xbf16, #tpu.memory_space<vmem>>, %arg4: memref<128x128xbf16, #tpu.memory_space<vmem>>, %arg5: memref<1x128xf32, #tpu.memory_space<vmem>>, %arg6: memref<256x1xf32, #tpu.memory_space<vmem>>, %arg7: memref<512x1xf32, #tpu.memory_space<vmem>>, %arg8: memref<256x128xf32, #tpu.memory_space<vmem>>) attributes {dimension_semantics = [#tpu.dimension_semantics<parallel>, #tpu.dimension_semantics<arbitrary>], iteration_bounds = array<i64: 2, 1>, scalar_prefetch = 0 : i64, scratch_operands = 0 : i64, tpu.core_type = #tpu.core_type<tc>, window_params = [{transform_indices = @transform_0, window_bounds = array<i64: 256, 512>}, {pipeline_mode = #tpu.pipeline_mode<synchronous>, transform_indices = @transform_1, window_bounds = array<i64: 512, 128>}, {pipeline_mode = #tpu.pipeline_mode<synchronous>, transform_indices = @transform_2, window_bounds = array<i64: 128, 128>}, {pipeline_mode = #tpu.pipeline_mode<synchronous>, transform_indices = @transform_3, window_bounds = array<i64: 1, 128>}, {transform_indices = @transform_4, window_bounds = array<i64: 256, 1>}, {transform_indices = @transform_5, window_bounds = array<i64: 512, 1>}, {transform_indices = @transform_6, window_bounds = array<i64: 256, 128>}]} {
    %c0_i32 = arith.constant 0 : i32
    %0 = arith.cmpi eq, %arg1, %c0_i32 : i32
    %1 = arith.extui %0 : i1 to i32
    %c0_i32_0 = arith.constant 0 : i32
    %2 = arith.cmpi ne, %1, %c0_i32_0 : i32
    scf.if %2 {
      %cst_14 = arith.constant 0.000000e+00 : f32
      %23 = vector.broadcast %cst_14 : f32 to vector<256x128xf32>
      %c0_15 = arith.constant 0 : index
      %c0_16 = arith.constant 0 : index
      %24 = vector.load %arg8[%c0_15, %c0_16] : memref<256x128xf32, #tpu.memory_space<vmem>>, vector<256x128xf32>
      tpu.vector_store %arg8[%c0_15, %c0_16], %23 {strides = array<i32>} : memref<256x128xf32, #tpu.memory_space<vmem>>, vector<256x128xf32>,
    } else {
    }
    %c512_i32 = arith.constant 512 : i32
    %3 = arith.muli %arg1, %c512_i32 : i32
    %4 = tpu.assume_multiple %3, 512 : i32
    %5 = arith.index_cast %4 : i32 to index
    %c0 = arith.constant 0 : index
    %6 = vector.load %arg3[%5, %c0] : memref<512x128xbf16, #tpu.memory_space<vmem>>, vector<512x128xbf16>
    %c0_1 = arith.constant 0 : index
    %c0_2 = arith.constant 0 : index
    %7 = vector.load %arg4[%c0_1, %c0_2] : memref<128x128xbf16, #tpu.memory_space<vmem>>, vector<128x128xbf16>
    %cst = arith.constant dense<0.000000e+00> : vector<512x128xf32>
    %8 = tpu.matmul %6, %7, %cst {dimension_numbers = #tpu.dot_dimension_numbers<[1], [0], [0], [1], [0, 0, 1, 1], [], []>} : vector<512x128xbf16>, vector<128x128xbf16>, vector<512x128xf32> -> vector<512x128xf32>
    %c0_3 = arith.constant 0 : index
    %c0_4 = arith.constant 0 : index
    %9 = vector.load %arg7[%c0_3, %c0_4] : memref<512x1xf32, #tpu.memory_space<vmem>>, vector<512x1xf32>
    %10 = vector.broadcast %9 : vector<512x1xf32> to vector<512x128xf32>
    %11 = arith.mulf %8, %10 : vector<512x128xf32>
    %c0_5 = arith.constant 0 : index
    %c0_6 = arith.constant 0 : index
    %12 = vector.load %arg2[%c0_5, %c0_6] : memref<256x512xi8, #tpu.memory_space<vmem>>, vector<256x512xi8>
    %13 = arith.sitofp %12 : vector<256x512xi8> to vector<256x512xf32>
    %14 = arith.truncf %13 : vector<256x512xf32> to vector<256x512xbf16>
    %c0_7 = arith.constant 0 : index
    %c0_8 = arith.constant 0 : index
    %15 = vector.load %arg8[%c0_7, %c0_8] : memref<256x128xf32, #tpu.memory_space<vmem>>, vector<256x128xf32>
    %16 = arith.truncf %11 : vector<512x128xf32> to vector<512x128xbf16>
    %cst_9 = arith.constant dense<0.000000e+00> : vector<256x128xf32>
    %17 = tpu.matmul %14, %16, %cst_9 {dimension_numbers = #tpu.dot_dimension_numbers<[1], [0], [0], [1], [0, 0, 1, 1], [], []>} : vector<256x512xbf16>, vector<512x128xbf16>, vector<256x128xf32> -> vector<256x128xf32>
    %18 = arith.addf %15, %17 : vector<256x128xf32>
    %c0_10 = arith.constant 0 : index
    %c0_11 = arith.constant 0 : index
    %19 = vector.load %arg8[%c0_10, %c0_11] : memref<256x128xf32, #tpu.memory_space<vmem>>, vector<256x128xf32>
    tpu.vector_store %arg8[%c0_10, %c0_11], %18 {strides = array<i32>} : memref<256x128xf32, #tpu.memory_space<vmem>>, vector<256x128xf32>,
    %c0_i32_12 = arith.constant 0 : i32
    %20 = arith.cmpi eq, %arg1, %c0_i32_12 : i32
    %21 = arith.extui %20 : i1 to i32
    %c0_i32_13 = arith.constant 0 : i32
    %22 = arith.cmpi ne, %21, %c0_i32_13 : i32
    scf.if %22 {
      %c0_14 = arith.constant 0 : index
      %c0_15 = arith.constant 0 : index
      %23 = vector.load %arg8[%c0_14, %c0_15] : memref<256x128xf32, #tpu.memory_space<vmem>>, vector<256x128xf32>
      %c0_16 = arith.constant 0 : index
      %c0_17 = arith.constant 0 : index
      %24 = vector.load %arg6[%c0_16, %c0_17] : memref<256x1xf32, #tpu.memory_space<vmem>>, vector<256x1xf32>
      %25 = vector.broadcast %24 : vector<256x1xf32> to vector<256x128xf32>
      %26 = arith.mulf %23, %25 : vector<256x128xf32>
      %c0_18 = arith.constant 0 : index
      %c0_19 = arith.constant 0 : index
      %27 = vector.load %arg5[%c0_18, %c0_19] : memref<1x128xf32, #tpu.memory_space<vmem>>, vector<1x128xf32>
      %28 = vector.broadcast %27 : vector<1x128xf32> to vector<256x128xf32>
      %29 = arith.addf %26, %28 : vector<256x128xf32>
      %c0_20 = arith.constant 0 : index
      %c0_21 = arith.constant 0 : index
      %30 = vector.load %arg8[%c0_20, %c0_21] : memref<256x128xf32, #tpu.memory_space<vmem>>, vector<256x128xf32>
      tpu.vector_store %arg8[%c0_20, %c0_21], %29 {strides = array<i32>} : memref<256x128xf32, #tpu.memory_space<vmem>>, vector<256x128xf32>,
    } else {
    }
    return
  }
  func.func @transform_0(%arg0: i32, %arg1: i32) -> (i32, i32) {
    %c0_i32 = arith.constant 0 : i32
    return %arg0, %arg1 : i32, i32
  }
  func.func @transform_1(%arg0: i32, %arg1: i32) -> (i32, i32) {
    %c0_i32 = arith.constant 0 : i32
    %c0_i32_0 = arith.constant 0 : i32
    %c0_i32_1 = arith.constant 0 : i32
    return %c0_i32, %c0_i32_0 : i32, i32
  }
  func.func @transform_2(%arg0: i32, %arg1: i32) -> (i32, i32) {
    %c0_i32 = arith.constant 0 : i32
    %c0_i32_0 = arith.constant 0 : i32
    %c0_i32_1 = arith.constant 0 : i32
    return %c0_i32, %c0_i32_0 : i32, i32
  }
  func.func @transform_3(%arg0: i32, %arg1: i32) -> (i32, i32) {
    %c0_i32 = arith.constant 0 : i32
    %c0_i32_0 = arith.constant 0 : i32
    %c0_i32_1 = arith.constant 0 : i32
    return %c0_i32, %c0_i32_0 : i32, i32
  }
  func.func @transform_4(%arg0: i32, %arg1: i32) -> (i32, i32) {
    %c0_i32 = arith.constant 0 : i32
    %c0_i32_0 = arith.constant 0 : i32
    return %arg0, %c0_i32 : i32, i32
  }
  func.func @transform_5(%arg0: i32, %arg1: i32) -> (i32, i32) {
    %c0_i32 = arith.constant 0 : i32
    %c0_i32_0 = arith.constant 0 : i32
    return %arg1, %c0_i32 : i32, i32
  }
  func.func @transform_6(%arg0: i32, %arg1: i32) -> (i32, i32) {
    %c0_i32 = arith.constant 0 : i32
    %c0_i32_0 = arith.constant 0 : i32
    return %arg0, %c0_i32 : i32, i32
  }
}

module attributes {stable_mosaic.version = 11 : i64} {
  func.func @fused_gcn_layer_kernel(%arg0: i32, %arg1: i32, %arg2: memref<256x512xi8, #tpu.memory_space<vmem>>, %arg3: memref<512x128xbf16, #tpu.memory_space<vmem>>, %arg4: memref<128x128xbf16, #tpu.memory_space<vmem>>, %arg5: memref<1x128xf32, #tpu.memory_space<vmem>>, %arg6: memref<256x1xf32, #tpu.memory_space<vmem>>, %arg7: memref<512x1xf32, #tpu.memory_space<vmem>>, %arg8: memref<256x128xbf16, #tpu.memory_space<vmem>>, %arg9: memref<256x128xf32, #tpu.memory_space<vmem>>) attributes {dimension_semantics = [#tpu.dimension_semantics<parallel>, #tpu.dimension_semantics<arbitrary>], iteration_bounds = array<i64: 2, 1>, scalar_prefetch = 0 : i64, scratch_operands = 1 : i64, tpu.core_type = #tpu.core_type<tc>, window_params = [{transform_indices = @transform_0, window_bounds = array<i64: 256, 512>}, {pipeline_mode = #tpu.pipeline_mode<synchronous>, transform_indices = @transform_1, window_bounds = array<i64: 512, 128>}, {pipeline_mode = #tpu.pipeline_mode<synchronous>, transform_indices = @transform_2, window_bounds = array<i64: 128, 128>}, {pipeline_mode = #tpu.pipeline_mode<synchronous>, transform_indices = @transform_3, window_bounds = array<i64: 1, 128>}, {transform_indices = @transform_4, window_bounds = array<i64: 256, 1>}, {transform_indices = @transform_5, window_bounds = array<i64: 512, 1>}, {transform_indices = @transform_6, window_bounds = array<i64: 256, 128>}]} {
    %c0_i32 = arith.constant 0 : i32
    %0 = arith.cmpi eq, %arg1, %c0_i32 : i32
    %1 = arith.extui %0 : i1 to i32
    %c0_i32_0 = arith.constant 0 : i32
    %2 = arith.cmpi ne, %1, %c0_i32_0 : i32
    scf.if %2 {
      %cst_14 = arith.constant 0.000000e+00 : f32
      %23 = vector.broadcast %cst_14 : f32 to vector<256x128xf32>
      %c0_15 = arith.constant 0 : index
      %c0_16 = arith.constant 0 : index
      %24 = vector.load %arg9[%c0_15, %c0_16] : memref<256x128xf32, #tpu.memory_space<vmem>>, vector<256x128xf32>
      tpu.vector_store %arg9[%c0_15, %c0_16], %23 {strides = array<i32>} : memref<256x128xf32, #tpu.memory_space<vmem>>, vector<256x128xf32>,
    } else {
    }
    %c512_i32 = arith.constant 512 : i32
    %3 = arith.muli %arg1, %c512_i32 : i32
    %4 = tpu.assume_multiple %3, 512 : i32
    %5 = arith.index_cast %4 : i32 to index
    %c0 = arith.constant 0 : index
    %6 = vector.load %arg3[%5, %c0] : memref<512x128xbf16, #tpu.memory_space<vmem>>, vector<512x128xbf16>
    %c0_1 = arith.constant 0 : index
    %c0_2 = arith.constant 0 : index
    %7 = vector.load %arg4[%c0_1, %c0_2] : memref<128x128xbf16, #tpu.memory_space<vmem>>, vector<128x128xbf16>
    %cst = arith.constant dense<0.000000e+00> : vector<512x128xf32>
    %8 = tpu.matmul %6, %7, %cst {dimension_numbers = #tpu.dot_dimension_numbers<[1], [0], [0], [1], [0, 0, 1, 1], [], []>} : vector<512x128xbf16>, vector<128x128xbf16>, vector<512x128xf32> -> vector<512x128xf32>
    %c0_3 = arith.constant 0 : index
    %c0_4 = arith.constant 0 : index
    %9 = vector.load %arg7[%c0_3, %c0_4] : memref<512x1xf32, #tpu.memory_space<vmem>>, vector<512x1xf32>
    %10 = vector.broadcast %9 : vector<512x1xf32> to vector<512x128xf32>
    %11 = arith.mulf %8, %10 : vector<512x128xf32>
    %c0_5 = arith.constant 0 : index
    %c0_6 = arith.constant 0 : index
    %12 = vector.load %arg2[%c0_5, %c0_6] : memref<256x512xi8, #tpu.memory_space<vmem>>, vector<256x512xi8>
    %13 = arith.sitofp %12 : vector<256x512xi8> to vector<256x512xf32>
    %14 = arith.truncf %13 : vector<256x512xf32> to vector<256x512xbf16>
    %c0_7 = arith.constant 0 : index
    %c0_8 = arith.constant 0 : index
    %15 = vector.load %arg9[%c0_7, %c0_8] : memref<256x128xf32, #tpu.memory_space<vmem>>, vector<256x128xf32>
    %16 = arith.truncf %11 : vector<512x128xf32> to vector<512x128xbf16>
    %cst_9 = arith.constant dense<0.000000e+00> : vector<256x128xf32>
    %17 = tpu.matmul %14, %16, %cst_9 {dimension_numbers = #tpu.dot_dimension_numbers<[1], [0], [0], [1], [0, 0, 1, 1], [], []>} : vector<256x512xbf16>, vector<512x128xbf16>, vector<256x128xf32> -> vector<256x128xf32>
    %18 = arith.addf %15, %17 : vector<256x128xf32>
    %c0_10 = arith.constant 0 : index
    %c0_11 = arith.constant 0 : index
    %19 = vector.load %arg9[%c0_10, %c0_11] : memref<256x128xf32, #tpu.memory_space<vmem>>, vector<256x128xf32>
    tpu.vector_store %arg9[%c0_10, %c0_11], %18 {strides = array<i32>} : memref<256x128xf32, #tpu.memory_space<vmem>>, vector<256x128xf32>,
    %c0_i32_12 = arith.constant 0 : i32
    %20 = arith.cmpi eq, %arg1, %c0_i32_12 : i32
    %21 = arith.extui %20 : i1 to i32
    %c0_i32_13 = arith.constant 0 : i32
    %22 = arith.cmpi ne, %21, %c0_i32_13 : i32
    scf.if %22 {
      %c0_14 = arith.constant 0 : index
      %c0_15 = arith.constant 0 : index
      %23 = vector.load %arg9[%c0_14, %c0_15] : memref<256x128xf32, #tpu.memory_space<vmem>>, vector<256x128xf32>
      %c0_16 = arith.constant 0 : index
      %c0_17 = arith.constant 0 : index
      %24 = vector.load %arg6[%c0_16, %c0_17] : memref<256x1xf32, #tpu.memory_space<vmem>>, vector<256x1xf32>
      %25 = vector.broadcast %24 : vector<256x1xf32> to vector<256x128xf32>
      %26 = arith.mulf %23, %25 : vector<256x128xf32>
      %c0_18 = arith.constant 0 : index
      %c0_19 = arith.constant 0 : index
      %27 = vector.load %arg5[%c0_18, %c0_19] : memref<1x128xf32, #tpu.memory_space<vmem>>, vector<1x128xf32>
      %28 = vector.broadcast %27 : vector<1x128xf32> to vector<256x128xf32>
      %29 = arith.addf %26, %28 : vector<256x128xf32>
      %cst_20 = arith.constant 0.000000e+00 : f32
      %30 = vector.broadcast %cst_20 : f32 to vector<256x128xf32>
      %31 = arith.maximumf %29, %30 : vector<256x128xf32>
      %32 = arith.truncf %31 : vector<256x128xf32> to vector<256x128xbf16>
      %c0_21 = arith.constant 0 : index
      %c0_22 = arith.constant 0 : index
      %33 = vector.load %arg8[%c0_21, %c0_22] : memref<256x128xbf16, #tpu.memory_space<vmem>>, vector<256x128xbf16>
      tpu.vector_store %arg8[%c0_21, %c0_22], %32 {strides = array<i32>} : memref<256x128xbf16, #tpu.memory_space<vmem>>, vector<256x128xbf16>,
    } else {
    }
    return
  }
  func.func @transform_0(%arg0: i32, %arg1: i32) -> (i32, i32) {
    %c0_i32 = arith.constant 0 : i32
    return %arg0, %arg1 : i32, i32
  }
  func.func @transform_1(%arg0: i32, %arg1: i32) -> (i32, i32) {
    %c0_i32 = arith.constant 0 : i32
    %c0_i32_0 = arith.constant 0 : i32
    %c0_i32_1 = arith.constant 0 : i32
    return %c0_i32, %c0_i32_0 : i32, i32
  }
  func.func @transform_2(%arg0: i32, %arg1: i32) -> (i32, i32) {
    %c0_i32 = arith.constant 0 : i32
    %c0_i32_0 = arith.constant 0 : i32
    %c0_i32_1 = arith.constant 0 : i32
    return %c0_i32, %c0_i32_0 : i32, i32
  }
  func.func @transform_3(%arg0: i32, %arg1: i32) -> (i32, i32) {
    %c0_i32 = arith.constant 0 : i32
    %c0_i32_0 = arith.constant 0 : i32
    %c0_i32_1 = arith.constant 0 : i32
    return %c0_i32, %c0_i32_0 : i32, i32
  }
  func.func @transform_4(%arg0: i32, %arg1: i32) -> (i32, i32) {
    %c0_i32 = arith.constant 0 : i32
    %c0_i32_0 = arith.constant 0 : i32
    return %arg0, %c0_i32 : i32, i32
  }
  func.func @transform_5(%arg0: i32, %arg1: i32) -> (i32, i32) {
    %c0_i32 = arith.constant 0 : i32
    %c0_i32_0 = arith.constant 0 : i32
    return %arg1, %c0_i32 : i32, i32
  }
  func.func @transform_6(%arg0: i32, %arg1: i32) -> (i32, i32) {
    %c0_i32 = arith.constant 0 : i32
    %c0_i32_0 = arith.constant 0 : i32
    return %arg0, %c0_i32 : i32, i32
  }
}

</mosaic_0001>

<bundles_post_ra>
// kernel: gnn_model_forward.3
= control target key start
LH: loop header
LB: loop body
LE: loop exit
PB: predicated region body
PF: predicated region fallthrough
CT: control target
= control target key end

     0   :  { %s2950_s21 = smov 0   ;;  %s2952_s22 = smov 0   ;;  %s3753_s0 = inlined_call_operand.vmem [shape: s8[512,512], index: 0, kind: input, shape index: {}]   ;;  %s3754_s1 = inlined_call_operand.vmem [shape: bf16[512,128], index: 1, kind: input, shape index: {}]   ;;  %s3755_s2 = inlined_call_operand.vmem [shape: bf16[128,128], index: 2, kind: input, shape index: {}]   ;;  %s3756_s3 = inlined_call_operand.vmem [shape: f32[1,128], index: 3, kind: input, shape index: {}]   ;;  %s3757_s4 = inlined_call_operand.vmem [shape: f32[512,1], index: 4, kind: input, shape index: {}, may-alias: {4,5}]   ;;  %s3758_s5 = inlined_call_operand.vmem [shape: f32[512,1], index: 5, kind: input, shape index: {}, may-alias: {4,5}]   ;;  %s3759_s6 = inlined_call_operand.vmem [shape: f32[512,128], index: 6, kind: output, shape index: {}]  }
   0x1   :  { %s2954_s23 = smov 0  }
   0x2 LB: > { %s28_s24 = sadd.s32 1, %s2908_s22  ;;  %p2410_p0 = scmp.ge.s32.totalorder %s2912_s23, 1  ;;  %s2912_s23 = sphi %s2954_s23, %s16_s23   ;;  %s2908_s22 = sphi %s2952_s22, %s3896_s22   ;;  %s2904_s21 = sphi %s2950_s21, %s3895_s21  }
   0x3   : > { %p30_p1 = scmp.ge.s32.totalorder %s28_s24, 2  ;;  %p255_p2 = scmp.lt.s32.totalorder %s2912_s23, 3 }
   0x5   : > { %s3898_s24 = smov (%p30_p1, %s28_s24), 0  ;;  %p256_p3 = pnand %p2410_p0, %p255_p2 }
   0x7   : > { %259 = sbr.rel (%p256_p3) target bundleno = 665 (0x299), region = 44 }
   0xc   : > { %v1043_v0 = vld [vmem:[%s3758_s5 + $0x1f0] sm:$0xff]  ;;  %v2914_v2 = vmov 0   ;;  %v2850_v3 = vld [vmem:[%s3755_s2 + $0x38] sm:$0xff]   ;;  %v2852_v7 = vld [vmem:[%s3755_s2 + $0x28] sm:$0xff]   ;;  %s2414_s13 = sshll.u32 %s2904_s21, 5  ;;  %s2411_s15 = sshll.u32 %s2904_s21, 3 }
   0xd   : > { %v1011_v1 = vld [vmem:[%s3758_s5 + $0xf0] sm:$0xff]  ;;  %2849 = vset.pattern.permute.xlu1 %v2914_v2  ;;  %2848 = vset.pattern.permute.xlu0 %v2914_v2  ;;  %v1044_v4 = vld [vmem:[%s3758_s5 + $0x1f8] sm:$0xff]  ;;  %v2853_v10 = vld [vmem:[%s3755_s2 + $0x20] sm:$0xff]   ;;  %p313_p4 = scmp.lt.s32.totalorder %s2414_s13, 63  ;;  %p302_p5 = scmp.lt.s32.totalorder %s2411_s15, 15 }
   0xe   : > { %1357 = vperm.xlu1 %2849, %v1043_v0   ;;  %1197 = vperm.xlu0 %2848, %v1011_v1   ;;  %v1012_v5 = vld [vmem:[%s3758_s5 + $0xf8] sm:$0xff]  ;;  %v2851_v6 = vld [vmem:[%s3755_s2 + $0x30] sm:$0xff]   ;;  %v1010_v13 = vld [vmem:[%s3758_s5 + $0xe8] sm:$0xff] }
   0xf   : > { %2726 = vmatprep.subr.bf16.mxu0 %v2850_v3  ;;  %2806 = vmatprep.subr.bf16.mxu1 %v2850_v3  ;;  %v996_v8 = vld [vmem:[%s3758_s5 + $0x78] sm:$0xff]  ;;  %v995_v9 = vld [vmem:[%s3758_s5 + $0x70] sm:$0xff]  ;;  %v1009_v14 = vld [vmem:[%s3758_s5 + $0xe0] sm:$0xff]  ;;  %s3900_s13 = smov (!%p313_p4, %s2414_s13), 63  ;;  %s3902_s15 = smov (!%p302_p5, %s2411_s15), 15 }
  0x10   : > { %2727 = vmatpush3.bf16.msra.mxu0 %v2850_v3  ;;  %2814 = vmatpush3.bf16.msra.mxu1 %v2850_v3  ;;  %v1028_v11 = vld [vmem:[%s3758_s5 + $0x178] sm:$0xff]  ;;  %v1027_v12 = vld [vmem:[%s3758_s5 + $0x170] sm:$0xff]  ;;  %v2858_v16 = vld [vmem:[%s3754_s1] sm:$0xff]   ;;  %s2415_s30 = sshll.u32 %s3900_s13, 3  ;;  %s2461_s16 = sshll.u32 %s3902_s15, 5 }
  0x11   : > { %2728 = vmatprep.subr.bf16.mxu0 %v2851_v6  ;;  %2807 = vmatprep.subr.bf16.mxu1 %v2851_v6  ;;  %v2854_v15 = vld [vmem:[%s3755_s2 + $0x18] sm:$0xff]   ;;  %v2859_v17 = vld [vmem:[%s3754_s1 + $0x80] sm:$0xff]   ;;  %v2855_v18 = vld [vmem:[%s3755_s2 + $0x10] sm:$0xff]   ;;  %s3291_s14 = scalar_lea.vmem %s3757_s4, %s2415_s30  ;;  %s3397_s19 = scalar_lea.vmem %s3753_s0, %s2461_s16 }
  0x12   : > { %1362 = vperm.xlu1 %2849, %v1044_v4   ;;  %1202 = vperm.xlu0 %2848, %v1012_v5   ;;  %v1042_v19 = vld [vmem:[%s3758_s5 + $0x1e8] sm:$0xff]  ;;  %v1041_v20 = vld [vmem:[%s3758_s5 + $0x1e0] sm:$0xff]  ;;  %v1008_v27 = vld [vmem:[%s3758_s5 + $0xd8] sm:$0xff]  ;;  %s3678_s27 = scalar_lea.vmem %s3759_s6, %s2415_s30 }
  0x13   : > { %2742 = vmatprep.mubr.bf16.mxu0 %v2858_v16  ;;  %2774 = vmatprep.mubr.bf16.mxu1 %v2859_v17  ;;  %v2856_v21 = vld [vmem:[%s3755_s2 + $0x8] sm:$0xff]   ;;  %v993_v23 = vld [vmem:[%s3758_s5 + $0x60] sm:$0xff]  ;;  %v1007_v28 = vld [vmem:[%s3758_s5 + $0xd0] sm:$0xff] }
  0x14   : > { %2729 = vmatpush3.bf16.msra.mxu0 %v2851_v6  ;;  %2815 = vmatpush3.bf16.msra.mxu1 %v2851_v6  ;;  %v994_v22 = vld [vmem:[%s3758_s5 + $0x68] sm:$0xff]  ;;  %v2857_v24 = vld [vmem:[%s3755_s2] sm:$0xff]   ;;  %v2862_v31 = vld [vmem:[%s3754_s1 + $0x10] sm:$0xff]  }
  0x15   : > { %2730 = vmatprep.subr.bf16.mxu0 %v2852_v7  ;;  %2808 = vmatprep.subr.bf16.mxu1 %v2852_v7  ;;  %v1026_v25 = vld [vmem:[%s3758_s5 + $0x168] sm:$0xff]  ;;  %v1025_v26 = vld [vmem:[%s3758_s5 + $0x160] sm:$0xff]  ;;  %v2863_v32 = vld [vmem:[%s3754_s1 + $0x90] sm:$0xff]  }
  0x16   : > { %1122 = vperm.xlu1 %2849, %v996_v8   ;;  %1117 = vperm.xlu0 %2848, %v995_v9   ;;  %v2860_v29 = vld [vmem:[%s3754_s1 + $0x8] sm:$0xff]   ;;  %v1040_v33 = vld [vmem:[%s3758_s5 + $0x1d8] sm:$0xff]  ;;  %v1039_v34 = vld [vmem:[%s3758_s5 + $0x1d0] sm:$0xff] }
  0x17   : > { %v2861_v30 = vld [vmem:[%s3754_s1 + $0x88] sm:$0xff]   ;;  %v992_v35 = vld [vmem:[%s3758_s5 + $0x58] sm:$0xff]  ;;  %v991_v36 = vld [vmem:[%s3758_s5 + $0x50] sm:$0xff] }
  0x18   : > { %2731 = vmatpush3.bf16.msra.mxu0 %v2852_v7  ;;  %2816 = vmatpush3.bf16.msra.mxu1 %v2852_v7  ;;  %v2864_v37 = vld [vmem:[%s3754_s1 + $0x18] sm:$0xff]   ;;  %v2866_v39 = vld [vmem:[%s3754_s1 + $0x20] sm:$0xff]   ;;  %v1023_v42 = vld [vmem:[%s3758_s5 + $0x150] sm:$0xff] }
  0x19   : > { %2732 = vmatprep.subr.bf16.mxu0 %v2853_v10  ;;  %2809 = vmatprep.subr.bf16.mxu1 %v2853_v10  ;;  %v2865_v38 = vld [vmem:[%s3754_s1 + $0x98] sm:$0xff]   ;;  %v2867_v40 = vld [vmem:[%s3754_s1 + $0xa0] sm:$0xff]   ;;  %v1006_v43 = vld [vmem:[%s3758_s5 + $0xc8] sm:$0xff] }
  0x1a   : > { %1282 = vperm.xlu1 %2849, %v1028_v11   ;;  %1277 = vperm.xlu0 %2848, %v1027_v12   ;;  %v1024_v41 = vld [vmem:[%s3758_s5 + $0x158] sm:$0xff]  ;;  %v1005_v44 = vld [vmem:[%s3758_s5 + $0xc0] sm:$0xff]  ;;  %v2868_v45 = vld [vmem:[%s3754_s1 + $0x28] sm:$0xff]  }
  0x1b   : > { %v2869_v46 = vld [vmem:[%s3754_s1 + $0xa8] sm:$0xff]   ;;  %v2870_v47 = vld [vmem:[%s3754_s1 + $0x30] sm:$0xff]   ;;  %v1037_v50 = vld [vmem:[%s3758_s5 + $0x1c0] sm:$0xff] }
  0x1c   : > { %2733 = vmatpush3.bf16.msra.mxu0 %v2853_v10  ;;  %2817 = vmatpush3.bf16.msra.mxu1 %v2853_v10  ;;  %v2871_v48 = vld [vmem:[%s3754_s1 + $0xb0] sm:$0xff]   ;;  %v1038_v49 = vld [vmem:[%s3758_s5 + $0x1c8] sm:$0xff]  ;;  %v989_v52 = vld [vmem:[%s3758_s5 + $0x40] sm:$0xff] }
  0x1d   : > { %2734 = vmatprep.subr.bf16.mxu0 %v2854_v15  ;;  %2810 = vmatprep.subr.bf16.mxu1 %v2854_v15  ;;  %v990_v51 = vld [vmem:[%s3758_s5 + $0x48] sm:$0xff]  ;;  %v2872_v53 = vld [vmem:[%s3754_s1 + $0x38] sm:$0xff]   ;;  %v2874_v55 = vld [vmem:[%s3754_s1 + $0x40] sm:$0xff]  }
  0x1e   : > { %1192 = vperm.xlu1 %2849, %v1010_v13   ;;  %1187 = vperm.xlu0 %2848, %v1009_v14   ;;  %v2873_v54 = vld [vmem:[%s3754_s1 + $0xb8] sm:$0xff]   ;;  %v2875_v56 = vld [vmem:[%s3754_s1 + $0xc0] sm:$0xff]   ;;  %v1022_v57 = vld [vmem:[%s3758_s5 + $0x148] sm:$0xff] }
  0x1f   : > { %v1021_v58 = vld [vmem:[%s3758_s5 + $0x140] sm:$0xff]  ;;  %v1004_v59 = vld [vmem:[%s3758_s5 + $0xb8] sm:$0xff]  ;;  %v1003_v60 = vld [vmem:[%s3758_s5 + $0xb0] sm:$0xff] }
  0x20   : > { %2735 = vmatpush3.bf16.msra.mxu0 %v2854_v15  ;;  %2818 = vmatpush3.bf16.msra.mxu1 %v2854_v15  ;;  %v2876_v61 = vld [vmem:[%s3754_s1 + $0x48] sm:$0xff]   ;;  %v2878_v63 = vld [vmem:[%s3754_s1 + $0x50] sm:$0xff]   ;;  %v1036_v1 = vld [vmem:[%s3758_s5 + $0x1b8] sm:$0xff] }
  0x21   : > { %2736 = vmatprep.subr.bf16.mxu0 %v2855_v18  ;;  %2811 = vmatprep.subr.bf16.mxu1 %v2855_v18  ;;  %v2877_v62 = vld [vmem:[%s3754_s1 + $0xc8] sm:$0xff]   ;;  %v2879_v0 = vld [vmem:[%s3754_s1 + $0xd0] sm:$0xff]   ;;  %v988_v3 = vld [vmem:[%s3758_s5 + $0x38] sm:$0xff] }
  0x22   : > { %1352 = vperm.xlu1 %2849, %v1042_v19   ;;  %1347 = vperm.xlu0 %2848, %v1041_v20   ;;  %v1035_v2 = vld [vmem:[%s3758_s5 + $0x1b0] sm:$0xff]  ;;  %v2880_v5 = vld [vmem:[%s3754_s1 + $0x58] sm:$0xff]   ;;  %v2882_v7 = vld [vmem:[%s3754_s1 + $0x60] sm:$0xff]  }
  0x23   : > { %v987_v4 = vld [vmem:[%s3758_s5 + $0x30] sm:$0xff]  ;;  %v2881_v6 = vld [vmem:[%s3754_s1 + $0xd8] sm:$0xff]   ;;  %v2883_v8 = vld [vmem:[%s3754_s1 + $0xe0] sm:$0xff]  }
  0x24   : > { %2737 = vmatpush3.bf16.msra.mxu0 %v2855_v18  ;;  %2819 = vmatpush3.bf16.msra.mxu1 %v2855_v18  ;;  %v1020_v9 = vld [vmem:[%s3758_s5 + $0x138] sm:$0xff]  ;;  %v1019_v10 = vld [vmem:[%s3758_s5 + $0x130] sm:$0xff]  ;;  %v1002_v11 = vld [vmem:[%s3758_s5 + $0xa8] sm:$0xff] }
  0x25   : > { %2738 = vmatprep.subr.bf16.mxu0 %v2856_v21  ;;  %2812 = vmatprep.subr.bf16.mxu1 %v2856_v21  ;;  %v1001_v12 = vld [vmem:[%s3758_s5 + $0xa0] sm:$0xff]  ;;  %v2884_v13 = vld [vmem:[%s3754_s1 + $0x68] sm:$0xff]   ;;  %v2886_v15 = vld [vmem:[%s3754_s1 + $0x70] sm:$0xff]  }
  0x26   : > { %1112 = vperm.xlu1 %2849, %v994_v22   ;;  %1107 = vperm.xlu0 %2848, %v993_v23   ;;  %v2885_v14 = vld [vmem:[%s3754_s1 + $0xe8] sm:$0xff]   ;;  %v2887_v16 = vld [vmem:[%s3754_s1 + $0xf0] sm:$0xff]   ;;  %v1033_v18 = vld [vmem:[%s3758_s5 + $0x1a0] sm:$0xff] }
  0x27   : > { %v1034_v17 = vld [vmem:[%s3758_s5 + $0x1a8] sm:$0xff]  ;;  %v985_v20 = vld [vmem:[%s3758_s5 + $0x20] sm:$0xff]  ;;  %v2889_v22 = vld [vmem:[%s3754_s1 + $0xf8] sm:$0xff]  }
  0x28   : > { %2739 = vmatpush3.bf16.msra.mxu0 %v2856_v21  ;;  %2820 = vmatpush3.bf16.msra.mxu1 %v2856_v21  ;;  %v986_v19 = vld [vmem:[%s3758_s5 + $0x28] sm:$0xff]  ;;  %v2888_v21 = vld [vmem:[%s3754_s1 + $0x78] sm:$0xff]  }
  0x29   : > { %2740 = vmatprep.subr.bf16.mxu0 %v2857_v24  ;;  %2813 = vmatprep.subr.bf16.mxu1 %v2857_v24  ;;  %v1018_v23 = vld [vmem:[%s3758_s5 + $0x128] sm:$0xff] }
  0x2a   : > { %1272 = vperm.xlu1 %2849, %v1026_v25   ;;  %1267 = vperm.xlu0 %2848, %v1025_v26   ;;  %v1000_v25 = vld [vmem:[%s3758_s5 + $0x98] sm:$0xff]  ;;  %v999_v26 = vld [vmem:[%s3758_s5 + $0x90] sm:$0xff] }
  0x2c   : > { %2741 = vmatpush3.bf16.msra.mxu0 %v2857_v24  ;;  %2821 = vmatpush3.bf16.msra.mxu1 %v2857_v24  ;;  %v1017_v24 = vld [vmem:[%s3758_s5 + $0x120] sm:$0xff] }
  0x2e   : > { %1182 = vperm.xlu1 %2849, %v1008_v27   ;;  %1177 = vperm.xlu0 %2848, %v1007_v28   ;;  %v1032_v27 = vld [vmem:[%s3758_s5 + $0x198] sm:$0xff]  ;;  %v1031_v28 = vld [vmem:[%s3758_s5 + $0x190] sm:$0xff] }
  0x2f   : > { %2743 = vmatmul.mubr.bf16.vlgmr.msra.gmra.mxu0 %v2860_v29  ;;  %2775 = vmatmul.mubr.bf16.vlgmr.msra.gmra.mxu1 %v2861_v30  ;;  %v984_v29 = vld [vmem:[%s3758_s5 + $0x18] sm:$0xff]  ;;  %v983_v30 = vld [vmem:[%s3758_s5 + $0x10] sm:$0xff] }
  0x30   : > { %2746 = vmatprep.mubr.bf16.mxu0 %v2862_v31  ;;  %2778 = vmatprep.mubr.bf16.mxu1 %v2863_v32  ;;  %v1016_v31 = vld [vmem:[%s3758_s5 + $0x118] sm:$0xff]  ;;  %v1015_v32 = vld [vmem:[%s3758_s5 + $0x110] sm:$0xff] }
  0x32   : > { %1342 = vperm.xlu1 %2849, %v1040_v33   ;;  %1337 = vperm.xlu0 %2848, %v1039_v34   ;;  %v998_v33 = vld [vmem:[%s3758_s5 + $0x88] sm:$0xff]  ;;  %v997_v34 = vld [vmem:[%s3758_s5 + $0x80] sm:$0xff] }
  0x36   : > { %1102 = vperm.xlu1 %2849, %v992_v35   ;;  %1097 = vperm.xlu0 %2848, %v991_v36   ;;  %v1030_v35 = vld [vmem:[%s3758_s5 + $0x188] sm:$0xff]  ;;  %v1029_v36 = vld [vmem:[%s3758_s5 + $0x180] sm:$0xff] }
  0x37   : > { %2747 = vmatmul.mubr.bf16.gmra.mxu0 %v2864_v37  ;;  %2779 = vmatmul.mubr.bf16.gmra.mxu1 %v2865_v38  ;;  %v982_v37 = vld [vmem:[%s3758_s5 + $0x8] sm:$0xff]  ;;  %v981_v38 = vld [vmem:[%s3758_s5] sm:$0xff] }
  0x38   : > { %2750 = vmatprep.mubr.bf16.mxu0 %v2866_v39  ;;  %2782 = vmatprep.mubr.bf16.mxu1 %v2867_v40  ;;  %v1014_v39 = vld [vmem:[%s3758_s5 + $0x108] sm:$0xff]  ;;  %v1013_v40 = vld [vmem:[%s3758_s5 + $0x100] sm:$0xff] }
  0x3a   : > { %1262 = vperm.xlu1 %2849, %v1024_v41   ;;  %1257 = vperm.xlu0 %2848, %v1023_v42  }
  0x3e   : > { %1172 = vperm.xlu1 %2849, %v1006_v43   ;;  %1167 = vperm.xlu0 %2848, %v1005_v44   ;;  %v2011_v43 = vld [vmem:[%s3291_s14 + $0x8] sm:$0xff]  ;;  %v2010_v44 = vld [vmem:[%s3291_s14] sm:$0xff] }
  0x3f   : > { %2751 = vmatmul.mubr.bf16.gmra.mxu0 %v2868_v45  ;;  %2783 = vmatmul.mubr.bf16.gmra.mxu1 %v2869_v46 }
  0x40   : > { %2754 = vmatprep.mubr.bf16.mxu0 %v2870_v47  ;;  %2786 = vmatprep.mubr.bf16.mxu1 %v2871_v48  ;;  %v2013_v47 = vld [vmem:[%s3291_s14 + $0x18] sm:$0xff]  ;;  %v2012_v48 = vld [vmem:[%s3291_s14 + $0x10] sm:$0xff] }
  0x42   : > { %1332 = vperm.xlu1 %2849, %v1038_v49   ;;  %1327 = vperm.xlu0 %2848, %v1037_v50  }
  0x46   : > { %1092 = vperm.xlu1 %2849, %v990_v51   ;;  %1087 = vperm.xlu0 %2848, %v989_v52   ;;  %v2015_v51 = vld [vmem:[%s3291_s14 + $0x28] sm:$0xff]  ;;  %v2014_v52 = vld [vmem:[%s3291_s14 + $0x20] sm:$0xff] }
  0x47   : > { %2755 = vmatmul.mubr.bf16.gmra.mxu0 %v2872_v53  ;;  %2787 = vmatmul.mubr.bf16.gmra.mxu1 %v2873_v54 }
  0x48   : > { %2758 = vmatprep.mubr.bf16.mxu0 %v2874_v55  ;;  %2790 = vmatprep.mubr.bf16.mxu1 %v2875_v56  ;;  %v2017_v55 = vld [vmem:[%s3291_s14 + $0x38] sm:$0xff]  ;;  %v2016_v56 = vld [vmem:[%s3291_s14 + $0x30] sm:$0xff] }
  0x4a   : > { %1252 = vperm.xlu1 %2849, %v1022_v57   ;;  %1247 = vperm.xlu0 %2848, %v1021_v58  }
  0x4e   : > { %1162 = vperm.xlu1 %2849, %v1004_v59   ;;  %1157 = vperm.xlu0 %2848, %v1003_v60   ;;  %v2019_v59 = vld [vmem:[%s3291_s14 + $0x48] sm:$0xff]  ;;  %v2018_v60 = vld [vmem:[%s3291_s14 + $0x40] sm:$0xff] }
  0x4f   : > { %2759 = vmatmul.mubr.bf16.gmra.mxu0 %v2876_v61  ;;  %2791 = vmatmul.mubr.bf16.gmra.mxu1 %v2877_v62 }
  0x50   : > { %2762 = vmatprep.mubr.bf16.mxu0 %v2878_v63  ;;  %2794 = vmatprep.mubr.bf16.mxu1 %v2879_v0  ;;  %v2021_v63 = vld [vmem:[%s3291_s14 + $0x58] sm:$0xff]  ;;  %v2020_v0 = vld [vmem:[%s3291_s14 + $0x50] sm:$0xff] }
  0x52   : > { %1322 = vperm.xlu1 %2849, %v1036_v1   ;;  %1317 = vperm.xlu0 %2848, %v1035_v2  }
  0x56   : > { %1082 = vperm.xlu1 %2849, %v988_v3   ;;  %1077 = vperm.xlu0 %2848, %v987_v4   ;;  %v2023_v3 = vld [vmem:[%s3291_s14 + $0x68] sm:$0xff]  ;;  %v2022_v4 = vld [vmem:[%s3291_s14 + $0x60] sm:$0xff] }
  0x57   : > { %2763 = vmatmul.mubr.bf16.gmra.mxu0 %v2880_v5  ;;  %2795 = vmatmul.mubr.bf16.gmra.mxu1 %v2881_v6 }
  0x58   : > { %2766 = vmatprep.mubr.bf16.mxu0 %v2882_v7  ;;  %2798 = vmatprep.mubr.bf16.mxu1 %v2883_v8  ;;  %v2025_v7 = vld [vmem:[%s3291_s14 + $0x78] sm:$0xff]  ;;  %v2024_v8 = vld [vmem:[%s3291_s14 + $0x70] sm:$0xff] }
  0x5a   : > { %1242 = vperm.xlu1 %2849, %v1020_v9   ;;  %1237 = vperm.xlu0 %2848, %v1019_v10  }
  0x5e   : > { %1152 = vperm.xlu1 %2849, %v1002_v11   ;;  %1147 = vperm.xlu0 %2848, %v1001_v12   ;;  %v2027_v11 = vld [vmem:[%s3291_s14 + $0x88] sm:$0xff]  ;;  %v2026_v12 = vld [vmem:[%s3291_s14 + $0x80] sm:$0xff] }
  0x5f   : > { %2767 = vmatmul.mubr.bf16.gmra.mxu0 %v2884_v13  ;;  %2799 = vmatmul.mubr.bf16.gmra.mxu1 %v2885_v14 }
  0x60   : > { %2770 = vmatprep.mubr.bf16.mxu0 %v2886_v15  ;;  %2802 = vmatprep.mubr.bf16.mxu1 %v2887_v16  ;;  %v2029_v15 = vld [vmem:[%s3291_s14 + $0x98] sm:$0xff]  ;;  %v2028_v16 = vld [vmem:[%s3291_s14 + $0x90] sm:$0xff] }
  0x62   : > { %1312 = vperm.xlu1 %2849, %v1034_v17   ;;  %1307 = vperm.xlu0 %2848, %v1033_v18  }
  0x66   : > { %1072 = vperm.xlu1 %2849, %v986_v19   ;;  %1067 = vperm.xlu0 %2848, %v985_v20   ;;  %v2031_v19 = vld [vmem:[%s3291_s14 + $0xa8] sm:$0xff]  ;;  %v2030_v20 = vld [vmem:[%s3291_s14 + $0xa0] sm:$0xff] }
  0x67   : > { %2771 = vmatmul.mubr.bf16.gmra.mxu0 %v2888_v21  ;;  %2803 = vmatmul.mubr.bf16.gmra.mxu1 %v2889_v22 }
  0x6a   : > { %1232 = vperm.xlu1 %2849, %v1018_v23   ;;  %1227 = vperm.xlu0 %2848, %v1017_v24   ;;  %v2033_v23 = vld [vmem:[%s3291_s14 + $0xb8] sm:$0xff]  ;;  %v2032_v24 = vld [vmem:[%s3291_s14 + $0xb0] sm:$0xff] }
  0x6e   : > { %1142 = vperm.xlu1 %2849, %v1000_v25   ;;  %1137 = vperm.xlu0 %2848, %v999_v26  }
  0x72   : > { %1302 = vperm.xlu1 %2849, %v1032_v27   ;;  %1297 = vperm.xlu0 %2848, %v1031_v28   ;;  %v2035_v27 = vld [vmem:[%s3291_s14 + $0xc8] sm:$0xff]  ;;  %v2034_v28 = vld [vmem:[%s3291_s14 + $0xc0] sm:$0xff] }
  0x76   : > { %1062 = vperm.xlu1 %2849, %v984_v29   ;;  %1057 = vperm.xlu0 %2848, %v983_v30  }
  0x7a   : > { %1222 = vperm.xlu1 %2849, %v1016_v31   ;;  %1217 = vperm.xlu0 %2848, %v1015_v32   ;;  %v2037_v31 = vld [vmem:[%s3291_s14 + $0xd8] sm:$0xff]  ;;  %v2036_v32 = vld [vmem:[%s3291_s14 + $0xd0] sm:$0xff] }
  0x7e   : > { %1132 = vperm.xlu1 %2849, %v998_v33   ;;  %1127 = vperm.xlu0 %2848, %v997_v34  }
  0x82   : > { %1292 = vperm.xlu1 %2849, %v1030_v35   ;;  %1287 = vperm.xlu0 %2848, %v1029_v36   ;;  %v2039_v35 = vld [vmem:[%s3291_s14 + $0xe8] sm:$0xff]  ;;  %v2038_v36 = vld [vmem:[%s3291_s14 + $0xe0] sm:$0xff] }
  0x86   : > { %1052 = vperm.xlu1 %2849, %v982_v37   ;;  %1047 = vperm.xlu0 %2848, %v981_v38  }
  0x89   : > { %v3293_v41 = vpop.permute.xlu1 %1357  ;;  %v3295_v42 = vpop.permute.xlu0 %1197 }
  0x8a   : > { %1212 = vperm.xlu1 %2849, %v1014_v39   ;;  %1207 = vperm.xlu0 %2848, %v1013_v40   ;;  %v2041_v39 = vld [vmem:[%s3291_s14 + $0xf8] sm:$0xff]  ;;  %v2040_v40 = vld [vmem:[%s3291_s14 + $0xf0] sm:$0xff] }
  0x8d   : > { %v3299_v45 = vpop.permute.xlu1 %1362  ;;  %v3301_v46 = vpop.permute.xlu0 %1202 }
  0x8e   : > { %2049 = vperm.xlu1 %2849, %v2011_v43   ;;  %2044 = vperm.xlu0 %2848, %v2010_v44  }
  0x91   : > { %v3305_v49 = vpop.permute.xlu1 %1122  ;;  %v3307_v50 = vpop.permute.xlu0 %1117 }
  0x92   : > { %2059 = vperm.xlu1 %2849, %v2013_v47   ;;  %2054 = vperm.xlu0 %2848, %v2012_v48  }
  0x95   : > { %v3311_v53 = vpop.permute.xlu1 %1282  ;;  %v3313_v54 = vpop.permute.xlu0 %1277 }
  0x96   : > { %2069 = vperm.xlu1 %2849, %v2015_v51   ;;  %2064 = vperm.xlu0 %2848, %v2014_v52   ;;  %v3404_v51 = vld [vmem:[%s3397_s19 + $0x8] sm:$0xff]  ;;  %v3407_v52 = vld [vmem:[%s3397_s19 + $0x18] sm:$0xff] }
  0x97   : > { %3784 = vst [vmem:[#allocation6_spill] sm:$0xff] %v3404_v51  ;;  %3785 = vst [vmem:[#allocation7_spill] sm:$0xff] %v3407_v52 }
  0x99   : > { %v3317_v57 = vpop.permute.xlu1 %1192  ;;  %v3319_v58 = vpop.permute.xlu0 %1187 }
  0x9a   : > { %2079 = vperm.xlu1 %2849, %v2017_v55   ;;  %2074 = vperm.xlu0 %2848, %v2016_v56   ;;  %v1462_v55 = vunpack.c.l.s8.bf16 %v3404_v51  ;;  %v1464_v56 = vunpack.c.l.s8.bf16 %v3407_v52 }
  0x9c   : > { %1621 = vmatprep.mubr.bf16.mxu1 %v1462_v55  ;;  %1782 = vmatprep.mubr.bf16.mxu0 %v1464_v56 }
  0x9d   : > { %v3323_v61 = vpop.permute.xlu1 %1352  ;;  %v3325_v62 = vpop.permute.xlu0 %1347 }
  0x9e   : > { %2089 = vperm.xlu1 %2849, %v2019_v59   ;;  %2084 = vperm.xlu0 %2848, %v2018_v60  }
  0xa1   : > { %v3329_v1 = vpop.permute.xlu1 %1112  ;;  %v3331_v2 = vpop.permute.xlu0 %1107 }
  0xa2   : > { %2099 = vperm.xlu1 %2849, %v2021_v63   ;;  %2094 = vperm.xlu0 %2848, %v2020_v0  }
  0xa5   : > { %v3335_v5 = vpop.permute.xlu1 %1272  ;;  %v3337_v6 = vpop.permute.xlu0 %1267 }
  0xa6   : > { %2109 = vperm.xlu1 %2849, %v2023_v3   ;;  %2104 = vperm.xlu0 %2848, %v2022_v4  }
  0xa9   : > { %v3341_v9 = vpop.permute.xlu1 %1182  ;;  %v3343_v10 = vpop.permute.xlu0 %1177 }
  0xaa   : > { %2119 = vperm.xlu1 %2849, %v2025_v7   ;;  %2114 = vperm.xlu0 %2848, %v2024_v8  }
  0xad   : > { %v3347_v13 = vpop.permute.xlu1 %1342  ;;  %v3349_v14 = vpop.permute.xlu0 %1337 }
  0xae   : > { %2129 = vperm.xlu1 %2849, %v2027_v11   ;;  %2124 = vperm.xlu0 %2848, %v2026_v12  }
  0xb1   : > { %v3353_v17 = vpop.permute.xlu1 %1102  ;;  %v3355_v18 = vpop.permute.xlu0 %1097 }
  0xb2   : > { %2139 = vperm.xlu1 %2849, %v2029_v15   ;;  %2134 = vperm.xlu0 %2848, %v2028_v16  }
  0xb5   : > { %v3359_v21 = vpop.permute.xlu1 %1262  ;;  %v3361_v22 = vpop.permute.xlu0 %1257 }
  0xb6   : > { %2149 = vperm.xlu1 %2849, %v2031_v19   ;;  %2144 = vperm.xlu0 %2848, %v2030_v20  }
  0xb9   : > { %v3365_v25 = vpop.permute.xlu1 %1172  ;;  %v3367_v26 = vpop.permute.xlu0 %1167 }
  0xba   : > { %2159 = vperm.xlu1 %2849, %v2033_v23   ;;  %2154 = vperm.xlu0 %2848, %v2032_v24  }
  0xbd   : > { %v3371_v29 = vpop.permute.xlu1 %1332  ;;  %v3373_v30 = vpop.permute.xlu0 %1327 }
  0xbe   : > { %2169 = vperm.xlu1 %2849, %v2035_v27   ;;  %2164 = vperm.xlu0 %2848, %v2034_v28  }
  0xc1   : > { %v3377_v33 = vpop.permute.xlu1 %1092  ;;  %v3379_v34 = vpop.permute.xlu0 %1087 }
  0xc2   : > { %3780 = vst [vmem:[#allocation2_spill] sm:$0xff] %v3379_v34  ;;  %2179 = vperm.xlu1 %2849, %v2037_v31   ;;  %2174 = vperm.xlu0 %2848, %v2036_v32  }
  0xc5   : > { %v3383_v37 = vpop.permute.xlu1 %1252  ;;  %v3385_v38 = vpop.permute.xlu0 %1247 }
  0xc6   : > { %3781 = vst [vmem:[#allocation3_spill] sm:$0xff] %v3385_v38  ;;  %2189 = vperm.xlu1 %2849, %v2039_v35   ;;  %2184 = vperm.xlu0 %2848, %v2038_v36  }
  0xc9   : > { %v3390_v43 = vpop.permute.xlu1 %1162  ;;  %v3392_v44 = vpop.permute.xlu0 %1157 }
  0xca   : > { %3782 = vst [vmem:[#allocation4_spill] sm:$0xff] %v3392_v44  ;;  %2199 = vperm.xlu1 %2849, %v2041_v39   ;;  %2194 = vperm.xlu0 %2848, %v2040_v40  }
  0xcd   : > { %v3399_v47 = vpop.permute.xlu1 %1322  ;;  %v3401_v48 = vpop.permute.xlu0 %1317 }
  0xce   : > { %3783 = vst [vmem:[#allocation5_spill] sm:$0xff] %v3401_v48 }
  0xd1   : > { %v1083_v59 = vpop.permute.xlu1 %1082  ;;  %v1078_v60 = vpop.permute.xlu0 %1077 }
  0xd5   : > { %v1243_v63 = vpop.permute.xlu1 %1242  ;;  %v1238_v0 = vpop.permute.xlu0 %1237 }
  0xd9   : > { %v3411_v3 = vpop.permute.xlu1 %1152  ;;  %v3413_v4 = vpop.permute.xlu0 %1147 }
  0xda   : > { %3786 = vst [vmem:[#allocation8_spill] sm:$0xff] %v3411_v3  ;;  %3787 = vst [vmem:[#allocation9_spill] sm:$0xff] %v3413_v4 }
  0xdd   : > { %v3415_v7 = vpop.permute.xlu1 %1312  ;;  %v3417_v8 = vpop.permute.xlu0 %1307 }
  0xde   : > { %3788 = vst [vmem:[#allocation10_spill] sm:$0xff] %v3415_v7  ;;  %3789 = vst [vmem:[#allocation11_spill] sm:$0xff] %v3417_v8 }
  0xe1   : > { %v1073_v11 = vpop.permute.xlu1 %1072  ;;  %v1068_v12 = vpop.permute.xlu0 %1067 }
  0xe5   : > { %v1233_v15 = vpop.permute.xlu1 %1232  ;;  %v1228_v16 = vpop.permute.xlu0 %1227 }
  0xe9   : > { %v3419_v19 = vpop.permute.xlu1 %1142  ;;  %v3421_v20 = vpop.permute.xlu0 %1137 }
  0xea   : > { %3790 = vst [vmem:[#allocation12_spill] sm:$0xff] %v3419_v19  ;;  %3791 = vst [vmem:[#allocation13_spill] sm:$0xff] %v3421_v20 }
  0xed   : > { %v3423_v23 = vpop.permute.xlu1 %1302  ;;  %v3425_v24 = vpop.permute.xlu0 %1297 }
  0xee   : > { %3792 = vst [vmem:[#allocation14_spill] sm:$0xff] %v3423_v23  ;;  %3793 = vst [vmem:[#allocation15_spill] sm:$0xff] %v3425_v24 }
  0xef   : > { %v2744_v27 = vpop.f32.mrf.mxu0  ;;  %v2776_v28 = vpop.f32.mrf.mxu1 }
  0xf1   : > { %v1063_v31 = vpop.permute.xlu1 %1062  ;;  %v1058_v32 = vpop.permute.xlu0 %1057 }
  0xf2   : > { %v726_v35 = vpop.f32.mrf.mxu0  ;;  %v854_v36 = vpop.f32.mrf.mxu1  ;;  %v3427_v39 = vmul.f32 %v2744_v27, %v1058_v32 }
  0xf4   : > { %3794 = vst [vmem:[#allocation16_spill] sm:$0xff] %v3427_v39  ;;  %v2745_v40 = vpop.f32.mrf.mxu0  ;;  %v2777_v55 = vpop.f32.mrf.mxu1 }
  0xf5   : > { %v3429_v56 = vmul.f32 %v2745_v40, %v1063_v31  ;;  %v1223_v52 = vpop.permute.xlu1 %1222  ;;  %v1218_v51 = vpop.permute.xlu0 %1217 }
  0xf6   : > { %v3431_v19 = vmul.f32 %v2777_v55, %v1223_v52  ;;  %v3433_v20 = vmul.f32 %v2776_v28, %v1218_v51  ;;  %v729_v23 = vpop.f32.mrf.mxu0  ;;  %v857_v24 = vpop.f32.mrf.mxu1 }
  0xf7   : > { %3795 = vst [vmem:[#allocation17_spill] sm:$0xff] %v3429_v56 }
  0xf8   : > { %3796 = vst [vmem:[#allocation18_spill] sm:$0xff] %v3431_v19  ;;  %3797 = vst [vmem:[#allocation19_spill] sm:$0xff] %v3433_v20  ;;  %v2748_v27 = vpop.f32.mrf.mxu0  ;;  %v2780_v32 = vpop.f32.mrf.mxu1 }
  0xf9   : > { %v3439_v7 = vpop.permute.xlu1 %1132  ;;  %v3441_v31 = vpop.permute.xlu0 %1127  ;;  %v3443_v51 = vmul.f32 %v2748_v27, %v1078_v60  ;;  %v3445_v28 = vmul.f32 %v2780_v32, %v1238_v0 }
  0xfa   : > { %3798 = vst [vmem:[#allocation20_spill] sm:$0xff] %v3439_v7  ;;  %3799 = vst [vmem:[#allocation21_spill] sm:$0xff] %v3441_v31  ;;  %v742_v40 = vpop.f32.mrf.mxu0  ;;  %v870_v3 = vpop.f32.mrf.mxu1 }
  0xfb   : > { %3800 = vst [vmem:[#allocation22_spill] sm:$0xff] %v3443_v51  ;;  %3801 = vst [vmem:[#allocation23_spill] sm:$0xff] %v3445_v28  ;;  %v3455_v20 = vmul.f32 %v1068_v12, %v742_v40  ;;  %v3457_v19 = vmul.f32 %v1228_v16, %v870_v3 }
  0xfc   : > { %v2749_v52 = vpop.f32.mrf.mxu0  ;;  %v2781_v55 = vpop.f32.mrf.mxu1 }
  0xfd   : > { %v3447_v48 = vmul.f32 %v2749_v52, %v1083_v59  ;;  %v3449_v8 = vmul.f32 %v2781_v55, %v1243_v63  ;;  %v3451_v39 = vpop.permute.xlu1 %1292  ;;  %v3453_v4 = vpop.permute.xlu0 %1287  ;;  %3806 = vst [vmem:[#allocation28_spill] sm:$0xff] %v3455_v20  ;;  %3807 = vst [vmem:[#allocation29_spill] sm:$0xff] %v3457_v19 }
  0xfe   : > { %3804 = vst [vmem:[#allocation26_spill] sm:$0xff] %v3451_v39  ;;  %3805 = vst [vmem:[#allocation27_spill] sm:$0xff] %v3453_v4  ;;  %v745_v56 = vpop.f32.mrf.mxu0  ;;  %v873_v31 = vpop.f32.mrf.mxu1 }
  0xff   : > { %3802 = vst [vmem:[#allocation24_spill] sm:$0xff] %v3447_v48  ;;  %3803 = vst [vmem:[#allocation25_spill] sm:$0xff] %v3449_v8  ;;  %v3463_v59 = vmul.f32 %v1073_v11, %v745_v56  ;;  %v3465_v63 = vmul.f32 %v1233_v15, %v873_v31 }
 0x100   : > { %v2752_v27 = vpop.f32.mrf.mxu0  ;;  %v3467_v32 = vpop.f32.mrf.mxu1 }
 0x101   : > { %3808 = vst [vmem:[#allocation30_spill] sm:$0xff] %v3463_v59  ;;  %3809 = vst [vmem:[#allocation31_spill] sm:$0xff] %v3465_v63  ;;  %v1053_v16 = vpop.permute.xlu1 %1052  ;;  %v1048_v40 = vpop.permute.xlu0 %1047  ;;  %v3486_v12 = vmul.f32 %v2752_v27, %v3355_v18 }
 0x102   : > { %v3473_v52 = vmul.f32 %v1053_v16, %v729_v23  ;;  %v3475_v55 = vmul.f32 %v1048_v40, %v726_v35  ;;  %v3477_v0 = vpop.f32.mrf.mxu0  ;;  %v3479_v11 = vpop.f32.mrf.mxu1 }
 0x103   : > { %3812 = vst [vmem:[#allocation34_spill] sm:$0xff] %v3477_v0  ;;  %3813 = vst [vmem:[#allocation35_spill] sm:$0xff] %v3479_v11 }
 0x104   : > { %3810 = vst [vmem:[#allocation32_spill] sm:$0xff] %v3473_v52  ;;  %3811 = vst [vmem:[#allocation33_spill] sm:$0xff] %v3475_v55  ;;  %v2753_v56 = vpop.f32.mrf.mxu0  ;;  %v3483_v31 = vpop.f32.mrf.mxu1 }
 0x105   : > { %3814 = vst [vmem:[#allocation36_spill] sm:$0xff] %v3486_v12  ;;  %v3489_v3 = vmul.f32 %v2753_v56, %v3353_v17  ;;  %v1213_v23 = vpop.permute.xlu1 %1212  ;;  %v1208_v16 = vpop.permute.xlu0 %1207 }
 0x106   : > { %v3491_v35 = vmul.f32 %v1213_v23, %v857_v24  ;;  %v3493_v40 = vmul.f32 %v1208_v16, %v854_v36  ;;  %v3495_v60 = vpop.f32.mrf.mxu0  ;;  %v3497_v4 = vpop.f32.mrf.mxu1 }
 0x107   : > { %3815 = vst [vmem:[#allocation37_spill] sm:$0xff] %v3489_v3 }
 0x108   : > { %3816 = vst [vmem:[#allocation38_spill] sm:$0xff] %v3491_v35  ;;  %3817 = vst [vmem:[#allocation39_spill] sm:$0xff] %v3493_v40  ;;  %v2756_v27 = vpop.f32.mrf.mxu0  ;;  %v2788_v55 = vpop.f32.mrf.mxu1 }
 0x10a   : > { %v3503_v17 = vpop.f32.mrf.mxu0  ;;  %v3505_v56 = vpop.f32.mrf.mxu1 }
 0x10c   : > { %v2757_v24 = vpop.f32.mrf.mxu0  ;;  %v2789_v23 = vpop.f32.mrf.mxu1 }
 0x10e   : > { %v777_v36 = vpop.f32.mrf.mxu0  ;;  %v905_v16 = vpop.f32.mrf.mxu1 }
 0x110   : > { %v3507_v52 = vpop.f32.mrf.mxu0  ;;  %v3509_v19 = vpop.f32.mrf.mxu1 }
 0x111   : > { %3818 = vst [vmem:[#allocation40_spill] sm:$0xff] %v3507_v52  ;;  %3819 = vst [vmem:[#allocation41_spill] sm:$0xff] %v3509_v19 }
 0x112   : > { %v3511_v63 = vpop.f32.mrf.mxu0  ;;  %v3513_v15 = vpop.f32.mrf.mxu1 }
 0x113   : > { %3820 = vst [vmem:[#allocation42_spill] sm:$0xff] %v3511_v63  ;;  %3821 = vst [vmem:[#allocation43_spill] sm:$0xff] %v3513_v15 }
 0x114   : > { %v3515_v20 = vpop.f32.mrf.mxu0  ;;  %v3517_v18 = vpop.f32.mrf.mxu1 }
 0x115   : > { %3822 = vst [vmem:[#allocation44_spill] sm:$0xff] %v3515_v20  ;;  %3823 = vst [vmem:[#allocation45_spill] sm:$0xff] %v3517_v18 }
 0x116   : > { %v3519_v40 = vpop.f32.mrf.mxu0  ;;  %v3521_v35 = vpop.f32.mrf.mxu1 }
 0x117   : > { %3824 = vst [vmem:[#allocation46_spill] sm:$0xff] %v3519_v40  ;;  %3825 = vst [vmem:[#allocation47_spill] sm:$0xff] %v3521_v35 }
 0x118   : > { %v3523_v59 = vpop.f32.mrf.mxu0  ;;  %v3525_v39 = vpop.f32.mrf.mxu1 }
 0x119   : > { %3826 = vst [vmem:[#allocation48_spill] sm:$0xff] %v3523_v59  ;;  %3827 = vst [vmem:[#allocation49_spill] sm:$0xff] %v3525_v39 }
 0x11a   : > { %v3527_v7 = vpop.f32.mrf.mxu0  ;;  %v3529_v52 = vpop.f32.mrf.mxu1 }
 0x11b   : > { %3828 = vst [vmem:[#allocation50_spill] sm:$0xff] %v3527_v7  ;;  %3829 = vst [vmem:[#allocation51_spill] sm:$0xff] %v3529_v52 }
 0x11c   : > { %v3531_v19 = vpop.f32.mrf.mxu0  ;;  %v3533_v63 = vpop.f32.mrf.mxu1 }
 0x11d   : > { %3830 = vst [vmem:[#allocation52_spill] sm:$0xff] %v3533_v63 }
 0x11e   : > { %v3535_v15 = vpop.f32.mrf.mxu0  ;;  %v3537_v28 = vpop.f32.mrf.mxu1 }
 0x11f   : > { %3831 = vst [vmem:[#allocation53_spill] sm:$0xff] %v3535_v15  ;;  %3832 = vst [vmem:[#allocation54_spill] sm:$0xff] %v3537_v28  ;;  %v1380_v15 = vmul.f32 %v2757_v24, %v3305_v49  ;;  %v1412_v28 = vmul.f32 %v2789_v23, %v3311_v53 }
 0x120   : > { %v2768_v8 = vpop.f32.mrf.mxu0  ;;  %v2800_v40 = vpop.f32.mrf.mxu1 }
 0x121   : > { %v1423_v20 = vmul.f32 %v2800_v40, %v3349_v14 }
 0x122   : > { %v822_v51 = vpop.f32.mrf.mxu0  ;;  %v950_v35 = vpop.f32.mrf.mxu1 }
 0x124   : > { %v2769_v48 = vpop.f32.mrf.mxu0  ;;  %v2801_v18 = vpop.f32.mrf.mxu1 }
 0x125   : > { %v1424_v7 = vmul.f32 %v2801_v18, %v3347_v13 }
 0x126   : > { %v825_v39 = vpop.f32.mrf.mxu0  ;;  %v953_v52 = vpop.f32.mrf.mxu1 }
 0x127   : > { %v1586_v59 = vpack.c.bf16 %v1424_v7, %v1423_v20  ;;  %v1379_v7 = vmul.f32 %v2756_v27, %v3307_v50  ;;  %v1411_v20 = vmul.f32 %v2788_v55, %v3313_v54  ;;  %v1410_v50 = vmul.f32 %v3335_v5, %v905_v16  ;;  %v3846_v27 = vld [vmem:[#allocation8_spill] sm:$0xff] }
 0x128   : > { %v2772_v44 = vpop.f32.mrf.mxu0  ;;  %v2804_v12 = vpop.f32.mrf.mxu1  ;;  %v1392_v54 = vmul.f32 %v2769_v48, %v3341_v9  ;;  %v1390_v48 = vmul.f32 %v3365_v25, %v825_v39  ;;  %v1406_v25 = vmul.f32 %v3383_v37, %v3497_v4  ;;  %v3841_v37 = vld [vmem:[#allocation4_spill] sm:$0xff] }
 0x129   : > { %v1395_v0 = vmul.f32 %v2772_v44, %v3295_v42  ;;  %v1427_v63 = vmul.f32 %v2804_v12, %v3293_v41  ;;  %v1564_v44 = vpack.c.bf16 %v1380_v15, %v1379_v7  ;;  %v3842_v4 = vld [vmem:[#allocation48_spill] sm:$0xff] }
 0x12a   : > { %v838_v3 = vpop.f32.mrf.mxu0  ;;  %v966_v38 = vpop.f32.mrf.mxu1 }
 0x12b   : > { %v1393_v40 = vmul.f32 %v3319_v58, %v838_v3  ;;  %v1425_v49 = vmul.f32 %v3325_v62, %v966_v38  ;;  %v1377_v62 = vmul.f32 %v3331_v2, %v3503_v17  ;;  %v1407_v2 = vmul.f32 %v3467_v32, %v3361_v22  ;;  %v3833_v22 = vld [vmem:[#allocation52_spill] sm:$0xff]  ;;  %v3836_v32 = vld [vmem:[#allocation35_spill] sm:$0xff]  ;;  %v3838_v3 = vld [vmem:[#allocation37_spill] sm:$0xff] }
 0x12c   : > { %v2773_v11 = vpop.f32.mrf.mxu0  ;;  %v2805_v34 = vpop.f32.mrf.mxu1  ;;  %v1420_v39 = vmul.f32 %v3833_v22, %v3399_v47  ;;  %v3872_v22 = vld [vmem:[#allocation28_spill] sm:$0xff] }
 0x12d   : > { %v1396_v14 = vmul.f32 %v2773_v11, %v3301_v46  ;;  %v1428_v13 = vmul.f32 %v2805_v34, %v3299_v45  ;;  %v1580_v46 = vpack.c.bf16 %v1412_v28, %v1411_v20  ;;  %v1378_v45 = vmul.f32 %v3329_v1, %v777_v36  ;;  %v3848_v36 = vld [vmem:[#allocation10_spill] sm:$0xff]  ;;  %v3851_v20 = vld [vmem:[#allocation51_spill] sm:$0xff] }
 0x12e   : > { %v841_v18 = vpop.f32.mrf.mxu0  ;;  %v969_v53 = vpop.f32.mrf.mxu1  ;;  %v1408_v1 = vmul.f32 %v3483_v31, %v3359_v21  ;;  %v1422_v28 = vmul.f32 %v3371_v29, %v953_v52  ;;  %v1374_v21 = vmul.f32 %v3377_v33, %v3495_v60  ;;  %v1388_v29 = vmul.f32 %v3531_v19, %v3390_v43  ;;  %v3839_v52 = vld [vmem:[#allocation36_spill] sm:$0xff]  ;;  %v3843_v43 = vld [vmem:[#allocation5_spill] sm:$0xff] }
 0x12f   : > { %v1572_v24 = vpack.c.bf16 %v1396_v14, %v1395_v0  ;;  %v1588_v23 = vpack.c.bf16 %v1428_v13, %v1427_v63  ;;  %v1394_v42 = vmul.f32 %v3317_v57, %v841_v18  ;;  %v1426_v41 = vmul.f32 %v3323_v61, %v969_v53  ;;  %v3844_v19 = vld [vmem:[#allocation49_spill] sm:$0xff]  ;;  %v3849_v14 = vld [vmem:[#allocation50_spill] sm:$0xff]  ;;  %v3853_v18 = vld [vmem:[#allocation12_spill] sm:$0xff] }
 0x130   : > { %v1409_v57 = vmul.f32 %v3337_v6, %v3505_v56  ;;  %v1391_v61 = vmul.f32 %v2768_v8, %v3343_v10  ;;  %v1563_v5 = vpack.c.bf16 %v1378_v45, %v1377_v62  ;;  %v1389_v6 = vmul.f32 %v3367_v26, %v822_v51  ;;  %v3834_v26 = vld [vmem:[#allocation34_spill] sm:$0xff]  ;;  %v3850_v13 = vld [vmem:[#allocation9_spill] sm:$0xff]  ;;  %v3854_v53 = vld [vmem:[#allocation44_spill] sm:$0xff] }
 0x131   : > { %v1571_v34 = vpack.c.bf16 %v1394_v42, %v1393_v40  ;;  %v1587_v58 = vpack.c.bf16 %v1426_v41, %v1425_v49  ;;  %2502 = vmatprep.subr.bf16.mxu1 %v1572_v24  ;;  %2614 = vmatprep.subr.bf16.mxu0 %v1588_v23  ;;  %v1421_v10 = vmul.f32 %v3373_v30, %v950_v35  ;;  %v3835_v51 = vld [vmem:[#allocation2_spill] sm:$0xff]  ;;  %v3845_v35 = vld [vmem:[#allocation53_spill] sm:$0xff]  ;;  %v3852_v40 = vld [vmem:[#allocation11_spill] sm:$0xff] }
 0x132   : > { %2503 = vmatpush3.bf16.msra.mxu1 %v1564_v44  ;;  %2615 = vmatpush3.bf16.msra.mxu0 %v1580_v46  ;;  %v1579_v9 = vpack.c.bf16 %v1410_v50, %v1409_v57  ;;  %v1570_v38 = vpack.c.bf16 %v1392_v54, %v1391_v61  ;;  %v1578_v8 = vpack.c.bf16 %v1408_v1, %v1407_v2  ;;  %v3847_v56 = vld [vmem:[#allocation54_spill] sm:$0xff]  ;;  %v3856_v42 = vld [vmem:[#allocation45_spill] sm:$0xff]  ;;  %v3857_v45 = vld [vmem:[#allocation24_spill] sm:$0xff] }
 0x133   : > { %2504 = vmatprep.subr.bf16.mxu1 %v1571_v34  ;;  %2616 = vmatprep.subr.bf16.mxu0 %v1587_v58  ;;  %v1569_v0 = vpack.c.bf16 %v1390_v48, %v1389_v6  ;;  %v1585_v63 = vpack.c.bf16 %v1422_v28, %v1421_v10  ;;  %v1373_v30 = vmul.f32 %v3835_v51, %v3834_v26  ;;  %v3855_v23 = vld [vmem:[#allocation14_spill] sm:$0xff]  ;;  %v3860_v34 = vld [vmem:[#allocation25_spill] sm:$0xff]  ;;  %v3861_v58 = vld [vmem:[#allocation23_spill] sm:$0xff] }
 0x134   : > { %v3840_v33 = vpack.c.bf16 %v3838_v3, %v3839_v52  ;;  %v1387_v60 = vmul.f32 %v3842_v4, %v3841_v37  ;;  %v1419_v55 = vmul.f32 %v3844_v19, %v3843_v43  ;;  %v1386_v17 = vmul.f32 %v3846_v27, %v3845_v35  ;;  %v3858_v50 = vld [vmem:[#allocation22_spill] sm:$0xff]  ;;  %v3863_v57 = vld [vmem:[#allocation13_spill] sm:$0xff]  ;;  %v3864_v61 = vld [vmem:[#allocation40_spill] sm:$0xff] }
 0x135   : > { %v1561_v47 = vpack.c.bf16 %v1374_v21, %v1373_v30  ;;  %v1418_v16 = vmul.f32 %v3848_v36, %v3847_v56  ;;  %v1385_v7 = vmul.f32 %v3850_v13, %v3849_v14  ;;  %v1417_v49 = vmul.f32 %v3852_v40, %v3851_v20  ;;  %v3867_v2 = vld [vmem:[#allocation46_spill] sm:$0xff]  ;;  %v3868_v6 = vld [vmem:[#allocation20_spill] sm:$0xff]  ;;  %v3878_v30 = vld [vmem:[#allocation21_spill] sm:$0xff] }
 0x136   : > { %2505 = vmatpush3.bf16.msra.mxu1 %v1563_v5  ;;  %2617 = vmatpush3.bf16.msra.mxu0 %v1579_v9  ;;  %v1568_v15 = vpack.c.bf16 %v1388_v29, %v1387_v60  ;;  %v1584_v31 = vpack.c.bf16 %v1420_v39, %v1419_v55  ;;  %v1384_v24 = vmul.f32 %v3854_v53, %v3853_v18  ;;  %v3865_v5 = vld [vmem:[#allocation15_spill] sm:$0xff]  ;;  %v3866_v9 = vld [vmem:[#allocation41_spill] sm:$0xff]  ;;  %v3870_v21 = vld [vmem:[#allocation26_spill] sm:$0xff] }
 0x137   : > { %2506 = vmatprep.subr.bf16.mxu1 %v1570_v38  ;;  %2618 = vmatprep.subr.bf16.mxu0 %v1586_v59  ;;  %v3837_v59 = vld [vmem:[#allocation3_spill] sm:$0xff]  ;;  %v1416_v41 = vmul.f32 %v3856_v42, %v3855_v23  ;;  %v1567_v44 = vpack.c.bf16 %v1386_v17, %v1385_v7  ;;  %v1583_v46 = vpack.c.bf16 %v1418_v16, %v1417_v49  ;;  %v3871_v29 = vld [vmem:[#allocation30_spill] sm:$0xff]  ;;  %v3881_v37 = vld [vmem:[#allocation17_spill] sm:$0xff] }
 0x138   : > { %v1405_v12 = vmul.f32 %v3837_v59, %v3836_v32  ;;  %v3859_v54 = vpack.c.bf16 %v3857_v45, %v3858_v50  ;;  %v3862_v62 = vpack.c.bf16 %v3860_v34, %v3861_v58  ;;  %v1383_v1 = vmul.f32 %v3864_v61, %v3863_v57  ;;  %v3877_v51 = vld [vmem:[#allocation42_spill] sm:$0xff]  ;;  %v3879_v59 = vld [vmem:[#allocation43_spill] sm:$0xff]  ;;  %v3882_v4 = vld [vmem:[#allocation16_spill] sm:$0xff] }
 0x139   : > { %v1415_v38 = vmul.f32 %v3866_v9, %v3865_v5  ;;  %v1382_v10 = vmul.f32 %v3868_v6, %v3867_v2  ;;  %v3873_v39 = vpack.c.bf16 %v3871_v29, %v3872_v22  ;;  %v1381_v32 = vmul.f32 %v3878_v30, %v3877_v51  ;;  %v3884_v43 = vld [vmem:[#allocation18_spill] sm:$0xff]  ;;  %v3885_v19 = vld [vmem:[#allocation19_spill] sm:$0xff]  ;;  %v3887_v35 = vld [vmem:[#allocation32_spill] sm:$0xff] }
 0x13a   : > { %2507 = vmatpush3.bf16.msra.mxu1 %v3840_v33  ;;  %2619 = vmatpush3.bf16.msra.mxu0 %v1578_v8  ;;  %v1577_v11 = vpack.c.bf16 %v1406_v25, %v1405_v12  ;;  %v1566_v48 = vpack.c.bf16 %v1384_v24, %v1383_v1  ;;  %v3869_v8 = vld [vmem:[#allocation47_spill] sm:$0xff]  ;;  %v3883_v60 = vpack.c.bf16 %v3881_v37, %v3882_v4  ;;  %v3888_v27 = vld [vmem:[#allocation33_spill] sm:$0xff]  ;;  %v3890_v56 = vld [vmem:[#allocation38_spill] sm:$0xff] }
 0x13b   : > { %2508 = vmatprep.subr.bf16.mxu1 %v1569_v0  ;;  %2620 = vmatprep.subr.bf16.mxu0 %v1585_v63  ;;  %v1582_v28 = vpack.c.bf16 %v1416_v41, %v1415_v38  ;;  %v1414_v25 = vmul.f32 %v3870_v21, %v3869_v8  ;;  %v3874_v0 = vld [vmem:[#allocation31_spill] sm:$0xff]  ;;  %v3875_v63 = vld [vmem:[#allocation29_spill] sm:$0xff]  ;;  %v1565_v52 = vpack.c.bf16 %v1382_v10, %v1381_v32  ;;  %v3893_v14 = vld [vmem:[#allocation6_spill] sm:$0xff] }
 0x13c   : > { %v3876_v26 = vpack.c.bf16 %v3874_v0, %v3875_v63  ;;  %v3880_v12 = vld [vmem:[#allocation27_spill] sm:$0xff]  ;;  %v3886_v55 = vpack.c.bf16 %v3884_v43, %v3885_v19  ;;  %v3889_v17 = vpack.c.bf16 %v3887_v35, %v3888_v27  ;;  %v1466_v13 = vunpack.c.h.s8.bf16 %v3893_v14  ;;  %v1436_v49 = vld [vmem:[%s3397_s19 + $0x38] sm:$0xff]  ;;  %v1433_v42 = vld [vmem:[%s3397_s19 + $0x20] sm:$0xff] }
 0x13d   : > { %v1413_v3 = vmul.f32 %v3880_v12, %v3879_v59  ;;  %v3891_v36 = vld [vmem:[#allocation39_spill] sm:$0xff]  ;;  %v1472_v23 = vunpack.c.l.s8.bf16 %v1436_v49  ;;  %v1435_v41 = vld [vmem:[%s3397_s19 + $0x30] sm:$0xff]  ;;  %v1476_v50 = vunpack.c.h.s8.bf16 %v1436_v49  ;;  %v1440_v34 = vld [vmem:[%s3397_s19 + $0x58] sm:$0xff]  ;;  %v1473_v58 = vunpack.c.h.s8.bf16 %v1433_v42 }
 0x13e   : > { %2509 = vmatpush3.bf16.msra.mxu1 %v1561_v47  ;;  %2621 = vmatpush3.bf16.msra.mxu0 %v1577_v11  ;;  %v1429_v47 = vld [vmem:[%s3397_s19] sm:$0xff]  ;;  %v1431_v11 = vld [vmem:[%s3397_s19 + $0x10] sm:$0xff]  ;;  %v3892_v16 = vpack.c.bf16 %v3890_v56, %v3891_v36  ;;  %v3894_v7 = vld [vmem:[#allocation7_spill] sm:$0xff]  ;;  %v1480_v61 = vunpack.c.l.s8.bf16 %v1440_v34 }
 0x13f   : > { %2510 = vmatprep.subr.bf16.mxu1 %v1568_v15  ;;  %2622 = vmatprep.subr.bf16.mxu0 %v1584_v31  ;;  %v1581_v33 = vpack.c.bf16 %v1414_v25, %v1413_v3  ;;  %v1461_v15 = vunpack.c.l.s8.bf16 %v1429_v47  ;;  %v1463_v31 = vunpack.c.l.s8.bf16 %v1431_v11  ;;  %v1468_v20 = vunpack.c.h.s8.bf16 %v3894_v7  ;;  %v1434_v40 = vld [vmem:[%s3397_s19 + $0x28] sm:$0xff]  ;;  %v1437_v1 = vld [vmem:[%s3397_s19 + $0x40] sm:$0xff]  ;;  %v1439_v5 = vld [vmem:[%s3397_s19 + $0x50] sm:$0xff] }
 0x140   : > { %v1465_v18 = vunpack.c.h.s8.bf16 %v1429_v47  ;;  %v1467_v53 = vunpack.c.h.s8.bf16 %v1431_v11  ;;  %v1470_v24 = vunpack.c.l.s8.bf16 %v1434_v40  ;;  %v1474_v45 = vunpack.c.h.s8.bf16 %v1434_v40  ;;  %v1442_v2 = vld [vmem:[%s3397_s19 + $0x68] sm:$0xff]  ;;  %v1444_v6 = vld [vmem:[%s3397_s19 + $0x78] sm:$0xff]  ;;  %v1441_v29 = vld [vmem:[%s3397_s19 + $0x60] sm:$0xff] }
 0x141   : > { %v1477_v9 = vunpack.c.l.s8.bf16 %v1437_v1  ;;  %v1479_v38 = vunpack.c.l.s8.bf16 %v1439_v5  ;;  %v1481_v10 = vunpack.c.h.s8.bf16 %v1437_v1  ;;  %v1483_v8 = vunpack.c.h.s8.bf16 %v1439_v5  ;;  %v1443_v22 = vld [vmem:[%s3397_s19 + $0x70] sm:$0xff]  ;;  %v1446_v51 = vld [vmem:[%s3397_s19 + $0x88] sm:$0xff]  ;;  %v1448_v30 = vld [vmem:[%s3397_s19 + $0x98] sm:$0xff] }
 0x142   : > { %2511 = vmatpush3.bf16.msra.mxu1 %v3859_v54  ;;  %2623 = vmatpush3.bf16.msra.mxu0 %v3862_v62  ;;  %v1438_v54 = vld [vmem:[%s3397_s19 + $0x48] sm:$0xff]  ;;  %v1475_v62 = vunpack.c.h.s8.bf16 %v1435_v41  ;;  %v1486_v21 = vunpack.c.l.s8.bf16 %v1442_v2  ;;  %v1488_v25 = vunpack.c.l.s8.bf16 %v1444_v6  ;;  %v1487_v0 = vunpack.c.l.s8.bf16 %v1443_v22  ;;  %v1449_v35 = vld [vmem:[%s3397_s19 + $0xa0] sm:$0xff]  ;;  %v1451_v27 = vld [vmem:[%s3397_s19 + $0xb0] sm:$0xff] }
 0x143   : > { %2512 = vmatprep.subr.bf16.mxu1 %v1567_v44  ;;  %2624 = vmatprep.subr.bf16.mxu0 %v1583_v46  ;;  %v1469_v44 = vunpack.c.l.s8.bf16 %v1433_v42  ;;  %v1471_v46 = vunpack.c.l.s8.bf16 %v1435_v41  ;;  %v1478_v57 = vunpack.c.l.s8.bf16 %v1438_v54  ;;  %v1490_v63 = vunpack.c.h.s8.bf16 %v1442_v2  ;;  %v1450_v19 = vld [vmem:[%s3397_s19 + $0xa8] sm:$0xff] }
 0x144   : > { %v1489_v32 = vunpack.c.h.s8.bf16 %v1441_v29  ;;  %v1491_v59 = vunpack.c.h.s8.bf16 %v1443_v22  ;;  %v1494_v12 = vunpack.c.l.s8.bf16 %v1446_v51  ;;  %v1496_v3 = vunpack.c.l.s8.bf16 %v1448_v30  ;;  %v1454_v14 = vld [vmem:[%s3397_s19 + $0xc8] sm:$0xff] }
 0x145   : > { %v1500_v43 = vunpack.c.h.s8.bf16 %v1448_v30  ;;  %v1503_v56 = vunpack.c.l.s8.bf16 %v1451_v27  ;;  %v1506_v36 = vunpack.c.h.s8.bf16 %v1450_v19  ;;  %v1505_v7 = vunpack.c.h.s8.bf16 %v1449_v35 }
 0x146   : > { %2513 = vmatpush3.bf16.msra.mxu1 %v3873_v39  ;;  %2625 = vmatpush3.bf16.msra.mxu0 %v3876_v26  ;;  %v1485_v39 = vunpack.c.l.s8.bf16 %v1441_v29  ;;  %v1492_v26 = vunpack.c.h.s8.bf16 %v1444_v6  ;;  %v1510_v40 = vunpack.c.l.s8.bf16 %v1454_v14  ;;  %v1514_v42 = vunpack.c.h.s8.bf16 %v1454_v14 }
 0x147   : > { %2514 = vmatprep.subr.bf16.mxu1 %v1566_v48  ;;  %2626 = vmatprep.subr.bf16.mxu0 %v1582_v28  ;;  %v1482_v48 = vunpack.c.h.s8.bf16 %v1438_v54  ;;  %v1484_v28 = vunpack.c.h.s8.bf16 %v1440_v34 }
 0x14a   : > { %2515 = vmatpush3.bf16.msra.mxu1 %v3883_v60  ;;  %2627 = vmatpush3.bf16.msra.mxu0 %v3886_v55  ;;  %v1498_v60 = vunpack.c.h.s8.bf16 %v1446_v51  ;;  %v1452_v55 = vld [vmem:[%s3397_s19 + $0xb8] sm:$0xff]  ;;  %v3671_v51 = vld [vmem:[%s3756_s3] ss:$0 sm:$0xff] }
 0x14b   : > { %2516 = vmatprep.subr.bf16.mxu1 %v1565_v52  ;;  %2628 = vmatprep.subr.bf16.mxu0 %v1581_v33  ;;  %v1445_v52 = vld [vmem:[%s3397_s19 + $0x80] sm:$0xff]  ;;  %v1447_v33 = vld [vmem:[%s3397_s19 + $0x90] sm:$0xff] }
 0x14c   : > { %v1493_v37 = vunpack.c.l.s8.bf16 %v1445_v52  ;;  %v1495_v4 = vunpack.c.l.s8.bf16 %v1447_v33  ;;  %v1497_v47 = vunpack.c.h.s8.bf16 %v1445_v52  ;;  %v1499_v11 = vunpack.c.h.s8.bf16 %v1447_v33  ;;  %v2050_v33 = vpop.permute.xlu1 %2049 }
 0x14e   : > { %2517 = vmatpush3.bf16.msra.mxu1 %v3889_v17  ;;  %2629 = vmatpush3.bf16.msra.mxu0 %v3892_v16  ;;  %v1501_v17 = vunpack.c.l.s8.bf16 %v1449_v35  ;;  %v1508_v16 = vunpack.c.h.s8.bf16 %v1452_v55 }
 0x151   : > { %1622 = vmatmul.mubr.bf16.vlgmr.msra.gmra.mxu1 %v1461_v15  ;;  %1783 = vmatmul.mubr.bf16.vlgmr.msra.gmra.mxu0 %v1463_v31  ;;  %v1502_v15 = vunpack.c.l.s8.bf16 %v1450_v19  ;;  %v1504_v31 = vunpack.c.l.s8.bf16 %v1452_v55 }
 0x152   : > { %1629 = vmatprep.mubr.bf16.mxu1 %v1466_v13  ;;  %1790 = vmatprep.mubr.bf16.mxu0 %v1468_v20  ;;  %v1456_v13 = vld [vmem:[%s3397_s19 + $0xd8] sm:$0xff]  ;;  %v1507_v20 = vunpack.c.h.s8.bf16 %v1451_v27 }
 0x153   : > { %v1512_v49 = vunpack.c.l.s8.bf16 %v1456_v13  ;;  %v1516_v41 = vunpack.c.h.s8.bf16 %v1456_v13 }
 0x159   : > { %1630 = vmatmul.mubr.bf16.gmra.mxu1 %v1465_v18  ;;  %1791 = vmatmul.mubr.bf16.gmra.mxu0 %v1467_v53  ;;  %v1453_v18 = vld [vmem:[%s3397_s19 + $0xc0] sm:$0xff]  ;;  %v1455_v53 = vld [vmem:[%s3397_s19 + $0xd0] sm:$0xff] }
 0x15a   : > { %1637 = vmatprep.mubr.bf16.mxu1 %v1470_v24  ;;  %1798 = vmatprep.mubr.bf16.mxu0 %v1472_v23  ;;  %v1509_v24 = vunpack.c.l.s8.bf16 %v1453_v18  ;;  %v1511_v23 = vunpack.c.l.s8.bf16 %v1455_v53 }
 0x161   : > { %1638 = vmatmul.mubr.bf16.gmra.mxu1 %v1469_v44  ;;  %1799 = vmatmul.mubr.bf16.gmra.mxu0 %v1471_v46  ;;  %v1458_v44 = vld [vmem:[%s3397_s19 + $0xe8] sm:$0xff]  ;;  %v1460_v46 = vld [vmem:[%s3397_s19 + $0xf8] sm:$0xff] }
 0x162   : > { %1645 = vmatprep.mubr.bf16.mxu1 %v1474_v45  ;;  %1806 = vmatprep.mubr.bf16.mxu0 %v1476_v50  ;;  %v1513_v45 = vunpack.c.h.s8.bf16 %v1453_v18  ;;  %v1515_v50 = vunpack.c.h.s8.bf16 %v1455_v53  ;;  %v1518_v54 = vunpack.c.l.s8.bf16 %v1458_v44  ;;  %v1520_v34 = vunpack.c.l.s8.bf16 %v1460_v46 }
 0x163   : > { %v1522_v1 = vunpack.c.h.s8.bf16 %v1458_v44  ;;  %v1524_v5 = vunpack.c.h.s8.bf16 %v1460_v46 }
 0x169   : > { %1646 = vmatmul.mubr.bf16.gmra.mxu1 %v1473_v58  ;;  %1807 = vmatmul.mubr.bf16.gmra.mxu0 %v1475_v62  ;;  %v1457_v58 = vld [vmem:[%s3397_s19 + $0xe0] sm:$0xff]  ;;  %v1459_v62 = vld [vmem:[%s3397_s19 + $0xf0] sm:$0xff] }
 0x16a   : > { %1653 = vmatprep.mubr.bf16.mxu1 %v1478_v57  ;;  %1814 = vmatprep.mubr.bf16.mxu0 %v1480_v61  ;;  %v1517_v57 = vunpack.c.l.s8.bf16 %v1457_v58  ;;  %v1519_v61 = vunpack.c.l.s8.bf16 %v1459_v62 }
 0x171   : > { %1654 = vmatmul.mubr.bf16.gmra.mxu1 %v1477_v9  ;;  %1815 = vmatmul.mubr.bf16.gmra.mxu0 %v1479_v38  ;;  %v1521_v9 = vunpack.c.h.s8.bf16 %v1457_v58  ;;  %v1523_v38 = vunpack.c.h.s8.bf16 %v1459_v62 }
 0x172   : > { %1661 = vmatprep.mubr.bf16.mxu1 %v1482_v48  ;;  %1822 = vmatprep.mubr.bf16.mxu0 %v1484_v28 }
 0x179   : > { %1662 = vmatmul.mubr.bf16.gmra.mxu1 %v1481_v10  ;;  %1823 = vmatmul.mubr.bf16.gmra.mxu0 %v1483_v8 }
 0x17a   : > { %1669 = vmatprep.mubr.bf16.mxu1 %v1486_v21  ;;  %1830 = vmatprep.mubr.bf16.mxu0 %v1488_v25 }
 0x181   : > { %1670 = vmatmul.mubr.bf16.gmra.mxu1 %v1485_v39  ;;  %1831 = vmatmul.mubr.bf16.gmra.mxu0 %v1487_v0  ;;  %v2045_v0 = vpop.permute.xlu0 %2044 }
 0x182   : > { %1677 = vmatprep.mubr.bf16.mxu1 %v1490_v63  ;;  %1838 = vmatprep.mubr.bf16.mxu0 %v1492_v26 }
 0x189   : > { %1678 = vmatmul.mubr.bf16.gmra.mxu1 %v1489_v32  ;;  %1839 = vmatmul.mubr.bf16.gmra.mxu0 %v1491_v59 }
 0x18a   : > { %1685 = vmatprep.mubr.bf16.mxu1 %v1494_v12  ;;  %1846 = vmatprep.mubr.bf16.mxu0 %v1496_v3 }
 0x191   : > { %1686 = vmatmul.mubr.bf16.gmra.mxu1 %v1493_v37  ;;  %1847 = vmatmul.mubr.bf16.gmra.mxu0 %v1495_v4 }
 0x192   : > { %1693 = vmatprep.mubr.bf16.mxu1 %v1498_v60  ;;  %1854 = vmatprep.mubr.bf16.mxu0 %v1500_v43 }
 0x199   : > { %1694 = vmatmul.mubr.bf16.gmra.mxu1 %v1497_v47  ;;  %1855 = vmatmul.mubr.bf16.gmra.mxu0 %v1499_v11 }
 0x19a   : > { %1701 = vmatprep.mubr.bf16.mxu1 %v1502_v15  ;;  %1862 = vmatprep.mubr.bf16.mxu0 %v1504_v31  ;;  %v2055_v31 = vpop.permute.xlu0 %2054 }
 0x19e   : > { %v2065_v46 = vpop.permute.xlu0 %2064 }
 0x1a1   : > { %1702 = vmatmul.mubr.bf16.gmra.mxu1 %v1501_v17  ;;  %1863 = vmatmul.mubr.bf16.gmra.mxu0 %v1503_v56 }
 0x1a2   : > { %1709 = vmatprep.mubr.bf16.mxu1 %v1506_v36  ;;  %1870 = vmatprep.mubr.bf16.mxu0 %v1508_v16 }
 0x1a9   : > { %1710 = vmatmul.mubr.bf16.gmra.mxu1 %v1505_v7  ;;  %1871 = vmatmul.mubr.bf16.gmra.mxu0 %v1507_v20  ;;  %v2060_v20 = vpop.permute.xlu1 %2059 }
 0x1aa   : > { %1717 = vmatprep.mubr.bf16.mxu1 %v1510_v40  ;;  %1878 = vmatprep.mubr.bf16.mxu0 %v1512_v49 }
 0x1b1   : > { %1718 = vmatmul.mubr.bf16.gmra.mxu1 %v1509_v24  ;;  %1879 = vmatmul.mubr.bf16.gmra.mxu0 %v1511_v23 }
 0x1b2   : > { %1725 = vmatprep.mubr.bf16.mxu1 %v1514_v42  ;;  %1886 = vmatprep.mubr.bf16.mxu0 %v1516_v41 }
 0x1b9   : > { %1726 = vmatmul.mubr.bf16.gmra.mxu1 %v1513_v45  ;;  %1887 = vmatmul.mubr.bf16.gmra.mxu0 %v1515_v50 }
 0x1ba   : > { %1733 = vmatprep.mubr.bf16.mxu1 %v1518_v54  ;;  %1894 = vmatprep.mubr.bf16.mxu0 %v1520_v34 }
 0x1c1   : > { %1734 = vmatmul.mubr.bf16.gmra.mxu1 %v1517_v57  ;;  %1895 = vmatmul.mubr.bf16.gmra.mxu0 %v1519_v61 }
 0x1c2   : > { %1741 = vmatprep.mubr.bf16.mxu1 %v1522_v1  ;;  %1902 = vmatprep.mubr.bf16.mxu0 %v1524_v5  ;;  %v2070_v5 = vpop.permute.xlu1 %2069 }
 0x1c9   : > { %1742 = vmatmul.mubr.bf16.gmra.mxu1 %v1521_v9  ;;  %1903 = vmatmul.mubr.bf16.gmra.mxu0 %v1523_v38 }
 0x211   : > { %v2518_v48 = vpop.f32.mrf.mxu1  ;;  %v2630_v28 = vpop.f32.mrf.mxu0 }
 0x213   : > { %v2519_v2 = vpop.f32.mrf.mxu1  ;;  %v2631_v6 = vpop.f32.mrf.mxu0 }
 0x214   : > { %v2520_v10 = vadd.f32 %v2519_v2, %v2518_v48  ;;  %v2632_v8 = vadd.f32 %v2631_v6, %v2630_v28 }
 0x215   : > { %v2521_v21 = vpop.f32.mrf.mxu1  ;;  %v2633_v25 = vpop.f32.mrf.mxu0 }
 0x216   : > { %v1785_v29 = vadd.f32 %v2632_v8, %v2520_v10 }
 0x217   : > { %v2522_v22 = vpop.f32.mrf.mxu1  ;;  %v2634_v39 = vpop.f32.mrf.mxu0 }
 0x218   : > { %v2523_v63 = vadd.f32 %v2522_v22, %v2521_v21  ;;  %v2635_v26 = vadd.f32 %v2634_v39, %v2633_v25  ;;  %v2202_v59 = vmul.f32 %v2045_v0, %v1785_v29  ;;  %v2075_v25 = vpop.permute.xlu0 %2074 }
 0x219   : > { %v2524_v30 = vpop.f32.mrf.mxu1  ;;  %v2636_v32 = vpop.f32.mrf.mxu0 }
 0x21a   : > { %v1788_v12 = vadd.f32 %v2635_v26, %v2523_v63  ;;  %v2241_v37 = vadd.f32 %v3671_v51, %v2202_v59 }
 0x21b   : > { %v2525_v3 = vpop.f32.mrf.mxu1  ;;  %v2637_v52 = vpop.f32.mrf.mxu0 }
 0x21c   : > { %v2526_v4 = vadd.f32 %v2525_v3, %v2524_v30  ;;  %v2638_v60 = vadd.f32 %v2637_v52, %v2636_v32  ;;  %2273 = vst [vmem:[%s3678_s27] sm:$0xff] %v2241_v37  ;;  %v2203_v55 = vmul.f32 %v2050_v33, %v1788_v12  ;;  %v2080_v12 = vpop.permute.xlu1 %2079 }
 0x21d   : > { %v2527_v43 = vpop.f32.mrf.mxu1  ;;  %v2639_v19 = vpop.f32.mrf.mxu0 }
 0x21e   : > { %v1793_v47 = vadd.f32 %v2638_v60, %v2526_v4  ;;  %v2242_v35 = vadd.f32 %v3671_v51, %v2203_v55 }
 0x21f   : > { %v2528_v11 = vpop.f32.mrf.mxu1  ;;  %v2640_v15 = vpop.f32.mrf.mxu0 }
 0x220   : > { %v2529_v27 = vadd.f32 %v2528_v11, %v2527_v43  ;;  %v2641_v17 = vadd.f32 %v2640_v15, %v2639_v19  ;;  %2274 = vst [vmem:[%s3678_s27 + $0x8] sm:$0xff] %v2242_v35  ;;  %v2204_v16 = vmul.f32 %v2055_v31, %v1793_v47  ;;  %v2085_v47 = vpop.permute.xlu0 %2084 }
 0x221   : > { %v2530_v56 = vpop.f32.mrf.mxu1  ;;  %v2642_v36 = vpop.f32.mrf.mxu0 }
 0x222   : > { %v1796_v14 = vadd.f32 %v2641_v17, %v2529_v27  ;;  %v2243_v40 = vadd.f32 %v3671_v51, %v2204_v16 }
 0x223   : > { %v2531_v13 = vpop.f32.mrf.mxu1  ;;  %v2643_v7 = vpop.f32.mrf.mxu0 }
 0x224   : > { %v2532_v49 = vadd.f32 %v2531_v13, %v2530_v56  ;;  %v2644_v18 = vadd.f32 %v2643_v7, %v2642_v36  ;;  %2275 = vst [vmem:[%s3678_s27 + $0x10] sm:$0xff] %v2243_v40  ;;  %v2205_v23 = vmul.f32 %v2060_v20, %v1796_v14  ;;  %v2090_v14 = vpop.permute.xlu1 %2089 }
 0x225   : > { %v2533_v53 = vpop.f32.mrf.mxu1  ;;  %v2645_v24 = vpop.f32.mrf.mxu0 }
 0x226   : > { %v1801_v42 = vadd.f32 %v2644_v18, %v2532_v49  ;;  %v2244_v45 = vadd.f32 %v3671_v51, %v2205_v23 }
 0x227   : > { %v2534_v41 = vpop.f32.mrf.mxu1  ;;  %v2646_v44 = vpop.f32.mrf.mxu0 }
 0x228   : > { %v2535_v50 = vadd.f32 %v2534_v41, %v2533_v53  ;;  %v2647_v54 = vadd.f32 %v2646_v44, %v2645_v24  ;;  %2276 = vst [vmem:[%s3678_s27 + $0x18] sm:$0xff] %v2244_v45  ;;  %v2206_v62 = vmul.f32 %v2065_v46, %v1801_v42  ;;  %v2095_v42 = vpop.permute.xlu0 %2094 }
 0x229   : > { %v2536_v34 = vpop.f32.mrf.mxu1  ;;  %v2648_v58 = vpop.f32.mrf.mxu0 }
 0x22a   : > { %v1804_v57 = vadd.f32 %v2647_v54, %v2535_v50  ;;  %v2245_v9 = vadd.f32 %v3671_v51, %v2206_v62 }
 0x22b   : > { %v2537_v61 = vpop.f32.mrf.mxu1  ;;  %v2649_v1 = vpop.f32.mrf.mxu0 }
 0x22c   : > { %v2538_v38 = vadd.f32 %v2537_v61, %v2536_v34  ;;  %v2650_v48 = vadd.f32 %v2649_v1, %v2648_v58  ;;  %2277 = vst [vmem:[%s3678_s27 + $0x20] sm:$0xff] %v2245_v9  ;;  %v2207_v6 = vmul.f32 %v2070_v5, %v1804_v57  ;;  %v2100_v57 = vpop.permute.xlu1 %2099 }
 0x22d   : > { %v2539_v28 = vpop.f32.mrf.mxu1  ;;  %v2651_v2 = vpop.f32.mrf.mxu0 }
 0x22e   : > { %v1809_v10 = vadd.f32 %v2650_v48, %v2538_v38  ;;  %v2246_v29 = vadd.f32 %v3671_v51, %v2207_v6 }
 0x22f   : > { %v2540_v8 = vpop.f32.mrf.mxu1  ;;  %v2652_v21 = vpop.f32.mrf.mxu0 }
 0x230   : > { %v2541_v22 = vadd.f32 %v2540_v8, %v2539_v28  ;;  %v2653_v39 = vadd.f32 %v2652_v21, %v2651_v2  ;;  %2278 = vst [vmem:[%s3678_s27 + $0x28] sm:$0xff] %v2246_v29  ;;  %v2208_v26 = vmul.f32 %v2075_v25, %v1809_v10  ;;  %v2105_v10 = vpop.permute.xlu0 %2104 }
 0x231   : > { %v2542_v0 = vpop.f32.mrf.mxu1  ;;  %v2654_v63 = vpop.f32.mrf.mxu0 }
 0x232   : > { %v1812_v30 = vadd.f32 %v2653_v39, %v2541_v22  ;;  %v2247_v3 = vadd.f32 %v3671_v51, %v2208_v26 }
 0x233   : > { %v2543_v32 = vpop.f32.mrf.mxu1  ;;  %v2655_v59 = vpop.f32.mrf.mxu0 }
 0x234   : > { %v2544_v52 = vadd.f32 %v2543_v32, %v2542_v0  ;;  %v2656_v33 = vadd.f32 %v2655_v59, %v2654_v63  ;;  %2279 = vst [vmem:[%s3678_s27 + $0x30] sm:$0xff] %v2247_v3  ;;  %v2209_v60 = vmul.f32 %v2080_v12, %v1812_v30  ;;  %v2110_v30 = vpop.permute.xlu1 %2109 }
 0x235   : > { %v2545_v37 = vpop.f32.mrf.mxu1  ;;  %v2657_v4 = vpop.f32.mrf.mxu0 }
 0x236   : > { %v1817_v43 = vadd.f32 %v2656_v33, %v2544_v52  ;;  %v2248_v11 = vadd.f32 %v3671_v51, %v2209_v60 }
 0x237   : > { %v2546_v19 = vpop.f32.mrf.mxu1  ;;  %v2658_v55 = vpop.f32.mrf.mxu0 }
 0x238   : > { %v2547_v15 = vadd.f32 %v2546_v19, %v2545_v37  ;;  %v2659_v31 = vadd.f32 %v2658_v55, %v2657_v4  ;;  %2280 = vst [vmem:[%s3678_s27 + $0x38] sm:$0xff] %v2248_v11  ;;  %v2210_v17 = vmul.f32 %v2085_v47, %v1817_v43  ;;  %v2115_v43 = vpop.permute.xlu0 %2114 }
 0x239   : > { %v2548_v35 = vpop.f32.mrf.mxu1  ;;  %v2660_v27 = vpop.f32.mrf.mxu0 }
 0x23a   : > { %v1820_v56 = vadd.f32 %v2659_v31, %v2547_v15  ;;  %v2249_v13 = vadd.f32 %v3671_v51, %v2210_v17 }
 0x23b   : > { %v2549_v36 = vpop.f32.mrf.mxu1  ;;  %v2661_v16 = vpop.f32.mrf.mxu0 }
 0x23c   : > { %v2550_v7 = vadd.f32 %v2549_v36, %v2548_v35  ;;  %v2662_v20 = vadd.f32 %v2661_v16, %v2660_v27  ;;  %2281 = vst [vmem:[%s3678_s27 + $0x40] sm:$0xff] %v2249_v13  ;;  %v2211_v18 = vmul.f32 %v2090_v14, %v1820_v56  ;;  %v2120_v56 = vpop.permute.xlu1 %2119 }
 0x23d   : > { %v2551_v40 = vpop.f32.mrf.mxu1  ;;  %v2663_v49 = vpop.f32.mrf.mxu0 }
 0x23e   : > { %v1825_v53 = vadd.f32 %v2662_v20, %v2550_v7  ;;  %v2250_v41 = vadd.f32 %v3671_v51, %v2211_v18 }
 0x23f   : > { %v2552_v24 = vpop.f32.mrf.mxu1  ;;  %v2664_v23 = vpop.f32.mrf.mxu0 }
 0x240   : > { %v2553_v44 = vadd.f32 %v2552_v24, %v2551_v40  ;;  %v2665_v46 = vadd.f32 %v2664_v23, %v2663_v49  ;;  %2282 = vst [vmem:[%s3678_s27 + $0x48] sm:$0xff] %v2250_v41  ;;  %v2212_v54 = vmul.f32 %v2095_v42, %v1825_v53  ;;  %v2125_v53 = vpop.permute.xlu0 %2124 }
 0x241   : > { %v2554_v45 = vpop.f32.mrf.mxu1  ;;  %v2666_v50 = vpop.f32.mrf.mxu0 }
 0x242   : > { %v1828_v34 = vadd.f32 %v2665_v46, %v2553_v44  ;;  %v2251_v61 = vadd.f32 %v3671_v51, %v2212_v54 }
 0x243   : > { %v2555_v58 = vpop.f32.mrf.mxu1  ;;  %v2667_v62 = vpop.f32.mrf.mxu0 }
 0x244   : > { %v2556_v1 = vadd.f32 %v2555_v58, %v2554_v45  ;;  %v2668_v5 = vadd.f32 %v2667_v62, %v2666_v50  ;;  %2283 = vst [vmem:[%s3678_s27 + $0x50] sm:$0xff] %v2251_v61  ;;  %v2213_v48 = vmul.f32 %v2100_v57, %v1828_v34  ;;  %v2130_v34 = vpop.permute.xlu1 %2129 }
 0x245   : > { %v2557_v9 = vpop.f32.mrf.mxu1  ;;  %v2669_v38 = vpop.f32.mrf.mxu0 }
 0x246   : > { %v1833_v28 = vadd.f32 %v2668_v5, %v2556_v1  ;;  %v2252_v8 = vadd.f32 %v3671_v51, %v2213_v48 }
 0x247   : > { %v2558_v2 = vpop.f32.mrf.mxu1  ;;  %v2670_v6 = vpop.f32.mrf.mxu0 }
 0x248   : > { %v2559_v21 = vadd.f32 %v2558_v2, %v2557_v9  ;;  %v2671_v25 = vadd.f32 %v2670_v6, %v2669_v38  ;;  %2284 = vst [vmem:[%s3678_s27 + $0x58] sm:$0xff] %v2252_v8  ;;  %v2214_v39 = vmul.f32 %v2105_v10, %v1833_v28  ;;  %v2135_v28 = vpop.permute.xlu0 %2134 }
 0x249   : > { %v2560_v29 = vpop.f32.mrf.mxu1  ;;  %v2672_v22 = vpop.f32.mrf.mxu0 }
 0x24a   : > { %v1836_v0 = vadd.f32 %v2671_v25, %v2559_v21  ;;  %v2253_v32 = vadd.f32 %v3671_v51, %v2214_v39 }
 0x24b   : > { %v2561_v63 = vpop.f32.mrf.mxu1  ;;  %v2673_v26 = vpop.f32.mrf.mxu0 }
 0x24c   : > { %v2562_v59 = vadd.f32 %v2561_v63, %v2560_v29  ;;  %v2674_v12 = vadd.f32 %v2673_v26, %v2672_v22  ;;  %2285 = vst [vmem:[%s3678_s27 + $0x60] sm:$0xff] %v2253_v32  ;;  %v2215_v33 = vmul.f32 %v2110_v30, %v1836_v0  ;;  %v2140_v0 = vpop.permute.xlu1 %2139 }
 0x24d   : > { %v2563_v3 = vpop.f32.mrf.mxu1  ;;  %v2675_v52 = vpop.f32.mrf.mxu0 }
 0x24e   : > { %v1841_v37 = vadd.f32 %v2674_v12, %v2562_v59  ;;  %v2254_v19 = vadd.f32 %v3671_v51, %v2215_v33 }
 0x24f   : > { %v2564_v4 = vpop.f32.mrf.mxu1  ;;  %v2676_v60 = vpop.f32.mrf.mxu0 }
 0x250   : > { %v2565_v55 = vadd.f32 %v2564_v4, %v2563_v3  ;;  %v2677_v47 = vadd.f32 %v2676_v60, %v2675_v52  ;;  %2286 = vst [vmem:[%s3678_s27 + $0x68] sm:$0xff] %v2254_v19  ;;  %v2216_v31 = vmul.f32 %v2115_v43, %v1841_v37  ;;  %v2145_v37 = vpop.permute.xlu0 %2144 }
 0x251   : > { %v2566_v11 = vpop.f32.mrf.mxu1  ;;  %v2678_v15 = vpop.f32.mrf.mxu0 }
 0x252   : > { %v1844_v35 = vadd.f32 %v2677_v47, %v2565_v55  ;;  %v2255_v36 = vadd.f32 %v3671_v51, %v2216_v31 }
 0x253   : > { %v2567_v27 = vpop.f32.mrf.mxu1  ;;  %v2679_v17 = vpop.f32.mrf.mxu0 }
 0x254   : > { %v2568_v16 = vadd.f32 %v2567_v27, %v2566_v11  ;;  %v2680_v14 = vadd.f32 %v2679_v17, %v2678_v15  ;;  %2287 = vst [vmem:[%s3678_s27 + $0x70] sm:$0xff] %v2255_v36  ;;  %v2217_v20 = vmul.f32 %v2120_v56, %v1844_v35  ;;  %v2150_v35 = vpop.permute.xlu1 %2149 }
 0x255   : > { %v2569_v13 = vpop.f32.mrf.mxu1  ;;  %v2681_v7 = vpop.f32.mrf.mxu0 }
 0x256   : > { %v1849_v40 = vadd.f32 %v2680_v14, %v2568_v16  ;;  %v2256_v24 = vadd.f32 %v3671_v51, %v2217_v20 }
 0x257   : > { %v2570_v49 = vpop.f32.mrf.mxu1  ;;  %v2682_v18 = vpop.f32.mrf.mxu0 }
 0x258   : > { %v2571_v23 = vadd.f32 %v2570_v49, %v2569_v13  ;;  %v2683_v42 = vadd.f32 %v2682_v18, %v2681_v7  ;;  %2288 = vst [vmem:[%s3678_s27 + $0x78] sm:$0xff] %v2256_v24  ;;  %v2218_v46 = vmul.f32 %v2125_v53, %v1849_v40  ;;  %v2155_v40 = vpop.permute.xlu0 %2154 }
 0x259   : > { %v2572_v41 = vpop.f32.mrf.mxu1  ;;  %v2684_v44 = vpop.f32.mrf.mxu0 }
 0x25a   : > { %v1852_v45 = vadd.f32 %v2683_v42, %v2571_v23  ;;  %v2257_v58 = vadd.f32 %v3671_v51, %v2218_v46 }
 0x25b   : > { %v2573_v50 = vpop.f32.mrf.mxu1  ;;  %v2685_v54 = vpop.f32.mrf.mxu0 }
 0x25c   : > { %v2574_v62 = vadd.f32 %v2573_v50, %v2572_v41  ;;  %v2686_v57 = vadd.f32 %v2685_v54, %v2684_v44  ;;  %2289 = vst [vmem:[%s3678_s27 + $0x80] sm:$0xff] %v2257_v58  ;;  %v2219_v5 = vmul.f32 %v2130_v34, %v1852_v45  ;;  %v2160_v45 = vpop.permute.xlu1 %2159 }
 0x25d   : > { %v2575_v61 = vpop.f32.mrf.mxu1  ;;  %v2687_v1 = vpop.f32.mrf.mxu0 }
 0x25e   : > { %v1857_v9 = vadd.f32 %v2686_v57, %v2574_v62  ;;  %v2258_v2 = vadd.f32 %v3671_v51, %v2219_v5 }
 0x25f   : > { %v2576_v38 = vpop.f32.mrf.mxu1  ;;  %v2688_v48 = vpop.f32.mrf.mxu0 }
 0x260   : > { %v2577_v6 = vadd.f32 %v2576_v38, %v2575_v61  ;;  %v2689_v10 = vadd.f32 %v2688_v48, %v2687_v1  ;;  %2290 = vst [vmem:[%s3678_s27 + $0x88] sm:$0xff] %v2258_v2  ;;  %v2220_v25 = vmul.f32 %v2135_v28, %v1857_v9  ;;  %v2165_v9 = vpop.permute.xlu0 %2164 }
 0x261   : > { %v2578_v8 = vpop.f32.mrf.mxu1  ;;  %v2690_v21 = vpop.f32.mrf.mxu0 }
 0x262   : > { %v1860_v29 = vadd.f32 %v2689_v10, %v2577_v6  ;;  %v2259_v63 = vadd.f32 %v3671_v51, %v2220_v25 }
 0x263   : > { %v2579_v22 = vpop.f32.mrf.mxu1  ;;  %v2691_v39 = vpop.f32.mrf.mxu0 }
 0x264   : > { %v2580_v26 = vadd.f32 %v2579_v22, %v2578_v8  ;;  %v2692_v30 = vadd.f32 %v2691_v39, %v2690_v21  ;;  %2291 = vst [vmem:[%s3678_s27 + $0x90] sm:$0xff] %v2259_v63  ;;  %v2221_v12 = vmul.f32 %v2140_v0, %v1860_v29  ;;  %v2170_v29 = vpop.permute.xlu1 %2169 }
 0x265   : > { %v2581_v32 = vpop.f32.mrf.mxu1  ;;  %v2693_v59 = vpop.f32.mrf.mxu0 }
 0x266   : > { %v1865_v3 = vadd.f32 %v2692_v30, %v2580_v26  ;;  %v2260_v4 = vadd.f32 %v3671_v51, %v2221_v12 }
 0x267   : > { %v2582_v52 = vpop.f32.mrf.mxu1  ;;  %v2694_v33 = vpop.f32.mrf.mxu0 }
 0x268   : > { %v2583_v60 = vadd.f32 %v2582_v52, %v2581_v32  ;;  %v2695_v43 = vadd.f32 %v2694_v33, %v2693_v59  ;;  %2292 = vst [vmem:[%s3678_s27 + $0x98] sm:$0xff] %v2260_v4  ;;  %v2222_v47 = vmul.f32 %v2145_v37, %v1865_v3  ;;  %v2175_v3 = vpop.permute.xlu0 %2174 }
 0x269   : > { %v2584_v19 = vpop.f32.mrf.mxu1  ;;  %v2696_v55 = vpop.f32.mrf.mxu0 }
 0x26a   : > { %v1868_v11 = vadd.f32 %v2695_v43, %v2583_v60  ;;  %v2261_v27 = vadd.f32 %v3671_v51, %v2222_v47 }
 0x26b   : > { %v2585_v15 = vpop.f32.mrf.mxu1  ;;  %v2697_v31 = vpop.f32.mrf.mxu0 }
 0x26c   : > { %v2586_v17 = vadd.f32 %v2585_v15, %v2584_v19  ;;  %v2698_v56 = vadd.f32 %v2697_v31, %v2696_v55  ;;  %2293 = vst [vmem:[%s3678_s27 + $0xa0] sm:$0xff] %v2261_v27  ;;  %v2223_v14 = vmul.f32 %v2150_v35, %v1868_v11  ;;  %v2180_v11 = vpop.permute.xlu1 %2179 }
 0x26d   : > { %v2587_v36 = vpop.f32.mrf.mxu1  ;;  %v2699_v16 = vpop.f32.mrf.mxu0 }
 0x26e   : > { %v1873_v13 = vadd.f32 %v2698_v56, %v2586_v17  ;;  %v2262_v49 = vadd.f32 %v3671_v51, %v2223_v14 }
 0x26f   : > { %v2588_v7 = vpop.f32.mrf.mxu1  ;;  %v2700_v20 = vpop.f32.mrf.mxu0 }
 0x270   : > { %v2589_v18 = vadd.f32 %v2588_v7, %v2587_v36  ;;  %v2701_v53 = vadd.f32 %v2700_v20, %v2699_v16  ;;  %2294 = vst [vmem:[%s3678_s27 + $0xa8] sm:$0xff] %v2262_v49  ;;  %v2224_v42 = vmul.f32 %v2155_v40, %v1873_v13  ;;  %v2185_v13 = vpop.permute.xlu0 %2184 }
 0x271   : > { %v2590_v24 = vpop.f32.mrf.mxu1  ;;  %v2702_v23 = vpop.f32.mrf.mxu0 }
 0x272   : > { %v1876_v41 = vadd.f32 %v2701_v53, %v2589_v18  ;;  %v2263_v50 = vadd.f32 %v3671_v51, %v2224_v42 }
 0x273   : > { %v2591_v44 = vpop.f32.mrf.mxu1  ;;  %v2703_v46 = vpop.f32.mrf.mxu0 }
 0x274   : > { %v2592_v54 = vadd.f32 %v2591_v44, %v2590_v24  ;;  %v2704_v34 = vadd.f32 %v2703_v46, %v2702_v23  ;;  %2295 = vst [vmem:[%s3678_s27 + $0xb0] sm:$0xff] %v2263_v50  ;;  %v2225_v57 = vmul.f32 %v2160_v45, %v1876_v41  ;;  %v2190_v41 = vpop.permute.xlu1 %2189 }
 0x275   : > { %v2593_v58 = vpop.f32.mrf.mxu1  ;;  %v2705_v62 = vpop.f32.mrf.mxu0 }
 0x276   : > { %v1881_v61 = vadd.f32 %v2704_v34, %v2592_v54  ;;  %v2264_v38 = vadd.f32 %v3671_v51, %v2225_v57 }
 0x277   : > { %v2594_v1 = vpop.f32.mrf.mxu1  ;;  %v2706_v5 = vpop.f32.mrf.mxu0 }
 0x278   : > { %v2595_v48 = vadd.f32 %v2594_v1, %v2593_v58  ;;  %v2707_v28 = vadd.f32 %v2706_v5, %v2705_v62  ;;  %2296 = vst [vmem:[%s3678_s27 + $0xb8] sm:$0xff] %v2264_v38  ;;  %v2226_v10 = vmul.f32 %v2165_v9, %v1881_v61  ;;  %v2195_v9 = vpop.permute.xlu0 %2194 }
 0x279   : > { %v2596_v2 = vpop.f32.mrf.mxu1  ;;  %v2708_v6 = vpop.f32.mrf.mxu0 }
 0x27a   : > { %v1884_v8 = vadd.f32 %v2707_v28, %v2595_v48  ;;  %v2265_v22 = vadd.f32 %v3671_v51, %v2226_v10 }
 0x27b   : > { %v2597_v21 = vpop.f32.mrf.mxu1  ;;  %v2709_v25 = vpop.f32.mrf.mxu0 }
 0x27c   : > { %v2598_v39 = vadd.f32 %v2597_v21, %v2596_v2  ;;  %v2710_v0 = vadd.f32 %v2709_v25, %v2708_v6  ;;  %2297 = vst [vmem:[%s3678_s27 + $0xc0] sm:$0xff] %v2265_v22  ;;  %v2227_v30 = vmul.f32 %v2170_v29, %v1884_v8  ;;  %v2200_v2 = vpop.permute.xlu1 %2199 }
 0x27d   : > { %v2599_v63 = vpop.f32.mrf.mxu1  ;;  %v2711_v26 = vpop.f32.mrf.mxu0 }
 0x27e   : > { %v1889_v32 = vadd.f32 %v2710_v0, %v2598_v39  ;;  %v2266_v52 = vadd.f32 %v3671_v51, %v2227_v30 }
 0x27f   : > { %v2600_v59 = vpop.f32.mrf.mxu1  ;;  %v2712_v12 = vpop.f32.mrf.mxu0 }
 0x280   : > { %v2601_v33 = vadd.f32 %v2600_v59, %v2599_v63  ;;  %v2713_v37 = vadd.f32 %v2712_v12, %v2711_v26  ;;  %2298 = vst [vmem:[%s3678_s27 + $0xc8] sm:$0xff] %v2266_v52  ;;  %v2228_v43 = vmul.f32 %v2175_v3, %v1889_v32 }
 0x281   : > { %v2602_v4 = vpop.f32.mrf.mxu1  ;;  %v2714_v60 = vpop.f32.mrf.mxu0 }
 0x282   : > { %v1892_v19 = vadd.f32 %v2713_v37, %v2601_v33  ;;  %v2267_v15 = vadd.f32 %v3671_v51, %v2228_v43 }
 0x283   : > { %v2603_v55 = vpop.f32.mrf.mxu1  ;;  %v2715_v47 = vpop.f32.mrf.mxu0 }
 0x284   : > { %v2604_v31 = vadd.f32 %v2603_v55, %v2602_v4  ;;  %v2716_v35 = vadd.f32 %v2715_v47, %v2714_v60  ;;  %2299 = vst [vmem:[%s3678_s27 + $0xd0] sm:$0xff] %v2267_v15  ;;  %v2229_v56 = vmul.f32 %v2180_v11, %v1892_v19 }
 0x285   : > { %v2605_v27 = vpop.f32.mrf.mxu1  ;;  %v2717_v17 = vpop.f32.mrf.mxu0 }
 0x286   : > { %v1897_v36 = vadd.f32 %v2716_v35, %v2604_v31  ;;  %v2268_v7 = vadd.f32 %v3671_v51, %v2229_v56 }
 0x287   : > { %v2606_v16 = vpop.f32.mrf.mxu1  ;;  %v2718_v14 = vpop.f32.mrf.mxu0 }
 0x288   : > { %v2607_v20 = vadd.f32 %v2606_v16, %v2605_v27  ;;  %v2719_v40 = vadd.f32 %v2718_v14, %v2717_v17  ;;  %2300 = vst [vmem:[%s3678_s27 + $0xd8] sm:$0xff] %v2268_v7  ;;  %v2230_v53 = vmul.f32 %v2185_v13, %v1897_v36 }
 0x289   : > { %v2608_v49 = vpop.f32.mrf.mxu1  ;;  %v2720_v18 = vpop.f32.mrf.mxu0 }
 0x28a   : > { %v1900_v24 = vadd.f32 %v2719_v40, %v2607_v20  ;;  %v2269_v44 = vadd.f32 %v3671_v51, %v2230_v53 }
 0x28b   : > { %v2609_v23 = vpop.f32.mrf.mxu1  ;;  %v2721_v42 = vpop.f32.mrf.mxu0 }
 0x28c   : > { %v2610_v46 = vadd.f32 %v2609_v23, %v2608_v49  ;;  %v2722_v45 = vadd.f32 %v2721_v42, %v2720_v18  ;;  %2301 = vst [vmem:[%s3678_s27 + $0xe0] sm:$0xff] %v2269_v44  ;;  %v2231_v34 = vmul.f32 %v2190_v41, %v1900_v24 }
 0x28d   : > { %v2611_v50 = vpop.f32.mrf.mxu1  ;;  %v2723_v54 = vpop.f32.mrf.mxu0 }
 0x28e   : > { %v1905_v58 = vadd.f32 %v2722_v45, %v2610_v46  ;;  %v2270_v61 = vadd.f32 %v3671_v51, %v2231_v34 }
 0x28f   : > { %v2612_v62 = vpop.f32.mrf.mxu1  ;;  %v2724_v57 = vpop.f32.mrf.mxu0 }
 0x290   : > { %v2613_v1 = vadd.f32 %v2612_v62, %v2611_v50  ;;  %v2725_v5 = vadd.f32 %v2724_v57, %v2723_v54  ;;  %2302 = vst [vmem:[%s3678_s27 + $0xe8] sm:$0xff] %v2270_v61  ;;  %v2232_v38 = vmul.f32 %v2195_v9, %v1905_v58 }
 0x292   : > { %v1908_v48 = vadd.f32 %v2725_v5, %v2613_v1  ;;  %v2271_v28 = vadd.f32 %v3671_v51, %v2232_v38 }
 0x294   : > { %2303 = vst [vmem:[%s3678_s27 + $0xf0] sm:$0xff] %v2271_v28  ;;  %v2233_v6 = vmul.f32 %v2200_v2, %v1908_v48 }
 0x296   : > { %v2272_v10 = vadd.f32 %v3671_v51, %v2233_v6 }
 0x298   : > { %2304 = vst [vmem:[%s3678_s27 + $0xf8] sm:$0xff] %v2272_v10 }
 0x299 PF: > { %s16_s23 = sadd.s32 1, %s2912_s23   ;;  %s3895_s21 = smov %s2908_s22 }
 0x29a   : > { %p13_p6 = scmp.ge.s32.totalorder %s16_s23, 4   ;;  %s3896_s22 = smov %s3898_s24 }
 0x29c   :  { %15 = sbr.rel (!%p13_p6) target bundleno = 2 (0x2), region = 89 }

// kernel: gnn_model_forward.2
= control target key start
LH: loop header
LB: loop body
LE: loop exit
PB: predicated region body
PF: predicated region fallthrough
CT: control target
= control target key end

     0   :  { %s3268_s21 = smov 0   ;;  %s3270_s22 = smov 0   ;;  %s4052_s0 = inlined_call_operand.vmem [shape: s8[512,512], index: 0, kind: input, shape index: {}]   ;;  %s4053_s1 = inlined_call_operand.vmem [shape: bf16[512,128], index: 1, kind: input, shape index: {}]   ;;  %s4054_s2 = inlined_call_operand.vmem [shape: bf16[128,128], index: 2, kind: input, shape index: {}]   ;;  %s4055_s3 = inlined_call_operand.vmem [shape: f32[1,128], index: 3, kind: input, shape index: {}]   ;;  %s4056_s4 = inlined_call_operand.vmem [shape: f32[512,1], index: 4, kind: input, shape index: {}, may-alias: {4,5}]   ;;  %s4057_s5 = inlined_call_operand.vmem [shape: f32[512,1], index: 5, kind: input, shape index: {}, may-alias: {4,5}]   ;;  %s4058_s6 = inlined_call_operand.vmem [shape: bf16[512,128], index: 6, kind: output, shape index: {}]  }
   0x1   :  { %s3272_s23 = smov 0  }
   0x2 LB: > { %s28_s24 = sadd.s32 1, %s3226_s22  ;;  %p2570_p0 = scmp.ge.s32.totalorder %s3230_s23, 1  ;;  %s3230_s23 = sphi %s3272_s23, %s16_s23   ;;  %s3226_s22 = sphi %s3270_s22, %s4195_s22   ;;  %s3222_s21 = sphi %s3268_s21, %s4194_s21  }
   0x3   : > { %p30_p1 = scmp.ge.s32.totalorder %s28_s24, 2  ;;  %p255_p2 = scmp.lt.s32.totalorder %s3230_s23, 3 }
   0x5   : > { %s4197_s24 = smov (%p30_p1, %s28_s24), 0  ;;  %p256_p3 = pnand %p2570_p0, %p255_p2 }
   0x7   : > { %259 = sbr.rel (%p256_p3) target bundleno = 669 (0x29d), region = 44 }
   0xc   : > { %v1043_v0 = vld [vmem:[%s4057_s5 + $0x1f0] sm:$0xff]  ;;  %v3232_v2 = vmov 0   ;;  %v3168_v3 = vld [vmem:[%s4054_s2 + $0x38] sm:$0xff]   ;;  %v3170_v7 = vld [vmem:[%s4054_s2 + $0x28] sm:$0xff]   ;;  %s2574_s13 = sshll.u32 %s3222_s21, 5  ;;  %s2571_s15 = sshll.u32 %s3222_s21, 3 }
   0xd   : > { %v1011_v1 = vld [vmem:[%s4057_s5 + $0xf0] sm:$0xff]  ;;  %3167 = vset.pattern.permute.xlu1 %v3232_v2  ;;  %3166 = vset.pattern.permute.xlu0 %v3232_v2  ;;  %v1044_v4 = vld [vmem:[%s4057_s5 + $0x1f8] sm:$0xff]  ;;  %v3171_v10 = vld [vmem:[%s4054_s2 + $0x20] sm:$0xff]   ;;  %p313_p4 = scmp.lt.s32.totalorder %s2574_s13, 63  ;;  %p302_p5 = scmp.lt.s32.totalorder %s2571_s15, 15 }
   0xe   : > { %1357 = vperm.xlu1 %3167, %v1043_v0   ;;  %1197 = vperm.xlu0 %3166, %v1011_v1   ;;  %v1012_v5 = vld [vmem:[%s4057_s5 + $0xf8] sm:$0xff]  ;;  %v3169_v6 = vld [vmem:[%s4054_s2 + $0x30] sm:$0xff]   ;;  %v1010_v13 = vld [vmem:[%s4057_s5 + $0xe8] sm:$0xff] }
   0xf   : > { %3045 = vmatprep.subr.bf16.mxu0 %v3168_v3  ;;  %3125 = vmatprep.subr.bf16.mxu1 %v3168_v3  ;;  %v996_v8 = vld [vmem:[%s4057_s5 + $0x78] sm:$0xff]  ;;  %v995_v9 = vld [vmem:[%s4057_s5 + $0x70] sm:$0xff]  ;;  %v1009_v14 = vld [vmem:[%s4057_s5 + $0xe0] sm:$0xff]  ;;  %s4199_s13 = smov (!%p313_p4, %s2574_s13), 63  ;;  %s4201_s15 = smov (!%p302_p5, %s2571_s15), 15 }
  0x10   : > { %3046 = vmatpush3.bf16.msra.mxu0 %v3168_v3  ;;  %3133 = vmatpush3.bf16.msra.mxu1 %v3168_v3  ;;  %v1028_v11 = vld [vmem:[%s4057_s5 + $0x178] sm:$0xff]  ;;  %v1027_v12 = vld [vmem:[%s4057_s5 + $0x170] sm:$0xff]  ;;  %v3176_v16 = vld [vmem:[%s4053_s1] sm:$0xff]   ;;  %s2575_s30 = sshll.u32 %s4199_s13, 3  ;;  %s2653_s16 = sshll.u32 %s4201_s15, 5 }
  0x11   : > { %3047 = vmatprep.subr.bf16.mxu0 %v3169_v6  ;;  %3126 = vmatprep.subr.bf16.mxu1 %v3169_v6  ;;  %v3172_v15 = vld [vmem:[%s4054_s2 + $0x18] sm:$0xff]   ;;  %v3177_v17 = vld [vmem:[%s4053_s1 + $0x80] sm:$0xff]   ;;  %v3173_v18 = vld [vmem:[%s4054_s2 + $0x10] sm:$0xff]   ;;  %s3607_s14 = scalar_lea.vmem %s4056_s4, %s2575_s30  ;;  %s3713_s19 = scalar_lea.vmem %s4052_s0, %s2653_s16 }
  0x12   : > { %1362 = vperm.xlu1 %3167, %v1044_v4   ;;  %1202 = vperm.xlu0 %3166, %v1012_v5   ;;  %v1042_v19 = vld [vmem:[%s4057_s5 + $0x1e8] sm:$0xff]  ;;  %v1041_v20 = vld [vmem:[%s4057_s5 + $0x1e0] sm:$0xff]  ;;  %v1008_v27 = vld [vmem:[%s4057_s5 + $0xd8] sm:$0xff]  ;;  %s2577_s25 = sshll.u32 %s4199_s13, 2 }
  0x13   : > { %3061 = vmatprep.mubr.bf16.mxu0 %v3176_v16  ;;  %3093 = vmatprep.mubr.bf16.mxu1 %v3177_v17  ;;  %v3174_v21 = vld [vmem:[%s4054_s2 + $0x8] sm:$0xff]   ;;  %v993_v23 = vld [vmem:[%s4057_s5 + $0x60] sm:$0xff]  ;;  %v1007_v28 = vld [vmem:[%s4057_s5 + $0xd0] sm:$0xff]  ;;  %s3995_s28 = scalar_lea.vmem %s4058_s6, %s2577_s25 }
  0x14   : > { %3048 = vmatpush3.bf16.msra.mxu0 %v3169_v6  ;;  %3134 = vmatpush3.bf16.msra.mxu1 %v3169_v6  ;;  %v994_v22 = vld [vmem:[%s4057_s5 + $0x68] sm:$0xff]  ;;  %v3175_v24 = vld [vmem:[%s4054_s2] sm:$0xff]   ;;  %v3180_v31 = vld [vmem:[%s4053_s1 + $0x10] sm:$0xff]  }
  0x15   : > { %3049 = vmatprep.subr.bf16.mxu0 %v3170_v7  ;;  %3127 = vmatprep.subr.bf16.mxu1 %v3170_v7  ;;  %v1026_v25 = vld [vmem:[%s4057_s5 + $0x168] sm:$0xff]  ;;  %v1025_v26 = vld [vmem:[%s4057_s5 + $0x160] sm:$0xff]  ;;  %v3181_v32 = vld [vmem:[%s4053_s1 + $0x90] sm:$0xff]  }
  0x16   : > { %1122 = vperm.xlu1 %3167, %v996_v8   ;;  %1117 = vperm.xlu0 %3166, %v995_v9   ;;  %v3178_v29 = vld [vmem:[%s4053_s1 + $0x8] sm:$0xff]   ;;  %v1040_v33 = vld [vmem:[%s4057_s5 + $0x1d8] sm:$0xff]  ;;  %v1039_v34 = vld [vmem:[%s4057_s5 + $0x1d0] sm:$0xff] }
  0x17   : > { %v3179_v30 = vld [vmem:[%s4053_s1 + $0x88] sm:$0xff]   ;;  %v992_v35 = vld [vmem:[%s4057_s5 + $0x58] sm:$0xff]  ;;  %v991_v36 = vld [vmem:[%s4057_s5 + $0x50] sm:$0xff] }
  0x18   : > { %3050 = vmatpush3.bf16.msra.mxu0 %v3170_v7  ;;  %3135 = vmatpush3.bf16.msra.mxu1 %v3170_v7  ;;  %v3182_v37 = vld [vmem:[%s4053_s1 + $0x18] sm:$0xff]   ;;  %v3184_v39 = vld [vmem:[%s4053_s1 + $0x20] sm:$0xff]   ;;  %v1023_v42 = vld [vmem:[%s4057_s5 + $0x150] sm:$0xff] }
  0x19   : > { %3051 = vmatprep.subr.bf16.mxu0 %v3171_v10  ;;  %3128 = vmatprep.subr.bf16.mxu1 %v3171_v10  ;;  %v3183_v38 = vld [vmem:[%s4053_s1 + $0x98] sm:$0xff]   ;;  %v3185_v40 = vld [vmem:[%s4053_s1 + $0xa0] sm:$0xff]   ;;  %v1006_v43 = vld [vmem:[%s4057_s5 + $0xc8] sm:$0xff] }
  0x1a   : > { %1282 = vperm.xlu1 %3167, %v1028_v11   ;;  %1277 = vperm.xlu0 %3166, %v1027_v12   ;;  %v1024_v41 = vld [vmem:[%s4057_s5 + $0x158] sm:$0xff]  ;;  %v1005_v44 = vld [vmem:[%s4057_s5 + $0xc0] sm:$0xff]  ;;  %v3186_v45 = vld [vmem:[%s4053_s1 + $0x28] sm:$0xff]  }
  0x1b   : > { %v3187_v46 = vld [vmem:[%s4053_s1 + $0xa8] sm:$0xff]   ;;  %v3188_v47 = vld [vmem:[%s4053_s1 + $0x30] sm:$0xff]   ;;  %v1037_v50 = vld [vmem:[%s4057_s5 + $0x1c0] sm:$0xff] }
  0x1c   : > { %3052 = vmatpush3.bf16.msra.mxu0 %v3171_v10  ;;  %3136 = vmatpush3.bf16.msra.mxu1 %v3171_v10  ;;  %v3189_v48 = vld [vmem:[%s4053_s1 + $0xb0] sm:$0xff]   ;;  %v1038_v49 = vld [vmem:[%s4057_s5 + $0x1c8] sm:$0xff]  ;;  %v989_v52 = vld [vmem:[%s4057_s5 + $0x40] sm:$0xff] }
  0x1d   : > { %3053 = vmatprep.subr.bf16.mxu0 %v3172_v15  ;;  %3129 = vmatprep.subr.bf16.mxu1 %v3172_v15  ;;  %v990_v51 = vld [vmem:[%s4057_s5 + $0x48] sm:$0xff]  ;;  %v3190_v53 = vld [vmem:[%s4053_s1 + $0x38] sm:$0xff]   ;;  %v3192_v55 = vld [vmem:[%s4053_s1 + $0x40] sm:$0xff]  }
  0x1e   : > { %1192 = vperm.xlu1 %3167, %v1010_v13   ;;  %1187 = vperm.xlu0 %3166, %v1009_v14   ;;  %v3191_v54 = vld [vmem:[%s4053_s1 + $0xb8] sm:$0xff]   ;;  %v3193_v56 = vld [vmem:[%s4053_s1 + $0xc0] sm:$0xff]   ;;  %v1022_v57 = vld [vmem:[%s4057_s5 + $0x148] sm:$0xff] }
  0x1f   : > { %v1021_v58 = vld [vmem:[%s4057_s5 + $0x140] sm:$0xff]  ;;  %v1004_v59 = vld [vmem:[%s4057_s5 + $0xb8] sm:$0xff]  ;;  %v1003_v60 = vld [vmem:[%s4057_s5 + $0xb0] sm:$0xff] }
  0x20   : > { %3054 = vmatpush3.bf16.msra.mxu0 %v3172_v15  ;;  %3137 = vmatpush3.bf16.msra.mxu1 %v3172_v15  ;;  %v3194_v61 = vld [vmem:[%s4053_s1 + $0x48] sm:$0xff]   ;;  %v3196_v63 = vld [vmem:[%s4053_s1 + $0x50] sm:$0xff]   ;;  %v1036_v1 = vld [vmem:[%s4057_s5 + $0x1b8] sm:$0xff] }
  0x21   : > { %3055 = vmatprep.subr.bf16.mxu0 %v3173_v18  ;;  %3130 = vmatprep.subr.bf16.mxu1 %v3173_v18  ;;  %v3195_v62 = vld [vmem:[%s4053_s1 + $0xc8] sm:$0xff]   ;;  %v3197_v0 = vld [vmem:[%s4053_s1 + $0xd0] sm:$0xff]   ;;  %v988_v3 = vld [vmem:[%s4057_s5 + $0x38] sm:$0xff] }
  0x22   : > { %1352 = vperm.xlu1 %3167, %v1042_v19   ;;  %1347 = vperm.xlu0 %3166, %v1041_v20   ;;  %v1035_v2 = vld [vmem:[%s4057_s5 + $0x1b0] sm:$0xff]  ;;  %v3198_v5 = vld [vmem:[%s4053_s1 + $0x58] sm:$0xff]   ;;  %v3200_v7 = vld [vmem:[%s4053_s1 + $0x60] sm:$0xff]  }
  0x23   : > { %v987_v4 = vld [vmem:[%s4057_s5 + $0x30] sm:$0xff]  ;;  %v3199_v6 = vld [vmem:[%s4053_s1 + $0xd8] sm:$0xff]   ;;  %v3201_v8 = vld [vmem:[%s4053_s1 + $0xe0] sm:$0xff]  }
  0x24   : > { %3056 = vmatpush3.bf16.msra.mxu0 %v3173_v18  ;;  %3138 = vmatpush3.bf16.msra.mxu1 %v3173_v18  ;;  %v1020_v9 = vld [vmem:[%s4057_s5 + $0x138] sm:$0xff]  ;;  %v1019_v10 = vld [vmem:[%s4057_s5 + $0x130] sm:$0xff]  ;;  %v1002_v11 = vld [vmem:[%s4057_s5 + $0xa8] sm:$0xff] }
  0x25   : > { %3057 = vmatprep.subr.bf16.mxu0 %v3174_v21  ;;  %3131 = vmatprep.subr.bf16.mxu1 %v3174_v21  ;;  %v1001_v12 = vld [vmem:[%s4057_s5 + $0xa0] sm:$0xff]  ;;  %v3202_v13 = vld [vmem:[%s4053_s1 + $0x68] sm:$0xff]   ;;  %v3204_v15 = vld [vmem:[%s4053_s1 + $0x70] sm:$0xff]  }
  0x26   : > { %1112 = vperm.xlu1 %3167, %v994_v22   ;;  %1107 = vperm.xlu0 %3166, %v993_v23   ;;  %v3203_v14 = vld [vmem:[%s4053_s1 + $0xe8] sm:$0xff]   ;;  %v3205_v16 = vld [vmem:[%s4053_s1 + $0xf0] sm:$0xff]   ;;  %v1033_v18 = vld [vmem:[%s4057_s5 + $0x1a0] sm:$0xff] }
  0x27   : > { %v1034_v17 = vld [vmem:[%s4057_s5 + $0x1a8] sm:$0xff]  ;;  %v985_v20 = vld [vmem:[%s4057_s5 + $0x20] sm:$0xff]  ;;  %v3207_v22 = vld [vmem:[%s4053_s1 + $0xf8] sm:$0xff]  }
  0x28   : > { %3058 = vmatpush3.bf16.msra.mxu0 %v3174_v21  ;;  %3139 = vmatpush3.bf16.msra.mxu1 %v3174_v21  ;;  %v986_v19 = vld [vmem:[%s4057_s5 + $0x28] sm:$0xff]  ;;  %v3206_v21 = vld [vmem:[%s4053_s1 + $0x78] sm:$0xff]  }
  0x29   : > { %3059 = vmatprep.subr.bf16.mxu0 %v3175_v24  ;;  %3132 = vmatprep.subr.bf16.mxu1 %v3175_v24  ;;  %v1018_v23 = vld [vmem:[%s4057_s5 + $0x128] sm:$0xff] }
  0x2a   : > { %1272 = vperm.xlu1 %3167, %v1026_v25   ;;  %1267 = vperm.xlu0 %3166, %v1025_v26   ;;  %v1000_v25 = vld [vmem:[%s4057_s5 + $0x98] sm:$0xff]  ;;  %v999_v26 = vld [vmem:[%s4057_s5 + $0x90] sm:$0xff] }
  0x2c   : > { %3060 = vmatpush3.bf16.msra.mxu0 %v3175_v24  ;;  %3140 = vmatpush3.bf16.msra.mxu1 %v3175_v24  ;;  %v1017_v24 = vld [vmem:[%s4057_s5 + $0x120] sm:$0xff] }
  0x2e   : > { %1182 = vperm.xlu1 %3167, %v1008_v27   ;;  %1177 = vperm.xlu0 %3166, %v1007_v28   ;;  %v1032_v27 = vld [vmem:[%s4057_s5 + $0x198] sm:$0xff]  ;;  %v1031_v28 = vld [vmem:[%s4057_s5 + $0x190] sm:$0xff] }
  0x2f   : > { %3062 = vmatmul.mubr.bf16.vlgmr.msra.gmra.mxu0 %v3178_v29  ;;  %3094 = vmatmul.mubr.bf16.vlgmr.msra.gmra.mxu1 %v3179_v30  ;;  %v984_v29 = vld [vmem:[%s4057_s5 + $0x18] sm:$0xff]  ;;  %v983_v30 = vld [vmem:[%s4057_s5 + $0x10] sm:$0xff] }
  0x30   : > { %3065 = vmatprep.mubr.bf16.mxu0 %v3180_v31  ;;  %3097 = vmatprep.mubr.bf16.mxu1 %v3181_v32  ;;  %v1016_v31 = vld [vmem:[%s4057_s5 + $0x118] sm:$0xff]  ;;  %v1015_v32 = vld [vmem:[%s4057_s5 + $0x110] sm:$0xff] }
  0x32   : > { %1342 = vperm.xlu1 %3167, %v1040_v33   ;;  %1337 = vperm.xlu0 %3166, %v1039_v34   ;;  %v998_v33 = vld [vmem:[%s4057_s5 + $0x88] sm:$0xff]  ;;  %v997_v34 = vld [vmem:[%s4057_s5 + $0x80] sm:$0xff] }
  0x36   : > { %1102 = vperm.xlu1 %3167, %v992_v35   ;;  %1097 = vperm.xlu0 %3166, %v991_v36   ;;  %v1030_v35 = vld [vmem:[%s4057_s5 + $0x188] sm:$0xff]  ;;  %v1029_v36 = vld [vmem:[%s4057_s5 + $0x180] sm:$0xff] }
  0x37   : > { %3066 = vmatmul.mubr.bf16.gmra.mxu0 %v3182_v37  ;;  %3098 = vmatmul.mubr.bf16.gmra.mxu1 %v3183_v38  ;;  %v982_v37 = vld [vmem:[%s4057_s5 + $0x8] sm:$0xff]  ;;  %v981_v38 = vld [vmem:[%s4057_s5] sm:$0xff] }
  0x38   : > { %3069 = vmatprep.mubr.bf16.mxu0 %v3184_v39  ;;  %3101 = vmatprep.mubr.bf16.mxu1 %v3185_v40  ;;  %v1014_v39 = vld [vmem:[%s4057_s5 + $0x108] sm:$0xff]  ;;  %v1013_v40 = vld [vmem:[%s4057_s5 + $0x100] sm:$0xff] }
  0x3a   : > { %1262 = vperm.xlu1 %3167, %v1024_v41   ;;  %1257 = vperm.xlu0 %3166, %v1023_v42  }
  0x3e   : > { %1172 = vperm.xlu1 %3167, %v1006_v43   ;;  %1167 = vperm.xlu0 %3166, %v1005_v44   ;;  %v2011_v43 = vld [vmem:[%s3607_s14 + $0x8] sm:$0xff]  ;;  %v2010_v44 = vld [vmem:[%s3607_s14] sm:$0xff] }
  0x3f   : > { %3070 = vmatmul.mubr.bf16.gmra.mxu0 %v3186_v45  ;;  %3102 = vmatmul.mubr.bf16.gmra.mxu1 %v3187_v46 }
  0x40   : > { %3073 = vmatprep.mubr.bf16.mxu0 %v3188_v47  ;;  %3105 = vmatprep.mubr.bf16.mxu1 %v3189_v48  ;;  %v2013_v47 = vld [vmem:[%s3607_s14 + $0x18] sm:$0xff]  ;;  %v2012_v48 = vld [vmem:[%s3607_s14 + $0x10] sm:$0xff] }
  0x42   : > { %1332 = vperm.xlu1 %3167, %v1038_v49   ;;  %1327 = vperm.xlu0 %3166, %v1037_v50  }
  0x46   : > { %1092 = vperm.xlu1 %3167, %v990_v51   ;;  %1087 = vperm.xlu0 %3166, %v989_v52   ;;  %v2015_v51 = vld [vmem:[%s3607_s14 + $0x28] sm:$0xff]  ;;  %v2014_v52 = vld [vmem:[%s3607_s14 + $0x20] sm:$0xff] }
  0x47   : > { %3074 = vmatmul.mubr.bf16.gmra.mxu0 %v3190_v53  ;;  %3106 = vmatmul.mubr.bf16.gmra.mxu1 %v3191_v54 }
  0x48   : > { %3077 = vmatprep.mubr.bf16.mxu0 %v3192_v55  ;;  %3109 = vmatprep.mubr.bf16.mxu1 %v3193_v56  ;;  %v2017_v55 = vld [vmem:[%s3607_s14 + $0x38] sm:$0xff]  ;;  %v2016_v56 = vld [vmem:[%s3607_s14 + $0x30] sm:$0xff] }
  0x4a   : > { %1252 = vperm.xlu1 %3167, %v1022_v57   ;;  %1247 = vperm.xlu0 %3166, %v1021_v58  }
  0x4e   : > { %1162 = vperm.xlu1 %3167, %v1004_v59   ;;  %1157 = vperm.xlu0 %3166, %v1003_v60   ;;  %v2019_v59 = vld [vmem:[%s3607_s14 + $0x48] sm:$0xff]  ;;  %v2018_v60 = vld [vmem:[%s3607_s14 + $0x40] sm:$0xff] }
  0x4f   : > { %3078 = vmatmul.mubr.bf16.gmra.mxu0 %v3194_v61  ;;  %3110 = vmatmul.mubr.bf16.gmra.mxu1 %v3195_v62 }
  0x50   : > { %3081 = vmatprep.mubr.bf16.mxu0 %v3196_v63  ;;  %3113 = vmatprep.mubr.bf16.mxu1 %v3197_v0  ;;  %v2021_v63 = vld [vmem:[%s3607_s14 + $0x58] sm:$0xff]  ;;  %v2020_v0 = vld [vmem:[%s3607_s14 + $0x50] sm:$0xff] }
  0x52   : > { %1322 = vperm.xlu1 %3167, %v1036_v1   ;;  %1317 = vperm.xlu0 %3166, %v1035_v2  }
  0x56   : > { %1082 = vperm.xlu1 %3167, %v988_v3   ;;  %1077 = vperm.xlu0 %3166, %v987_v4   ;;  %v2023_v3 = vld [vmem:[%s3607_s14 + $0x68] sm:$0xff]  ;;  %v2022_v4 = vld [vmem:[%s3607_s14 + $0x60] sm:$0xff] }
  0x57   : > { %3082 = vmatmul.mubr.bf16.gmra.mxu0 %v3198_v5  ;;  %3114 = vmatmul.mubr.bf16.gmra.mxu1 %v3199_v6 }
  0x58   : > { %3085 = vmatprep.mubr.bf16.mxu0 %v3200_v7  ;;  %3117 = vmatprep.mubr.bf16.mxu1 %v3201_v8  ;;  %v2025_v7 = vld [vmem:[%s3607_s14 + $0x78] sm:$0xff]  ;;  %v2024_v8 = vld [vmem:[%s3607_s14 + $0x70] sm:$0xff] }
  0x5a   : > { %1242 = vperm.xlu1 %3167, %v1020_v9   ;;  %1237 = vperm.xlu0 %3166, %v1019_v10  }
  0x5e   : > { %1152 = vperm.xlu1 %3167, %v1002_v11   ;;  %1147 = vperm.xlu0 %3166, %v1001_v12   ;;  %v2027_v11 = vld [vmem:[%s3607_s14 + $0x88] sm:$0xff]  ;;  %v2026_v12 = vld [vmem:[%s3607_s14 + $0x80] sm:$0xff] }
  0x5f   : > { %3086 = vmatmul.mubr.bf16.gmra.mxu0 %v3202_v13  ;;  %3118 = vmatmul.mubr.bf16.gmra.mxu1 %v3203_v14 }
  0x60   : > { %3089 = vmatprep.mubr.bf16.mxu0 %v3204_v15  ;;  %3121 = vmatprep.mubr.bf16.mxu1 %v3205_v16  ;;  %v2029_v15 = vld [vmem:[%s3607_s14 + $0x98] sm:$0xff]  ;;  %v2028_v16 = vld [vmem:[%s3607_s14 + $0x90] sm:$0xff] }
  0x62   : > { %1312 = vperm.xlu1 %3167, %v1034_v17   ;;  %1307 = vperm.xlu0 %3166, %v1033_v18  }
  0x66   : > { %1072 = vperm.xlu1 %3167, %v986_v19   ;;  %1067 = vperm.xlu0 %3166, %v985_v20   ;;  %v2031_v19 = vld [vmem:[%s3607_s14 + $0xa8] sm:$0xff]  ;;  %v2030_v20 = vld [vmem:[%s3607_s14 + $0xa0] sm:$0xff] }
  0x67   : > { %3090 = vmatmul.mubr.bf16.gmra.mxu0 %v3206_v21  ;;  %3122 = vmatmul.mubr.bf16.gmra.mxu1 %v3207_v22 }
  0x6a   : > { %1232 = vperm.xlu1 %3167, %v1018_v23   ;;  %1227 = vperm.xlu0 %3166, %v1017_v24   ;;  %v2033_v23 = vld [vmem:[%s3607_s14 + $0xb8] sm:$0xff]  ;;  %v2032_v24 = vld [vmem:[%s3607_s14 + $0xb0] sm:$0xff] }
  0x6e   : > { %1142 = vperm.xlu1 %3167, %v1000_v25   ;;  %1137 = vperm.xlu0 %3166, %v999_v26  }
  0x72   : > { %1302 = vperm.xlu1 %3167, %v1032_v27   ;;  %1297 = vperm.xlu0 %3166, %v1031_v28   ;;  %v2035_v27 = vld [vmem:[%s3607_s14 + $0xc8] sm:$0xff]  ;;  %v2034_v28 = vld [vmem:[%s3607_s14 + $0xc0] sm:$0xff] }
  0x76   : > { %1062 = vperm.xlu1 %3167, %v984_v29   ;;  %1057 = vperm.xlu0 %3166, %v983_v30  }
  0x7a   : > { %1222 = vperm.xlu1 %3167, %v1016_v31   ;;  %1217 = vperm.xlu0 %3166, %v1015_v32   ;;  %v2037_v31 = vld [vmem:[%s3607_s14 + $0xd8] sm:$0xff]  ;;  %v2036_v32 = vld [vmem:[%s3607_s14 + $0xd0] sm:$0xff] }
  0x7e   : > { %1132 = vperm.xlu1 %3167, %v998_v33   ;;  %1127 = vperm.xlu0 %3166, %v997_v34  }
  0x82   : > { %1292 = vperm.xlu1 %3167, %v1030_v35   ;;  %1287 = vperm.xlu0 %3166, %v1029_v36   ;;  %v2039_v35 = vld [vmem:[%s3607_s14 + $0xe8] sm:$0xff]  ;;  %v2038_v36 = vld [vmem:[%s3607_s14 + $0xe0] sm:$0xff] }
  0x86   : > { %1052 = vperm.xlu1 %3167, %v982_v37   ;;  %1047 = vperm.xlu0 %3166, %v981_v38  }
  0x89   : > { %v3609_v41 = vpop.permute.xlu1 %1357  ;;  %v3611_v42 = vpop.permute.xlu0 %1197 }
  0x8a   : > { %1212 = vperm.xlu1 %3167, %v1014_v39   ;;  %1207 = vperm.xlu0 %3166, %v1013_v40   ;;  %v2041_v39 = vld [vmem:[%s3607_s14 + $0xf8] sm:$0xff]  ;;  %v2040_v40 = vld [vmem:[%s3607_s14 + $0xf0] sm:$0xff] }
  0x8d   : > { %v3615_v45 = vpop.permute.xlu1 %1362  ;;  %v3617_v46 = vpop.permute.xlu0 %1202 }
  0x8e   : > { %2049 = vperm.xlu1 %3167, %v2011_v43   ;;  %2044 = vperm.xlu0 %3166, %v2010_v44  }
  0x91   : > { %v3621_v49 = vpop.permute.xlu1 %1122  ;;  %v3623_v50 = vpop.permute.xlu0 %1117 }
  0x92   : > { %2059 = vperm.xlu1 %3167, %v2013_v47   ;;  %2054 = vperm.xlu0 %3166, %v2012_v48  }
  0x95   : > { %v3627_v53 = vpop.permute.xlu1 %1282  ;;  %v3629_v54 = vpop.permute.xlu0 %1277 }
  0x96   : > { %2069 = vperm.xlu1 %3167, %v2015_v51   ;;  %2064 = vperm.xlu0 %3166, %v2014_v52   ;;  %v3720_v51 = vld [vmem:[%s3713_s19 + $0x8] sm:$0xff]  ;;  %v3723_v52 = vld [vmem:[%s3713_s19 + $0x18] sm:$0xff] }
  0x97   : > { %4083 = vst [vmem:[#allocation7_spill] sm:$0xff] %v3720_v51  ;;  %4084 = vst [vmem:[#allocation8_spill] sm:$0xff] %v3723_v52 }
  0x99   : > { %v3633_v57 = vpop.permute.xlu1 %1192  ;;  %v3635_v58 = vpop.permute.xlu0 %1187 }
  0x9a   : > { %2079 = vperm.xlu1 %3167, %v2017_v55   ;;  %2074 = vperm.xlu0 %3166, %v2016_v56   ;;  %v1462_v55 = vunpack.c.l.s8.bf16 %v3720_v51  ;;  %v1464_v56 = vunpack.c.l.s8.bf16 %v3723_v52 }
  0x9c   : > { %1621 = vmatprep.mubr.bf16.mxu1 %v1462_v55  ;;  %1782 = vmatprep.mubr.bf16.mxu0 %v1464_v56 }
  0x9d   : > { %v3639_v61 = vpop.permute.xlu1 %1352  ;;  %v3641_v62 = vpop.permute.xlu0 %1347 }
  0x9e   : > { %2089 = vperm.xlu1 %3167, %v2019_v59   ;;  %2084 = vperm.xlu0 %3166, %v2018_v60  }
  0xa1   : > { %v3645_v1 = vpop.permute.xlu1 %1112  ;;  %v3647_v2 = vpop.permute.xlu0 %1107 }
  0xa2   : > { %2099 = vperm.xlu1 %3167, %v2021_v63   ;;  %2094 = vperm.xlu0 %3166, %v2020_v0  }
  0xa5   : > { %v3651_v5 = vpop.permute.xlu1 %1272  ;;  %v3653_v6 = vpop.permute.xlu0 %1267 }
  0xa6   : > { %2109 = vperm.xlu1 %3167, %v2023_v3   ;;  %2104 = vperm.xlu0 %3166, %v2022_v4  }
  0xa9   : > { %v3657_v9 = vpop.permute.xlu1 %1182  ;;  %v3659_v10 = vpop.permute.xlu0 %1177 }
  0xaa   : > { %2119 = vperm.xlu1 %3167, %v2025_v7   ;;  %2114 = vperm.xlu0 %3166, %v2024_v8  }
  0xad   : > { %v3663_v13 = vpop.permute.xlu1 %1342  ;;  %v3665_v14 = vpop.permute.xlu0 %1337 }
  0xae   : > { %2129 = vperm.xlu1 %3167, %v2027_v11   ;;  %2124 = vperm.xlu0 %3166, %v2026_v12  }
  0xb1   : > { %v3669_v17 = vpop.permute.xlu1 %1102  ;;  %v3671_v18 = vpop.permute.xlu0 %1097 }
  0xb2   : > { %2139 = vperm.xlu1 %3167, %v2029_v15   ;;  %2134 = vperm.xlu0 %3166, %v2028_v16  }
  0xb5   : > { %v3675_v21 = vpop.permute.xlu1 %1262  ;;  %v3677_v22 = vpop.permute.xlu0 %1257 }
  0xb6   : > { %2149 = vperm.xlu1 %3167, %v2031_v19   ;;  %2144 = vperm.xlu0 %3166, %v2030_v20  }
  0xb9   : > { %v3681_v25 = vpop.permute.xlu1 %1172  ;;  %v3683_v26 = vpop.permute.xlu0 %1167 }
  0xba   : > { %2159 = vperm.xlu1 %3167, %v2033_v23   ;;  %2154 = vperm.xlu0 %3166, %v2032_v24  }
  0xbd   : > { %v3687_v29 = vpop.permute.xlu1 %1332  ;;  %v3689_v30 = vpop.permute.xlu0 %1327 }
  0xbe   : > { %2169 = vperm.xlu1 %3167, %v2035_v27   ;;  %2164 = vperm.xlu0 %3166, %v2034_v28  }
  0xc1   : > { %v3693_v33 = vpop.permute.xlu1 %1092  ;;  %v3695_v34 = vpop.permute.xlu0 %1087 }
  0xc2   : > { %4079 = vst [vmem:[#allocation3_spill] sm:$0xff] %v3695_v34  ;;  %2179 = vperm.xlu1 %3167, %v2037_v31   ;;  %2174 = vperm.xlu0 %3166, %v2036_v32  }
  0xc5   : > { %v3699_v37 = vpop.permute.xlu1 %1252  ;;  %v3701_v38 = vpop.permute.xlu0 %1247 }
  0xc6   : > { %4080 = vst [vmem:[#allocation4_spill] sm:$0xff] %v3701_v38  ;;  %2189 = vperm.xlu1 %3167, %v2039_v35   ;;  %2184 = vperm.xlu0 %3166, %v2038_v36  }
  0xc9   : > { %v3706_v43 = vpop.permute.xlu1 %1162  ;;  %v3708_v44 = vpop.permute.xlu0 %1157 }
  0xca   : > { %4081 = vst [vmem:[#allocation5_spill] sm:$0xff] %v3708_v44  ;;  %2199 = vperm.xlu1 %3167, %v2041_v39   ;;  %2194 = vperm.xlu0 %3166, %v2040_v40  }
  0xcd   : > { %v3715_v47 = vpop.permute.xlu1 %1322  ;;  %v3717_v48 = vpop.permute.xlu0 %1317 }
  0xce   : > { %4082 = vst [vmem:[#allocation6_spill] sm:$0xff] %v3717_v48 }
  0xd1   : > { %v1083_v59 = vpop.permute.xlu1 %1082  ;;  %v1078_v60 = vpop.permute.xlu0 %1077 }
  0xd5   : > { %v1243_v63 = vpop.permute.xlu1 %1242  ;;  %v1238_v0 = vpop.permute.xlu0 %1237 }
  0xd9   : > { %v3727_v3 = vpop.permute.xlu1 %1152  ;;  %v3729_v4 = vpop.permute.xlu0 %1147 }
  0xda   : > { %4085 = vst [vmem:[#allocation9_spill] sm:$0xff] %v3727_v3  ;;  %4086 = vst [vmem:[#allocation10_spill] sm:$0xff] %v3729_v4 }
  0xdd   : > { %v3731_v7 = vpop.permute.xlu1 %1312  ;;  %v3733_v8 = vpop.permute.xlu0 %1307 }
  0xde   : > { %4087 = vst [vmem:[#allocation11_spill] sm:$0xff] %v3731_v7  ;;  %4088 = vst [vmem:[#allocation12_spill] sm:$0xff] %v3733_v8 }
  0xe1   : > { %v1073_v11 = vpop.permute.xlu1 %1072  ;;  %v1068_v12 = vpop.permute.xlu0 %1067 }
  0xe5   : > { %v1233_v15 = vpop.permute.xlu1 %1232  ;;  %v1228_v16 = vpop.permute.xlu0 %1227 }
  0xe9   : > { %v3735_v19 = vpop.permute.xlu1 %1142  ;;  %v3737_v20 = vpop.permute.xlu0 %1137 }
  0xea   : > { %4089 = vst [vmem:[#allocation13_spill] sm:$0xff] %v3735_v19  ;;  %4090 = vst [vmem:[#allocation14_spill] sm:$0xff] %v3737_v20 }
  0xed   : > { %v3739_v23 = vpop.permute.xlu1 %1302  ;;  %v3741_v24 = vpop.permute.xlu0 %1297 }
  0xee   : > { %4091 = vst [vmem:[#allocation15_spill] sm:$0xff] %v3739_v23  ;;  %4092 = vst [vmem:[#allocation16_spill] sm:$0xff] %v3741_v24 }
  0xef   : > { %v3063_v27 = vpop.f32.mrf.mxu0  ;;  %v3095_v28 = vpop.f32.mrf.mxu1 }
  0xf1   : > { %v1063_v31 = vpop.permute.xlu1 %1062  ;;  %v1058_v32 = vpop.permute.xlu0 %1057 }
  0xf2   : > { %v726_v35 = vpop.f32.mrf.mxu0  ;;  %v854_v36 = vpop.f32.mrf.mxu1  ;;  %v3743_v39 = vmul.f32 %v3063_v27, %v1058_v32 }
  0xf4   : > { %4093 = vst [vmem:[#allocation17_spill] sm:$0xff] %v3743_v39  ;;  %v3064_v40 = vpop.f32.mrf.mxu0  ;;  %v3096_v55 = vpop.f32.mrf.mxu1 }
  0xf5   : > { %v3745_v56 = vmul.f32 %v3064_v40, %v1063_v31  ;;  %v1223_v52 = vpop.permute.xlu1 %1222  ;;  %v1218_v51 = vpop.permute.xlu0 %1217 }
  0xf6   : > { %v3747_v19 = vmul.f32 %v3096_v55, %v1223_v52  ;;  %v3749_v20 = vmul.f32 %v3095_v28, %v1218_v51  ;;  %v729_v23 = vpop.f32.mrf.mxu0  ;;  %v857_v24 = vpop.f32.mrf.mxu1 }
  0xf7   : > { %4094 = vst [vmem:[#allocation18_spill] sm:$0xff] %v3745_v56 }
  0xf8   : > { %4095 = vst [vmem:[#allocation19_spill] sm:$0xff] %v3747_v19  ;;  %4096 = vst [vmem:[#allocation20_spill] sm:$0xff] %v3749_v20  ;;  %v3067_v27 = vpop.f32.mrf.mxu0  ;;  %v3099_v32 = vpop.f32.mrf.mxu1 }
  0xf9   : > { %v3755_v7 = vpop.permute.xlu1 %1132  ;;  %v3757_v31 = vpop.permute.xlu0 %1127  ;;  %v3759_v51 = vmul.f32 %v3067_v27, %v1078_v60  ;;  %v3761_v28 = vmul.f32 %v3099_v32, %v1238_v0 }
  0xfa   : > { %4097 = vst [vmem:[#allocation21_spill] sm:$0xff] %v3755_v7  ;;  %4098 = vst [vmem:[#allocation22_spill] sm:$0xff] %v3757_v31  ;;  %v742_v40 = vpop.f32.mrf.mxu0  ;;  %v870_v3 = vpop.f32.mrf.mxu1 }
  0xfb   : > { %4099 = vst [vmem:[#allocation23_spill] sm:$0xff] %v3759_v51  ;;  %4100 = vst [vmem:[#allocation24_spill] sm:$0xff] %v3761_v28  ;;  %v3771_v20 = vmul.f32 %v1068_v12, %v742_v40  ;;  %v3773_v19 = vmul.f32 %v1228_v16, %v870_v3 }
  0xfc   : > { %v3068_v52 = vpop.f32.mrf.mxu0  ;;  %v3100_v55 = vpop.f32.mrf.mxu1 }
  0xfd   : > { %v3763_v48 = vmul.f32 %v3068_v52, %v1083_v59  ;;  %v3765_v8 = vmul.f32 %v3100_v55, %v1243_v63  ;;  %v3767_v39 = vpop.permute.xlu1 %1292  ;;  %v3769_v4 = vpop.permute.xlu0 %1287  ;;  %4105 = vst [vmem:[#allocation29_spill] sm:$0xff] %v3771_v20  ;;  %4106 = vst [vmem:[#allocation30_spill] sm:$0xff] %v3773_v19 }
  0xfe   : > { %4103 = vst [vmem:[#allocation27_spill] sm:$0xff] %v3767_v39  ;;  %4104 = vst [vmem:[#allocation28_spill] sm:$0xff] %v3769_v4  ;;  %v745_v56 = vpop.f32.mrf.mxu0  ;;  %v873_v31 = vpop.f32.mrf.mxu1 }
  0xff   : > { %4101 = vst [vmem:[#allocation25_spill] sm:$0xff] %v3763_v48  ;;  %4102 = vst [vmem:[#allocation26_spill] sm:$0xff] %v3765_v8  ;;  %v3779_v59 = vmul.f32 %v1073_v11, %v745_v56  ;;  %v3781_v63 = vmul.f32 %v1233_v15, %v873_v31 }
 0x100   : > { %v3071_v27 = vpop.f32.mrf.mxu0  ;;  %v3783_v32 = vpop.f32.mrf.mxu1 }
 0x101   : > { %4107 = vst [vmem:[#allocation31_spill] sm:$0xff] %v3779_v59  ;;  %4108 = vst [vmem:[#allocation32_spill] sm:$0xff] %v3781_v63  ;;  %v1053_v16 = vpop.permute.xlu1 %1052  ;;  %v1048_v40 = vpop.permute.xlu0 %1047  ;;  %v3802_v12 = vmul.f32 %v3071_v27, %v3671_v18 }
 0x102   : > { %v3789_v52 = vmul.f32 %v1053_v16, %v729_v23  ;;  %v3791_v55 = vmul.f32 %v1048_v40, %v726_v35  ;;  %v3793_v0 = vpop.f32.mrf.mxu0  ;;  %v3795_v11 = vpop.f32.mrf.mxu1 }
 0x103   : > { %4111 = vst [vmem:[#allocation35_spill] sm:$0xff] %v3793_v0  ;;  %4112 = vst [vmem:[#allocation36_spill] sm:$0xff] %v3795_v11 }
 0x104   : > { %4109 = vst [vmem:[#allocation33_spill] sm:$0xff] %v3789_v52  ;;  %4110 = vst [vmem:[#allocation34_spill] sm:$0xff] %v3791_v55  ;;  %v3072_v56 = vpop.f32.mrf.mxu0  ;;  %v3799_v31 = vpop.f32.mrf.mxu1 }
 0x105   : > { %4113 = vst [vmem:[#allocation37_spill] sm:$0xff] %v3802_v12  ;;  %v3805_v3 = vmul.f32 %v3072_v56, %v3669_v17  ;;  %v1213_v23 = vpop.permute.xlu1 %1212  ;;  %v1208_v16 = vpop.permute.xlu0 %1207 }
 0x106   : > { %v3807_v35 = vmul.f32 %v1213_v23, %v857_v24  ;;  %v3809_v40 = vmul.f32 %v1208_v16, %v854_v36  ;;  %v3811_v60 = vpop.f32.mrf.mxu0  ;;  %v3813_v4 = vpop.f32.mrf.mxu1 }
 0x107   : > { %4114 = vst [vmem:[#allocation38_spill] sm:$0xff] %v3805_v3 }
 0x108   : > { %4115 = vst [vmem:[#allocation39_spill] sm:$0xff] %v3807_v35  ;;  %4116 = vst [vmem:[#allocation40_spill] sm:$0xff] %v3809_v40  ;;  %v3075_v27 = vpop.f32.mrf.mxu0  ;;  %v3107_v55 = vpop.f32.mrf.mxu1 }
 0x10a   : > { %v3819_v17 = vpop.f32.mrf.mxu0  ;;  %v3821_v56 = vpop.f32.mrf.mxu1 }
 0x10c   : > { %v3076_v24 = vpop.f32.mrf.mxu0  ;;  %v3108_v23 = vpop.f32.mrf.mxu1 }
 0x10e   : > { %v777_v36 = vpop.f32.mrf.mxu0  ;;  %v905_v16 = vpop.f32.mrf.mxu1 }
 0x110   : > { %v3823_v52 = vpop.f32.mrf.mxu0  ;;  %v3825_v19 = vpop.f32.mrf.mxu1 }
 0x111   : > { %4117 = vst [vmem:[#allocation41_spill] sm:$0xff] %v3823_v52  ;;  %4118 = vst [vmem:[#allocation42_spill] sm:$0xff] %v3825_v19 }
 0x112   : > { %v3827_v63 = vpop.f32.mrf.mxu0  ;;  %v3829_v15 = vpop.f32.mrf.mxu1 }
 0x113   : > { %4119 = vst [vmem:[#allocation43_spill] sm:$0xff] %v3827_v63  ;;  %4120 = vst [vmem:[#allocation44_spill] sm:$0xff] %v3829_v15 }
 0x114   : > { %v3831_v20 = vpop.f32.mrf.mxu0  ;;  %v3833_v18 = vpop.f32.mrf.mxu1 }
 0x115   : > { %4121 = vst [vmem:[#allocation45_spill] sm:$0xff] %v3831_v20  ;;  %4122 = vst [vmem:[#allocation46_spill] sm:$0xff] %v3833_v18 }
 0x116   : > { %v3835_v40 = vpop.f32.mrf.mxu0  ;;  %v3837_v35 = vpop.f32.mrf.mxu1 }
 0x117   : > { %4123 = vst [vmem:[#allocation47_spill] sm:$0xff] %v3835_v40  ;;  %4124 = vst [vmem:[#allocation48_spill] sm:$0xff] %v3837_v35 }
 0x118   : > { %v3839_v59 = vpop.f32.mrf.mxu0  ;;  %v3841_v39 = vpop.f32.mrf.mxu1 }
 0x119   : > { %4125 = vst [vmem:[#allocation49_spill] sm:$0xff] %v3839_v59  ;;  %4126 = vst [vmem:[#allocation50_spill] sm:$0xff] %v3841_v39 }
 0x11a   : > { %v3843_v7 = vpop.f32.mrf.mxu0  ;;  %v3845_v52 = vpop.f32.mrf.mxu1 }
 0x11b   : > { %4127 = vst [vmem:[#allocation51_spill] sm:$0xff] %v3843_v7  ;;  %4128 = vst [vmem:[#allocation52_spill] sm:$0xff] %v3845_v52 }
 0x11c   : > { %v3847_v19 = vpop.f32.mrf.mxu0  ;;  %v3849_v63 = vpop.f32.mrf.mxu1 }
 0x11d   : > { %4129 = vst [vmem:[#allocation53_spill] sm:$0xff] %v3849_v63 }
 0x11e   : > { %v3851_v15 = vpop.f32.mrf.mxu0  ;;  %v3853_v28 = vpop.f32.mrf.mxu1 }
 0x11f   : > { %4130 = vst [vmem:[#allocation54_spill] sm:$0xff] %v3851_v15  ;;  %4131 = vst [vmem:[#allocation55_spill] sm:$0xff] %v3853_v28  ;;  %v1380_v15 = vmul.f32 %v3076_v24, %v3621_v49  ;;  %v1412_v28 = vmul.f32 %v3108_v23, %v3627_v53 }
 0x120   : > { %v3087_v8 = vpop.f32.mrf.mxu0  ;;  %v3119_v40 = vpop.f32.mrf.mxu1 }
 0x121   : > { %v1423_v20 = vmul.f32 %v3119_v40, %v3665_v14 }
 0x122   : > { %v822_v51 = vpop.f32.mrf.mxu0  ;;  %v950_v35 = vpop.f32.mrf.mxu1 }
 0x124   : > { %v3088_v48 = vpop.f32.mrf.mxu0  ;;  %v3120_v18 = vpop.f32.mrf.mxu1 }
 0x125   : > { %v1424_v7 = vmul.f32 %v3120_v18, %v3663_v13 }
 0x126   : > { %v825_v39 = vpop.f32.mrf.mxu0  ;;  %v953_v52 = vpop.f32.mrf.mxu1 }
 0x127   : > { %v1586_v59 = vpack.c.bf16 %v1424_v7, %v1423_v20  ;;  %v1379_v7 = vmul.f32 %v3075_v27, %v3623_v50  ;;  %v1411_v20 = vmul.f32 %v3107_v55, %v3629_v54  ;;  %v1410_v50 = vmul.f32 %v3651_v5, %v905_v16  ;;  %v4145_v27 = vld [vmem:[#allocation9_spill] sm:$0xff] }
 0x128   : > { %v3091_v44 = vpop.f32.mrf.mxu0  ;;  %v3123_v12 = vpop.f32.mrf.mxu1  ;;  %v1392_v54 = vmul.f32 %v3088_v48, %v3657_v9  ;;  %v1390_v48 = vmul.f32 %v3681_v25, %v825_v39  ;;  %v1406_v25 = vmul.f32 %v3699_v37, %v3813_v4  ;;  %v4140_v37 = vld [vmem:[#allocation5_spill] sm:$0xff] }
 0x129   : > { %v1395_v0 = vmul.f32 %v3091_v44, %v3611_v42  ;;  %v1427_v63 = vmul.f32 %v3123_v12, %v3609_v41  ;;  %v1564_v44 = vpack.c.bf16 %v1380_v15, %v1379_v7  ;;  %v4141_v4 = vld [vmem:[#allocation49_spill] sm:$0xff] }
 0x12a   : > { %v838_v3 = vpop.f32.mrf.mxu0  ;;  %v966_v38 = vpop.f32.mrf.mxu1 }
 0x12b   : > { %v1393_v40 = vmul.f32 %v3635_v58, %v838_v3  ;;  %v1425_v49 = vmul.f32 %v3641_v62, %v966_v38  ;;  %v1377_v62 = vmul.f32 %v3647_v2, %v3819_v17  ;;  %v1407_v2 = vmul.f32 %v3783_v32, %v3677_v22  ;;  %v4132_v22 = vld [vmem:[#allocation53_spill] sm:$0xff]  ;;  %v4135_v32 = vld [vmem:[#allocation36_spill] sm:$0xff]  ;;  %v4137_v3 = vld [vmem:[#allocation38_spill] sm:$0xff] }
 0x12c   : > { %v3092_v11 = vpop.f32.mrf.mxu0  ;;  %v3124_v34 = vpop.f32.mrf.mxu1  ;;  %v1420_v39 = vmul.f32 %v4132_v22, %v3715_v47  ;;  %v4171_v22 = vld [vmem:[#allocation29_spill] sm:$0xff] }
 0x12d   : > { %v1396_v14 = vmul.f32 %v3092_v11, %v3617_v46  ;;  %v1428_v13 = vmul.f32 %v3124_v34, %v3615_v45  ;;  %v1580_v46 = vpack.c.bf16 %v1412_v28, %v1411_v20  ;;  %v1378_v45 = vmul.f32 %v3645_v1, %v777_v36  ;;  %v4147_v36 = vld [vmem:[#allocation11_spill] sm:$0xff]  ;;  %v4150_v20 = vld [vmem:[#allocation52_spill] sm:$0xff] }
 0x12e   : > { %v841_v18 = vpop.f32.mrf.mxu0  ;;  %v969_v53 = vpop.f32.mrf.mxu1  ;;  %v1408_v1 = vmul.f32 %v3799_v31, %v3675_v21  ;;  %v1422_v28 = vmul.f32 %v3687_v29, %v953_v52  ;;  %v1374_v21 = vmul.f32 %v3693_v33, %v3811_v60  ;;  %v1388_v29 = vmul.f32 %v3847_v19, %v3706_v43  ;;  %v4138_v52 = vld [vmem:[#allocation37_spill] sm:$0xff]  ;;  %v4142_v43 = vld [vmem:[#allocation6_spill] sm:$0xff] }
 0x12f   : > { %v1572_v24 = vpack.c.bf16 %v1396_v14, %v1395_v0  ;;  %v1588_v23 = vpack.c.bf16 %v1428_v13, %v1427_v63  ;;  %v1394_v42 = vmul.f32 %v3633_v57, %v841_v18  ;;  %v1426_v41 = vmul.f32 %v3639_v61, %v969_v53  ;;  %v4143_v19 = vld [vmem:[#allocation50_spill] sm:$0xff]  ;;  %v4148_v14 = vld [vmem:[#allocation51_spill] sm:$0xff]  ;;  %v4152_v18 = vld [vmem:[#allocation13_spill] sm:$0xff] }
 0x130   : > { %v1409_v57 = vmul.f32 %v3653_v6, %v3821_v56  ;;  %v1391_v61 = vmul.f32 %v3087_v8, %v3659_v10  ;;  %v1563_v5 = vpack.c.bf16 %v1378_v45, %v1377_v62  ;;  %v1389_v6 = vmul.f32 %v3683_v26, %v822_v51  ;;  %v4133_v26 = vld [vmem:[#allocation35_spill] sm:$0xff]  ;;  %v4149_v13 = vld [vmem:[#allocation10_spill] sm:$0xff]  ;;  %v4153_v53 = vld [vmem:[#allocation45_spill] sm:$0xff] }
 0x131   : > { %v1571_v34 = vpack.c.bf16 %v1394_v42, %v1393_v40  ;;  %v1587_v58 = vpack.c.bf16 %v1426_v41, %v1425_v49  ;;  %2821 = vmatprep.subr.bf16.mxu1 %v1572_v24  ;;  %2933 = vmatprep.subr.bf16.mxu0 %v1588_v23  ;;  %v1421_v10 = vmul.f32 %v3689_v30, %v950_v35  ;;  %v4134_v51 = vld [vmem:[#allocation3_spill] sm:$0xff]  ;;  %v4144_v35 = vld [vmem:[#allocation54_spill] sm:$0xff]  ;;  %v4151_v40 = vld [vmem:[#allocation12_spill] sm:$0xff] }
 0x132   : > { %2822 = vmatpush3.bf16.msra.mxu1 %v1564_v44  ;;  %2934 = vmatpush3.bf16.msra.mxu0 %v1580_v46  ;;  %v1579_v9 = vpack.c.bf16 %v1410_v50, %v1409_v57  ;;  %v1570_v38 = vpack.c.bf16 %v1392_v54, %v1391_v61  ;;  %v1578_v8 = vpack.c.bf16 %v1408_v1, %v1407_v2  ;;  %v4146_v56 = vld [vmem:[#allocation55_spill] sm:$0xff]  ;;  %v4155_v42 = vld [vmem:[#allocation46_spill] sm:$0xff]  ;;  %v4156_v45 = vld [vmem:[#allocation25_spill] sm:$0xff] }
 0x133   : > { %2823 = vmatprep.subr.bf16.mxu1 %v1571_v34  ;;  %2935 = vmatprep.subr.bf16.mxu0 %v1587_v58  ;;  %v1569_v0 = vpack.c.bf16 %v1390_v48, %v1389_v6  ;;  %v1585_v63 = vpack.c.bf16 %v1422_v28, %v1421_v10  ;;  %v1373_v30 = vmul.f32 %v4134_v51, %v4133_v26  ;;  %v4154_v23 = vld [vmem:[#allocation15_spill] sm:$0xff]  ;;  %v4159_v34 = vld [vmem:[#allocation26_spill] sm:$0xff]  ;;  %v4160_v58 = vld [vmem:[#allocation24_spill] sm:$0xff] }
 0x134   : > { %v4139_v33 = vpack.c.bf16 %v4137_v3, %v4138_v52  ;;  %v1387_v60 = vmul.f32 %v4141_v4, %v4140_v37  ;;  %v1419_v55 = vmul.f32 %v4143_v19, %v4142_v43  ;;  %v1386_v17 = vmul.f32 %v4145_v27, %v4144_v35  ;;  %v4157_v50 = vld [vmem:[#allocation23_spill] sm:$0xff]  ;;  %v4162_v57 = vld [vmem:[#allocation14_spill] sm:$0xff]  ;;  %v4163_v61 = vld [vmem:[#allocation41_spill] sm:$0xff] }
 0x135   : > { %v1561_v47 = vpack.c.bf16 %v1374_v21, %v1373_v30  ;;  %v1418_v16 = vmul.f32 %v4147_v36, %v4146_v56  ;;  %v1385_v7 = vmul.f32 %v4149_v13, %v4148_v14  ;;  %v1417_v49 = vmul.f32 %v4151_v40, %v4150_v20  ;;  %v4166_v2 = vld [vmem:[#allocation47_spill] sm:$0xff]  ;;  %v4167_v6 = vld [vmem:[#allocation21_spill] sm:$0xff]  ;;  %v4177_v30 = vld [vmem:[#allocation22_spill] sm:$0xff] }
 0x136   : > { %2824 = vmatpush3.bf16.msra.mxu1 %v1563_v5  ;;  %2936 = vmatpush3.bf16.msra.mxu0 %v1579_v9  ;;  %v1568_v15 = vpack.c.bf16 %v1388_v29, %v1387_v60  ;;  %v1584_v31 = vpack.c.bf16 %v1420_v39, %v1419_v55  ;;  %v1384_v24 = vmul.f32 %v4153_v53, %v4152_v18  ;;  %v4164_v5 = vld [vmem:[#allocation16_spill] sm:$0xff]  ;;  %v4165_v9 = vld [vmem:[#allocation42_spill] sm:$0xff]  ;;  %v4169_v21 = vld [vmem:[#allocation27_spill] sm:$0xff] }
 0x137   : > { %2825 = vmatprep.subr.bf16.mxu1 %v1570_v38  ;;  %2937 = vmatprep.subr.bf16.mxu0 %v1586_v59  ;;  %v4136_v59 = vld [vmem:[#allocation4_spill] sm:$0xff]  ;;  %v1416_v41 = vmul.f32 %v4155_v42, %v4154_v23  ;;  %v1567_v44 = vpack.c.bf16 %v1386_v17, %v1385_v7  ;;  %v1583_v46 = vpack.c.bf16 %v1418_v16, %v1417_v49  ;;  %v4170_v29 = vld [vmem:[#allocation31_spill] sm:$0xff]  ;;  %v4180_v37 = vld [vmem:[#allocation18_spill] sm:$0xff] }
 0x138   : > { %v1405_v12 = vmul.f32 %v4136_v59, %v4135_v32  ;;  %v4158_v54 = vpack.c.bf16 %v4156_v45, %v4157_v50  ;;  %v4161_v62 = vpack.c.bf16 %v4159_v34, %v4160_v58  ;;  %v1383_v1 = vmul.f32 %v4163_v61, %v4162_v57  ;;  %v4176_v51 = vld [vmem:[#allocation43_spill] sm:$0xff]  ;;  %v4178_v59 = vld [vmem:[#allocation44_spill] sm:$0xff]  ;;  %v4181_v4 = vld [vmem:[#allocation17_spill] sm:$0xff] }
 0x139   : > { %v1415_v38 = vmul.f32 %v4165_v9, %v4164_v5  ;;  %v1382_v10 = vmul.f32 %v4167_v6, %v4166_v2  ;;  %v4172_v39 = vpack.c.bf16 %v4170_v29, %v4171_v22  ;;  %v1381_v32 = vmul.f32 %v4177_v30, %v4176_v51  ;;  %v4183_v43 = vld [vmem:[#allocation19_spill] sm:$0xff]  ;;  %v4184_v19 = vld [vmem:[#allocation20_spill] sm:$0xff]  ;;  %v4186_v35 = vld [vmem:[#allocation33_spill] sm:$0xff] }
 0x13a   : > { %2826 = vmatpush3.bf16.msra.mxu1 %v4139_v33  ;;  %2938 = vmatpush3.bf16.msra.mxu0 %v1578_v8  ;;  %v1577_v11 = vpack.c.bf16 %v1406_v25, %v1405_v12  ;;  %v1566_v48 = vpack.c.bf16 %v1384_v24, %v1383_v1  ;;  %v4168_v8 = vld [vmem:[#allocation48_spill] sm:$0xff]  ;;  %v4182_v60 = vpack.c.bf16 %v4180_v37, %v4181_v4  ;;  %v4187_v27 = vld [vmem:[#allocation34_spill] sm:$0xff]  ;;  %v4189_v56 = vld [vmem:[#allocation39_spill] sm:$0xff] }
 0x13b   : > { %2827 = vmatprep.subr.bf16.mxu1 %v1569_v0  ;;  %2939 = vmatprep.subr.bf16.mxu0 %v1585_v63  ;;  %v1582_v28 = vpack.c.bf16 %v1416_v41, %v1415_v38  ;;  %v1414_v25 = vmul.f32 %v4169_v21, %v4168_v8  ;;  %v4173_v0 = vld [vmem:[#allocation32_spill] sm:$0xff]  ;;  %v4174_v63 = vld [vmem:[#allocation30_spill] sm:$0xff]  ;;  %v1565_v52 = vpack.c.bf16 %v1382_v10, %v1381_v32  ;;  %v4192_v14 = vld [vmem:[#allocation7_spill] sm:$0xff] }
 0x13c   : > { %v4175_v26 = vpack.c.bf16 %v4173_v0, %v4174_v63  ;;  %v4179_v12 = vld [vmem:[#allocation28_spill] sm:$0xff]  ;;  %v4185_v55 = vpack.c.bf16 %v4183_v43, %v4184_v19  ;;  %v4188_v17 = vpack.c.bf16 %v4186_v35, %v4187_v27  ;;  %v1466_v13 = vunpack.c.h.s8.bf16 %v4192_v14  ;;  %v1436_v49 = vld [vmem:[%s3713_s19 + $0x38] sm:$0xff]  ;;  %v1433_v42 = vld [vmem:[%s3713_s19 + $0x20] sm:$0xff] }
 0x13d   : > { %v1413_v3 = vmul.f32 %v4179_v12, %v4178_v59  ;;  %v4190_v36 = vld [vmem:[#allocation40_spill] sm:$0xff]  ;;  %v1472_v23 = vunpack.c.l.s8.bf16 %v1436_v49  ;;  %v1435_v41 = vld [vmem:[%s3713_s19 + $0x30] sm:$0xff]  ;;  %v1476_v50 = vunpack.c.h.s8.bf16 %v1436_v49  ;;  %v1440_v34 = vld [vmem:[%s3713_s19 + $0x58] sm:$0xff]  ;;  %v1473_v58 = vunpack.c.h.s8.bf16 %v1433_v42 }
 0x13e   : > { %2828 = vmatpush3.bf16.msra.mxu1 %v1561_v47  ;;  %2940 = vmatpush3.bf16.msra.mxu0 %v1577_v11  ;;  %v1429_v47 = vld [vmem:[%s3713_s19] sm:$0xff]  ;;  %v1431_v11 = vld [vmem:[%s3713_s19 + $0x10] sm:$0xff]  ;;  %v4191_v16 = vpack.c.bf16 %v4189_v56, %v4190_v36  ;;  %v4193_v7 = vld [vmem:[#allocation8_spill] sm:$0xff]  ;;  %v1480_v61 = vunpack.c.l.s8.bf16 %v1440_v34 }
 0x13f   : > { %2829 = vmatprep.subr.bf16.mxu1 %v1568_v15  ;;  %2941 = vmatprep.subr.bf16.mxu0 %v1584_v31  ;;  %v1581_v33 = vpack.c.bf16 %v1414_v25, %v1413_v3  ;;  %v1461_v15 = vunpack.c.l.s8.bf16 %v1429_v47  ;;  %v1463_v31 = vunpack.c.l.s8.bf16 %v1431_v11  ;;  %v1468_v20 = vunpack.c.h.s8.bf16 %v4193_v7  ;;  %v1434_v40 = vld [vmem:[%s3713_s19 + $0x28] sm:$0xff]  ;;  %v1437_v1 = vld [vmem:[%s3713_s19 + $0x40] sm:$0xff]  ;;  %v1439_v5 = vld [vmem:[%s3713_s19 + $0x50] sm:$0xff] }
 0x140   : > { %v1465_v18 = vunpack.c.h.s8.bf16 %v1429_v47  ;;  %v1467_v53 = vunpack.c.h.s8.bf16 %v1431_v11  ;;  %v1470_v24 = vunpack.c.l.s8.bf16 %v1434_v40  ;;  %v1474_v45 = vunpack.c.h.s8.bf16 %v1434_v40  ;;  %v1442_v2 = vld [vmem:[%s3713_s19 + $0x68] sm:$0xff]  ;;  %v1444_v6 = vld [vmem:[%s3713_s19 + $0x78] sm:$0xff]  ;;  %v1441_v29 = vld [vmem:[%s3713_s19 + $0x60] sm:$0xff] }
 0x141   : > { %v1477_v9 = vunpack.c.l.s8.bf16 %v1437_v1  ;;  %v1479_v38 = vunpack.c.l.s8.bf16 %v1439_v5  ;;  %v1481_v10 = vunpack.c.h.s8.bf16 %v1437_v1  ;;  %v1483_v8 = vunpack.c.h.s8.bf16 %v1439_v5  ;;  %v1443_v22 = vld [vmem:[%s3713_s19 + $0x70] sm:$0xff]  ;;  %v1446_v51 = vld [vmem:[%s3713_s19 + $0x88] sm:$0xff]  ;;  %v1448_v30 = vld [vmem:[%s3713_s19 + $0x98] sm:$0xff] }
 0x142   : > { %2830 = vmatpush3.bf16.msra.mxu1 %v4158_v54  ;;  %2942 = vmatpush3.bf16.msra.mxu0 %v4161_v62  ;;  %v1438_v54 = vld [vmem:[%s3713_s19 + $0x48] sm:$0xff]  ;;  %v1475_v62 = vunpack.c.h.s8.bf16 %v1435_v41  ;;  %v1486_v21 = vunpack.c.l.s8.bf16 %v1442_v2  ;;  %v1488_v25 = vunpack.c.l.s8.bf16 %v1444_v6  ;;  %v1487_v0 = vunpack.c.l.s8.bf16 %v1443_v22  ;;  %v1449_v35 = vld [vmem:[%s3713_s19 + $0xa0] sm:$0xff]  ;;  %v1451_v27 = vld [vmem:[%s3713_s19 + $0xb0] sm:$0xff] }
 0x143   : > { %2831 = vmatprep.subr.bf16.mxu1 %v1567_v44  ;;  %2943 = vmatprep.subr.bf16.mxu0 %v1583_v46  ;;  %v1469_v44 = vunpack.c.l.s8.bf16 %v1433_v42  ;;  %v1471_v46 = vunpack.c.l.s8.bf16 %v1435_v41  ;;  %v1478_v57 = vunpack.c.l.s8.bf16 %v1438_v54  ;;  %v1490_v63 = vunpack.c.h.s8.bf16 %v1442_v2  ;;  %v1450_v19 = vld [vmem:[%s3713_s19 + $0xa8] sm:$0xff] }
 0x144   : > { %v1489_v32 = vunpack.c.h.s8.bf16 %v1441_v29  ;;  %v1491_v59 = vunpack.c.h.s8.bf16 %v1443_v22  ;;  %v1494_v12 = vunpack.c.l.s8.bf16 %v1446_v51  ;;  %v1496_v3 = vunpack.c.l.s8.bf16 %v1448_v30  ;;  %v1454_v14 = vld [vmem:[%s3713_s19 + $0xc8] sm:$0xff] }
 0x145   : > { %v1500_v43 = vunpack.c.h.s8.bf16 %v1448_v30  ;;  %v1503_v56 = vunpack.c.l.s8.bf16 %v1451_v27  ;;  %v1506_v36 = vunpack.c.h.s8.bf16 %v1450_v19  ;;  %v1505_v7 = vunpack.c.h.s8.bf16 %v1449_v35 }
 0x146   : > { %2832 = vmatpush3.bf16.msra.mxu1 %v4172_v39  ;;  %2944 = vmatpush3.bf16.msra.mxu0 %v4175_v26  ;;  %v1485_v39 = vunpack.c.l.s8.bf16 %v1441_v29  ;;  %v1492_v26 = vunpack.c.h.s8.bf16 %v1444_v6  ;;  %v1510_v40 = vunpack.c.l.s8.bf16 %v1454_v14  ;;  %v1514_v42 = vunpack.c.h.s8.bf16 %v1454_v14  ;;  %v2045_v29 = vpop.permute.xlu0 %2044 }
 0x147   : > { %2833 = vmatprep.subr.bf16.mxu1 %v1566_v48  ;;  %2945 = vmatprep.subr.bf16.mxu0 %v1582_v28  ;;  %v1482_v48 = vunpack.c.h.s8.bf16 %v1438_v54  ;;  %v1484_v28 = vunpack.c.h.s8.bf16 %v1440_v34 }
 0x14a   : > { %2834 = vmatpush3.bf16.msra.mxu1 %v4182_v60  ;;  %2946 = vmatpush3.bf16.msra.mxu0 %v4185_v55  ;;  %v1498_v60 = vunpack.c.h.s8.bf16 %v1446_v51  ;;  %v1452_v55 = vld [vmem:[%s3713_s19 + $0xb8] sm:$0xff] }
 0x14b   : > { %2835 = vmatprep.subr.bf16.mxu1 %v1565_v52  ;;  %2947 = vmatprep.subr.bf16.mxu0 %v1581_v33  ;;  %v1445_v52 = vld [vmem:[%s3713_s19 + $0x80] sm:$0xff]  ;;  %v1447_v33 = vld [vmem:[%s3713_s19 + $0x90] sm:$0xff] }
 0x14c   : > { %v1493_v37 = vunpack.c.l.s8.bf16 %v1445_v52  ;;  %v1495_v4 = vunpack.c.l.s8.bf16 %v1447_v33  ;;  %v1497_v47 = vunpack.c.h.s8.bf16 %v1445_v52  ;;  %v1499_v11 = vunpack.c.h.s8.bf16 %v1447_v33 }
 0x14e   : > { %2836 = vmatpush3.bf16.msra.mxu1 %v4188_v17  ;;  %2948 = vmatpush3.bf16.msra.mxu0 %v4191_v16  ;;  %v1501_v17 = vunpack.c.l.s8.bf16 %v1449_v35  ;;  %v1508_v16 = vunpack.c.h.s8.bf16 %v1452_v55 }
 0x151   : > { %1622 = vmatmul.mubr.bf16.vlgmr.msra.gmra.mxu1 %v1461_v15  ;;  %1783 = vmatmul.mubr.bf16.vlgmr.msra.gmra.mxu0 %v1463_v31  ;;  %v1502_v15 = vunpack.c.l.s8.bf16 %v1450_v19  ;;  %v1504_v31 = vunpack.c.l.s8.bf16 %v1452_v55 }
 0x152   : > { %1629 = vmatprep.mubr.bf16.mxu1 %v1466_v13  ;;  %1790 = vmatprep.mubr.bf16.mxu0 %v1468_v20  ;;  %v1456_v13 = vld [vmem:[%s3713_s19 + $0xd8] sm:$0xff]  ;;  %v1507_v20 = vunpack.c.h.s8.bf16 %v1451_v27 }
 0x153   : > { %v1512_v49 = vunpack.c.l.s8.bf16 %v1456_v13  ;;  %v1516_v41 = vunpack.c.h.s8.bf16 %v1456_v13 }
 0x159   : > { %1630 = vmatmul.mubr.bf16.gmra.mxu1 %v1465_v18  ;;  %1791 = vmatmul.mubr.bf16.gmra.mxu0 %v1467_v53  ;;  %v1453_v18 = vld [vmem:[%s3713_s19 + $0xc0] sm:$0xff]  ;;  %v1455_v53 = vld [vmem:[%s3713_s19 + $0xd0] sm:$0xff] }
 0x15a   : > { %1637 = vmatprep.mubr.bf16.mxu1 %v1470_v24  ;;  %1798 = vmatprep.mubr.bf16.mxu0 %v1472_v23  ;;  %v1509_v24 = vunpack.c.l.s8.bf16 %v1453_v18  ;;  %v1511_v23 = vunpack.c.l.s8.bf16 %v1455_v53 }
 0x161   : > { %1638 = vmatmul.mubr.bf16.gmra.mxu1 %v1469_v44  ;;  %1799 = vmatmul.mubr.bf16.gmra.mxu0 %v1471_v46  ;;  %v1458_v44 = vld [vmem:[%s3713_s19 + $0xe8] sm:$0xff]  ;;  %v1460_v46 = vld [vmem:[%s3713_s19 + $0xf8] sm:$0xff] }
 0x162   : > { %1645 = vmatprep.mubr.bf16.mxu1 %v1474_v45  ;;  %1806 = vmatprep.mubr.bf16.mxu0 %v1476_v50  ;;  %v1513_v45 = vunpack.c.h.s8.bf16 %v1453_v18  ;;  %v1515_v50 = vunpack.c.h.s8.bf16 %v1455_v53  ;;  %v1518_v54 = vunpack.c.l.s8.bf16 %v1458_v44  ;;  %v1520_v34 = vunpack.c.l.s8.bf16 %v1460_v46 }
 0x163   : > { %v1522_v1 = vunpack.c.h.s8.bf16 %v1458_v44  ;;  %v1524_v5 = vunpack.c.h.s8.bf16 %v1460_v46 }
 0x169   : > { %1646 = vmatmul.mubr.bf16.gmra.mxu1 %v1473_v58  ;;  %1807 = vmatmul.mubr.bf16.gmra.mxu0 %v1475_v62  ;;  %v1457_v58 = vld [vmem:[%s3713_s19 + $0xe0] sm:$0xff]  ;;  %v1459_v62 = vld [vmem:[%s3713_s19 + $0xf0] sm:$0xff] }
 0x16a   : > { %1653 = vmatprep.mubr.bf16.mxu1 %v1478_v57  ;;  %1814 = vmatprep.mubr.bf16.mxu0 %v1480_v61  ;;  %v1517_v57 = vunpack.c.l.s8.bf16 %v1457_v58  ;;  %v1519_v61 = vunpack.c.l.s8.bf16 %v1459_v62 }
 0x171   : > { %1654 = vmatmul.mubr.bf16.gmra.mxu1 %v1477_v9  ;;  %1815 = vmatmul.mubr.bf16.gmra.mxu0 %v1479_v38  ;;  %v1521_v9 = vunpack.c.h.s8.bf16 %v1457_v58  ;;  %v1523_v38 = vunpack.c.h.s8.bf16 %v1459_v62 }
 0x172   : > { %1661 = vmatprep.mubr.bf16.mxu1 %v1482_v48  ;;  %1822 = vmatprep.mubr.bf16.mxu0 %v1484_v28 }
 0x179   : > { %1662 = vmatmul.mubr.bf16.gmra.mxu1 %v1481_v10  ;;  %1823 = vmatmul.mubr.bf16.gmra.mxu0 %v1483_v8 }
 0x17a   : > { %1669 = vmatprep.mubr.bf16.mxu1 %v1486_v21  ;;  %1830 = vmatprep.mubr.bf16.mxu0 %v1488_v25 }
 0x181   : > { %1670 = vmatmul.mubr.bf16.gmra.mxu1 %v1485_v39  ;;  %1831 = vmatmul.mubr.bf16.gmra.mxu0 %v1487_v0 }
 0x182   : > { %1677 = vmatprep.mubr.bf16.mxu1 %v1490_v63  ;;  %1838 = vmatprep.mubr.bf16.mxu0 %v1492_v26  ;;  %v3987_v26 = vld [vmem:[%s4055_s3] ss:$0 sm:$0xff] }
 0x189   : > { %1678 = vmatmul.mubr.bf16.gmra.mxu1 %v1489_v32  ;;  %1839 = vmatmul.mubr.bf16.gmra.mxu0 %v1491_v59 }
 0x18a   : > { %1685 = vmatprep.mubr.bf16.mxu1 %v1494_v12  ;;  %1846 = vmatprep.mubr.bf16.mxu0 %v1496_v3  ;;  %v2050_v12 = vpop.permute.xlu1 %2049 }
 0x191   : > { %1686 = vmatmul.mubr.bf16.gmra.mxu1 %v1493_v37  ;;  %1847 = vmatmul.mubr.bf16.gmra.mxu0 %v1495_v4 }
 0x192   : > { %1693 = vmatprep.mubr.bf16.mxu1 %v1498_v60  ;;  %1854 = vmatprep.mubr.bf16.mxu0 %v1500_v43 }
 0x199   : > { %1694 = vmatmul.mubr.bf16.gmra.mxu1 %v1497_v47  ;;  %1855 = vmatmul.mubr.bf16.gmra.mxu0 %v1499_v11  ;;  %v2055_v47 = vpop.permute.xlu0 %2054 }
 0x19a   : > { %1701 = vmatprep.mubr.bf16.mxu1 %v1502_v15  ;;  %1862 = vmatprep.mubr.bf16.mxu0 %v1504_v31 }
 0x19d   : > { %v2065_v46 = vpop.permute.xlu0 %2064 }
 0x1a1   : > { %1702 = vmatmul.mubr.bf16.gmra.mxu1 %v1501_v17  ;;  %1863 = vmatmul.mubr.bf16.gmra.mxu0 %v1503_v56 }
 0x1a2   : > { %1709 = vmatprep.mubr.bf16.mxu1 %v1506_v36  ;;  %1870 = vmatprep.mubr.bf16.mxu0 %v1508_v16 }
 0x1a9   : > { %1710 = vmatmul.mubr.bf16.gmra.mxu1 %v1505_v7  ;;  %1871 = vmatmul.mubr.bf16.gmra.mxu0 %v1507_v20  ;;  %v2060_v7 = vpop.permute.xlu1 %2059 }
 0x1aa   : > { %1717 = vmatprep.mubr.bf16.mxu1 %v1510_v40  ;;  %1878 = vmatprep.mubr.bf16.mxu0 %v1512_v49 }
 0x1b1   : > { %1718 = vmatmul.mubr.bf16.gmra.mxu1 %v1509_v24  ;;  %1879 = vmatmul.mubr.bf16.gmra.mxu0 %v1511_v23 }
 0x1b2   : > { %1725 = vmatprep.mubr.bf16.mxu1 %v1514_v42  ;;  %1886 = vmatprep.mubr.bf16.mxu0 %v1516_v41 }
 0x1b9   : > { %1726 = vmatmul.mubr.bf16.gmra.mxu1 %v1513_v45  ;;  %1887 = vmatmul.mubr.bf16.gmra.mxu0 %v1515_v50 }
 0x1ba   : > { %1733 = vmatprep.mubr.bf16.mxu1 %v1518_v54  ;;  %1894 = vmatprep.mubr.bf16.mxu0 %v1520_v34 }
 0x1c1   : > { %1734 = vmatmul.mubr.bf16.gmra.mxu1 %v1517_v57  ;;  %1895 = vmatmul.mubr.bf16.gmra.mxu0 %v1519_v61 }
 0x1c2   : > { %1741 = vmatprep.mubr.bf16.mxu1 %v1522_v1  ;;  %1902 = vmatprep.mubr.bf16.mxu0 %v1524_v5 }
 0x1c9   : > { %1742 = vmatmul.mubr.bf16.gmra.mxu1 %v1521_v9  ;;  %1903 = vmatmul.mubr.bf16.gmra.mxu0 %v1523_v38  ;;  %v2070_v38 = vpop.permute.xlu1 %2069 }
 0x211   : > { %v2837_v48 = vpop.f32.mrf.mxu1  ;;  %v2949_v28 = vpop.f32.mrf.mxu0 }
 0x213   : > { %v2838_v2 = vpop.f32.mrf.mxu1  ;;  %v2950_v6 = vpop.f32.mrf.mxu0 }
 0x214   : > { %v2839_v10 = vadd.f32 %v2838_v2, %v2837_v48  ;;  %v2951_v8 = vadd.f32 %v2950_v6, %v2949_v28 }
 0x215   : > { %v2840_v21 = vpop.f32.mrf.mxu1  ;;  %v2952_v25 = vpop.f32.mrf.mxu0 }
 0x216   : > { %v1785_v22 = vadd.f32 %v2951_v8, %v2839_v10 }
 0x217   : > { %v2841_v39 = vpop.f32.mrf.mxu1  ;;  %v2953_v0 = vpop.f32.mrf.mxu0 }
 0x218   : > { %v2202_v63 = vmul.f32 %v2045_v29, %v1785_v22  ;;  %v2842_v51 = vadd.f32 %v2841_v39, %v2840_v21  ;;  %v2954_v30 = vadd.f32 %v2953_v0, %v2952_v25  ;;  %v2075_v39 = vpop.permute.xlu0 %2074 }
 0x219   : > { %v2843_v32 = vpop.f32.mrf.mxu1  ;;  %v2955_v59 = vpop.f32.mrf.mxu0 }
 0x21a   : > { %v1788_v3 = vadd.f32 %v2954_v30, %v2842_v51  ;;  %v2241_v52 = vadd.f32 %v3987_v26, %v2202_v63 }
 0x21b   : > { %v2844_v33 = vpop.f32.mrf.mxu1  ;;  %v2956_v37 = vpop.f32.mrf.mxu0 }
 0x21c   : > { %v2203_v4 = vmul.f32 %v2050_v12, %v1788_v3  ;;  %v2845_v60 = vadd.f32 %v2844_v33, %v2843_v32  ;;  %v2957_v43 = vadd.f32 %v2956_v37, %v2955_v59  ;;  %v2273_v31 = vmax.f32 %v2241_v52, 0.0 }
 0x21d   : > { %v2846_v19 = vpop.f32.mrf.mxu1  ;;  %v2958_v55 = vpop.f32.mrf.mxu0 }
 0x21e   : > { %v2242_v11 = vadd.f32 %v3987_v26, %v2203_v4  ;;  %v1793_v15 = vadd.f32 %v2957_v43, %v2845_v60  ;;  %v2080_v4 = vpop.permute.xlu1 %2079 }
 0x21f   : > { %v2847_v35 = vpop.f32.mrf.mxu1  ;;  %v2959_v27 = vpop.f32.mrf.mxu0 }
 0x220   : > { %v2274_v17 = vmax.f32 %v2242_v11, 0.0  ;;  %v2204_v56 = vmul.f32 %v2055_v47, %v1793_v15  ;;  %v2848_v36 = vadd.f32 %v2847_v35, %v2846_v19  ;;  %v2960_v16 = vadd.f32 %v2959_v27, %v2958_v55 }
 0x221   : > { %v2849_v14 = vpop.f32.mrf.mxu1  ;;  %v2961_v13 = vpop.f32.mrf.mxu0 }
 0x222   : > { %v2689_v20 = vpack.c.bf16 %v2274_v17, %v2273_v31  ;;  %v1796_v40 = vadd.f32 %v2960_v16, %v2848_v36  ;;  %v2243_v49 = vadd.f32 %v3987_v26, %v2204_v56  ;;  %v2085_v17 = vpop.permute.xlu0 %2084 }
 0x223   : > { %v2850_v18 = vpop.f32.mrf.mxu1  ;;  %v2962_v53 = vpop.f32.mrf.mxu0 }
 0x224   : > { %2690 = vst [vmem:[%s3995_s28] sm:$0xff] %v2689_v20   ;;  %v2205_v24 = vmul.f32 %v2060_v7, %v1796_v40  ;;  %v2851_v23 = vadd.f32 %v2850_v18, %v2849_v14  ;;  %v2963_v42 = vadd.f32 %v2962_v53, %v2961_v13  ;;  %v2275_v54 = vmax.f32 %v2243_v49, 0.0 }
 0x225   : > { %v2852_v41 = vpop.f32.mrf.mxu1  ;;  %v2964_v44 = vpop.f32.mrf.mxu0 }
 0x226   : > { %v2244_v45 = vadd.f32 %v3987_v26, %v2205_v24  ;;  %v1801_v50 = vadd.f32 %v2963_v42, %v2851_v23  ;;  %v2090_v24 = vpop.permute.xlu1 %2089 }
 0x227   : > { %v2853_v34 = vpop.f32.mrf.mxu1  ;;  %v2965_v58 = vpop.f32.mrf.mxu0 }
 0x228   : > { %v2276_v62 = vmax.f32 %v2244_v45, 0.0  ;;  %v2206_v57 = vmul.f32 %v2065_v46, %v1801_v50  ;;  %v2854_v61 = vadd.f32 %v2853_v34, %v2852_v41  ;;  %v2966_v1 = vadd.f32 %v2965_v58, %v2964_v44 }
 0x229   : > { %v2855_v5 = vpop.f32.mrf.mxu1  ;;  %v2967_v9 = vpop.f32.mrf.mxu0 }
 0x22a   : > { %v2694_v48 = vpack.c.bf16 %v2276_v62, %v2275_v54  ;;  %v1804_v28 = vadd.f32 %v2966_v1, %v2854_v61  ;;  %v2245_v2 = vadd.f32 %v3987_v26, %v2206_v57  ;;  %v2095_v62 = vpop.permute.xlu0 %2094 }
 0x22b   : > { %v2856_v6 = vpop.f32.mrf.mxu1  ;;  %v2968_v10 = vpop.f32.mrf.mxu0 }
 0x22c   : > { %2766 = vst [vmem:[%s3995_s28 + $0x8] sm:$0xff] %v2694_v48   ;;  %v2207_v8 = vmul.f32 %v2070_v38, %v1804_v28  ;;  %v2857_v21 = vadd.f32 %v2856_v6, %v2855_v5  ;;  %v2969_v25 = vadd.f32 %v2968_v10, %v2967_v9  ;;  %v2277_v51 = vmax.f32 %v2245_v2, 0.0 }
 0x22d   : > { %v2858_v29 = vpop.f32.mrf.mxu1  ;;  %v2970_v22 = vpop.f32.mrf.mxu0 }
 0x22e   : > { %v2246_v0 = vadd.f32 %v3987_v26, %v2207_v8  ;;  %v1809_v63 = vadd.f32 %v2969_v25, %v2857_v21  ;;  %v2100_v8 = vpop.permute.xlu1 %2099 }
 0x22f   : > { %v2859_v30 = vpop.f32.mrf.mxu1  ;;  %v2971_v32 = vpop.f32.mrf.mxu0 }
 0x230   : > { %v2278_v59 = vmax.f32 %v2246_v0, 0.0  ;;  %v2208_v12 = vmul.f32 %v2075_v39, %v1809_v63  ;;  %v2860_v3 = vadd.f32 %v2859_v30, %v2858_v29  ;;  %v2972_v52 = vadd.f32 %v2971_v32, %v2970_v22 }
 0x231   : > { %v2861_v33 = vpop.f32.mrf.mxu1  ;;  %v2973_v37 = vpop.f32.mrf.mxu0 }
 0x232   : > { %v2699_v60 = vpack.c.bf16 %v2278_v59, %v2277_v51  ;;  %v1812_v43 = vadd.f32 %v2972_v52, %v2860_v3  ;;  %v2247_v19 = vadd.f32 %v3987_v26, %v2208_v12  ;;  %v2105_v59 = vpop.permute.xlu0 %2104 }
 0x233   : > { %v2862_v55 = vpop.f32.mrf.mxu1  ;;  %v2974_v47 = vpop.f32.mrf.mxu0 }
 0x234   : > { %2767 = vst [vmem:[%s3995_s28 + $0x10] sm:$0xff] %v2699_v60   ;;  %v2209_v11 = vmul.f32 %v2080_v4, %v1812_v43  ;;  %v2863_v15 = vadd.f32 %v2862_v55, %v2861_v33  ;;  %v2975_v31 = vadd.f32 %v2974_v47, %v2973_v37  ;;  %v2279_v16 = vmax.f32 %v2247_v19, 0.0 }
 0x235   : > { %v2864_v35 = vpop.f32.mrf.mxu1  ;;  %v2976_v27 = vpop.f32.mrf.mxu0 }
 0x236   : > { %v2248_v56 = vadd.f32 %v3987_v26, %v2209_v11  ;;  %v1817_v36 = vadd.f32 %v2975_v31, %v2863_v15  ;;  %v2110_v11 = vpop.permute.xlu1 %2109 }
 0x237   : > { %v2865_v14 = vpop.f32.mrf.mxu1  ;;  %v2977_v13 = vpop.f32.mrf.mxu0 }
 0x238   : > { %v2280_v7 = vmax.f32 %v2248_v56, 0.0  ;;  %v2210_v20 = vmul.f32 %v2085_v17, %v1817_v36  ;;  %v2866_v40 = vadd.f32 %v2865_v14, %v2864_v35  ;;  %v2978_v49 = vadd.f32 %v2977_v13, %v2976_v27 }
 0x239   : > { %v2867_v18 = vpop.f32.mrf.mxu1  ;;  %v2979_v53 = vpop.f32.mrf.mxu0 }
 0x23a   : > { %v2704_v23 = vpack.c.bf16 %v2280_v7, %v2279_v16  ;;  %v1820_v42 = vadd.f32 %v2978_v49, %v2866_v40  ;;  %v2249_v41 = vadd.f32 %v3987_v26, %v2210_v20  ;;  %v2115_v7 = vpop.permute.xlu0 %2114 }
 0x23b   : > { %v2868_v44 = vpop.f32.mrf.mxu1  ;;  %v2980_v46 = vpop.f32.mrf.mxu0 }
 0x23c   : > { %2768 = vst [vmem:[%s3995_s28 + $0x18] sm:$0xff] %v2704_v23   ;;  %v2211_v45 = vmul.f32 %v2090_v24, %v1820_v42  ;;  %v2869_v50 = vadd.f32 %v2868_v44, %v2867_v18  ;;  %v2981_v54 = vadd.f32 %v2980_v46, %v2979_v53  ;;  %v2281_v1 = vmax.f32 %v2249_v41, 0.0 }
 0x23d   : > { %v2870_v34 = vpop.f32.mrf.mxu1  ;;  %v2982_v58 = vpop.f32.mrf.mxu0 }
 0x23e   : > { %v2250_v57 = vadd.f32 %v3987_v26, %v2211_v45  ;;  %v1825_v61 = vadd.f32 %v2981_v54, %v2869_v50  ;;  %v2120_v45 = vpop.permute.xlu1 %2119 }
 0x23f   : > { %v2871_v5 = vpop.f32.mrf.mxu1  ;;  %v2983_v9 = vpop.f32.mrf.mxu0 }
 0x240   : > { %v2282_v38 = vmax.f32 %v2250_v57, 0.0  ;;  %v2212_v48 = vmul.f32 %v2095_v62, %v1825_v61  ;;  %v2872_v28 = vadd.f32 %v2871_v5, %v2870_v34  ;;  %v2984_v2 = vadd.f32 %v2983_v9, %v2982_v58 }
 0x241   : > { %v2873_v6 = vpop.f32.mrf.mxu1  ;;  %v2985_v10 = vpop.f32.mrf.mxu0 }
 0x242   : > { %v2709_v21 = vpack.c.bf16 %v2282_v38, %v2281_v1  ;;  %v1828_v25 = vadd.f32 %v2984_v2, %v2872_v28  ;;  %v2251_v29 = vadd.f32 %v3987_v26, %v2212_v48  ;;  %v2125_v38 = vpop.permute.xlu0 %2124 }
 0x243   : > { %v2874_v22 = vpop.f32.mrf.mxu1  ;;  %v2986_v39 = vpop.f32.mrf.mxu0 }
 0x244   : > { %2769 = vst [vmem:[%s3995_s28 + $0x20] sm:$0xff] %v2709_v21   ;;  %v2213_v0 = vmul.f32 %v2100_v8, %v1828_v25  ;;  %v2875_v63 = vadd.f32 %v2874_v22, %v2873_v6  ;;  %v2987_v51 = vadd.f32 %v2986_v39, %v2985_v10  ;;  %v2283_v52 = vmax.f32 %v2251_v29, 0.0 }
 0x245   : > { %v2876_v30 = vpop.f32.mrf.mxu1  ;;  %v2988_v32 = vpop.f32.mrf.mxu0 }
 0x246   : > { %v2252_v12 = vadd.f32 %v3987_v26, %v2213_v0  ;;  %v1833_v3 = vadd.f32 %v2987_v51, %v2875_v63  ;;  %v2130_v0 = vpop.permute.xlu1 %2129 }
 0x247   : > { %v2877_v33 = vpop.f32.mrf.mxu1  ;;  %v2989_v37 = vpop.f32.mrf.mxu0 }
 0x248   : > { %v2284_v4 = vmax.f32 %v2252_v12, 0.0  ;;  %v2214_v60 = vmul.f32 %v2105_v59, %v1833_v3  ;;  %v2878_v43 = vadd.f32 %v2877_v33, %v2876_v30  ;;  %v2990_v19 = vadd.f32 %v2989_v37, %v2988_v32 }
 0x249   : > { %v2879_v55 = vpop.f32.mrf.mxu1  ;;  %v2991_v47 = vpop.f32.mrf.mxu0 }
 0x24a   : > { %v2714_v15 = vpack.c.bf16 %v2284_v4, %v2283_v52  ;;  %v1836_v31 = vadd.f32 %v2990_v19, %v2878_v43  ;;  %v2253_v35 = vadd.f32 %v3987_v26, %v2214_v60  ;;  %v2135_v4 = vpop.permute.xlu0 %2134 }
 0x24b   : > { %v2880_v27 = vpop.f32.mrf.mxu1  ;;  %v2992_v17 = vpop.f32.mrf.mxu0 }
 0x24c   : > { %2770 = vst [vmem:[%s3995_s28 + $0x28] sm:$0xff] %v2714_v15   ;;  %v2215_v56 = vmul.f32 %v2110_v11, %v1836_v31  ;;  %v2881_v36 = vadd.f32 %v2880_v27, %v2879_v55  ;;  %v2993_v16 = vadd.f32 %v2992_v17, %v2991_v47  ;;  %v2285_v49 = vmax.f32 %v2253_v35, 0.0 }
 0x24d   : > { %v2882_v14 = vpop.f32.mrf.mxu1  ;;  %v2994_v13 = vpop.f32.mrf.mxu0 }
 0x24e   : > { %v2254_v20 = vadd.f32 %v3987_v26, %v2215_v56  ;;  %v1841_v40 = vadd.f32 %v2993_v16, %v2881_v36  ;;  %v2140_v56 = vpop.permute.xlu1 %2139 }
 0x24f   : > { %v2883_v18 = vpop.f32.mrf.mxu1  ;;  %v2995_v53 = vpop.f32.mrf.mxu0 }
 0x250   : > { %v2286_v24 = vmax.f32 %v2254_v20, 0.0  ;;  %v2216_v23 = vmul.f32 %v2115_v7, %v1841_v40  ;;  %v2884_v42 = vadd.f32 %v2883_v18, %v2882_v14  ;;  %v2996_v41 = vadd.f32 %v2995_v53, %v2994_v13 }
 0x251   : > { %v2885_v44 = vpop.f32.mrf.mxu1  ;;  %v2997_v46 = vpop.f32.mrf.mxu0 }
 0x252   : > { %v2719_v50 = vpack.c.bf16 %v2286_v24, %v2285_v49  ;;  %v1844_v54 = vadd.f32 %v2996_v41, %v2884_v42  ;;  %v2255_v34 = vadd.f32 %v3987_v26, %v2216_v23  ;;  %v2145_v24 = vpop.permute.xlu0 %2144 }
 0x253   : > { %v2886_v58 = vpop.f32.mrf.mxu1  ;;  %v2998_v62 = vpop.f32.mrf.mxu0 }
 0x254   : > { %2771 = vst [vmem:[%s3995_s28 + $0x30] sm:$0xff] %v2719_v50   ;;  %v2217_v57 = vmul.f32 %v2120_v45, %v1844_v54  ;;  %v2887_v61 = vadd.f32 %v2886_v58, %v2885_v44  ;;  %v2999_v1 = vadd.f32 %v2998_v62, %v2997_v46  ;;  %v2287_v2 = vmax.f32 %v2255_v34, 0.0 }
 0x255   : > { %v2888_v5 = vpop.f32.mrf.mxu1  ;;  %v3000_v9 = vpop.f32.mrf.mxu0 }
 0x256   : > { %v2256_v48 = vadd.f32 %v3987_v26, %v2217_v57  ;;  %v1849_v28 = vadd.f32 %v2999_v1, %v2887_v61  ;;  %v2150_v57 = vpop.permute.xlu1 %2149 }
 0x257   : > { %v2889_v6 = vpop.f32.mrf.mxu1  ;;  %v3001_v10 = vpop.f32.mrf.mxu0 }
 0x258   : > { %v2288_v8 = vmax.f32 %v2256_v48, 0.0  ;;  %v2218_v21 = vmul.f32 %v2125_v38, %v1849_v28  ;;  %v2890_v25 = vadd.f32 %v2889_v6, %v2888_v5  ;;  %v3002_v29 = vadd.f32 %v3001_v10, %v3000_v9 }
 0x259   : > { %v2891_v22 = vpop.f32.mrf.mxu1  ;;  %v3003_v39 = vpop.f32.mrf.mxu0 }
 0x25a   : > { %v2724_v63 = vpack.c.bf16 %v2288_v8, %v2287_v2  ;;  %v1852_v51 = vadd.f32 %v3002_v29, %v2890_v25  ;;  %v2257_v30 = vadd.f32 %v3987_v26, %v2218_v21  ;;  %v2155_v8 = vpop.permute.xlu0 %2154 }
 0x25b   : > { %v2892_v32 = vpop.f32.mrf.mxu1  ;;  %v3004_v59 = vpop.f32.mrf.mxu0 }
 0x25c   : > { %2772 = vst [vmem:[%s3995_s28 + $0x38] sm:$0xff] %v2724_v63   ;;  %v2219_v12 = vmul.f32 %v2130_v0, %v1852_v51  ;;  %v2893_v3 = vadd.f32 %v2892_v32, %v2891_v22  ;;  %v3005_v52 = vadd.f32 %v3004_v59, %v3003_v39  ;;  %v2289_v19 = vmax.f32 %v2257_v30, 0.0 }
 0x25d   : > { %v2894_v33 = vpop.f32.mrf.mxu1  ;;  %v3006_v37 = vpop.f32.mrf.mxu0 }
 0x25e   : > { %v2258_v60 = vadd.f32 %v3987_v26, %v2219_v12  ;;  %v1857_v43 = vadd.f32 %v3005_v52, %v2893_v3  ;;  %v2160_v12 = vpop.permute.xlu1 %2159 }
 0x25f   : > { %v2895_v55 = vpop.f32.mrf.mxu1  ;;  %v3007_v47 = vpop.f32.mrf.mxu0 }
 0x260   : > { %v2290_v11 = vmax.f32 %v2258_v60, 0.0  ;;  %v2220_v15 = vmul.f32 %v2135_v4, %v1857_v43  ;;  %v2896_v31 = vadd.f32 %v2895_v55, %v2894_v33  ;;  %v3008_v35 = vadd.f32 %v3007_v47, %v3006_v37 }
 0x261   : > { %v2897_v27 = vpop.f32.mrf.mxu1  ;;  %v3009_v17 = vpop.f32.mrf.mxu0 }
 0x262   : > { %v2729_v36 = vpack.c.bf16 %v2290_v11, %v2289_v19  ;;  %v1860_v16 = vadd.f32 %v3008_v35, %v2896_v31  ;;  %v2259_v14 = vadd.f32 %v3987_v26, %v2220_v15  ;;  %v2165_v11 = vpop.permute.xlu0 %2164 }
 0x263   : > { %v2898_v13 = vpop.f32.mrf.mxu1  ;;  %v3010_v7 = vpop.f32.mrf.mxu0 }
 0x264   : > { %2773 = vst [vmem:[%s3995_s28 + $0x40] sm:$0xff] %v2729_v36   ;;  %v2221_v20 = vmul.f32 %v2140_v56, %v1860_v16  ;;  %v2899_v40 = vadd.f32 %v2898_v13, %v2897_v27  ;;  %v3011_v49 = vadd.f32 %v3010_v7, %v3009_v17  ;;  %v2291_v41 = vmax.f32 %v2259_v14, 0.0 }
 0x265   : > { %v2900_v18 = vpop.f32.mrf.mxu1  ;;  %v3012_v53 = vpop.f32.mrf.mxu0 }
 0x266   : > { %v2260_v23 = vadd.f32 %v3987_v26, %v2221_v20  ;;  %v1865_v42 = vadd.f32 %v3011_v49, %v2899_v40  ;;  %v2170_v20 = vpop.permute.xlu1 %2169 }
 0x267   : > { %v2901_v44 = vpop.f32.mrf.mxu1  ;;  %v3013_v46 = vpop.f32.mrf.mxu0 }
 0x268   : > { %v2292_v45 = vmax.f32 %v2260_v23, 0.0  ;;  %v2222_v50 = vmul.f32 %v2145_v24, %v1865_v42  ;;  %v2902_v54 = vadd.f32 %v2901_v44, %v2900_v18  ;;  %v3014_v34 = vadd.f32 %v3013_v46, %v3012_v53 }
 0x269   : > { %v2903_v58 = vpop.f32.mrf.mxu1  ;;  %v3015_v62 = vpop.f32.mrf.mxu0 }
 0x26a   : > { %v2734_v61 = vpack.c.bf16 %v2292_v45, %v2291_v41  ;;  %v1868_v1 = vadd.f32 %v3014_v34, %v2902_v54  ;;  %v2261_v5 = vadd.f32 %v3987_v26, %v2222_v50  ;;  %v2175_v45 = vpop.permute.xlu0 %2174 }
 0x26b   : > { %v2904_v9 = vpop.f32.mrf.mxu1  ;;  %v3016_v38 = vpop.f32.mrf.mxu0 }
 0x26c   : > { %2774 = vst [vmem:[%s3995_s28 + $0x48] sm:$0xff] %v2734_v61   ;;  %v2223_v48 = vmul.f32 %v2150_v57, %v1868_v1  ;;  %v2905_v28 = vadd.f32 %v2904_v9, %v2903_v58  ;;  %v3017_v2 = vadd.f32 %v3016_v38, %v3015_v62  ;;  %v2293_v29 = vmax.f32 %v2261_v5, 0.0 }
 0x26d   : > { %v2906_v6 = vpop.f32.mrf.mxu1  ;;  %v3018_v10 = vpop.f32.mrf.mxu0 }
 0x26e   : > { %v2262_v21 = vadd.f32 %v3987_v26, %v2223_v48  ;;  %v1873_v25 = vadd.f32 %v3017_v2, %v2905_v28  ;;  %v2180_v48 = vpop.permute.xlu1 %2179 }
 0x26f   : > { %v2907_v22 = vpop.f32.mrf.mxu1  ;;  %v3019_v39 = vpop.f32.mrf.mxu0 }
 0x270   : > { %v2294_v0 = vmax.f32 %v2262_v21, 0.0  ;;  %v2224_v63 = vmul.f32 %v2155_v8, %v1873_v25  ;;  %v2908_v51 = vadd.f32 %v2907_v22, %v2906_v6  ;;  %v3020_v30 = vadd.f32 %v3019_v39, %v3018_v10 }
 0x271   : > { %v2909_v32 = vpop.f32.mrf.mxu1  ;;  %v3021_v59 = vpop.f32.mrf.mxu0 }
 0x272   : > { %v2739_v3 = vpack.c.bf16 %v2294_v0, %v2293_v29  ;;  %v1876_v52 = vadd.f32 %v3020_v30, %v2908_v51  ;;  %v2263_v33 = vadd.f32 %v3987_v26, %v2224_v63  ;;  %v2185_v0 = vpop.permute.xlu0 %2184 }
 0x273   : > { %v2910_v37 = vpop.f32.mrf.mxu1  ;;  %v3022_v4 = vpop.f32.mrf.mxu0 }
 0x274   : > { %2775 = vst [vmem:[%s3995_s28 + $0x50] sm:$0xff] %v2739_v3   ;;  %v2225_v60 = vmul.f32 %v2160_v12, %v1876_v52  ;;  %v2911_v43 = vadd.f32 %v2910_v37, %v2909_v32  ;;  %v3023_v19 = vadd.f32 %v3022_v4, %v3021_v59  ;;  %v2295_v35 = vmax.f32 %v2263_v33, 0.0 }
 0x275   : > { %v2912_v55 = vpop.f32.mrf.mxu1  ;;  %v3024_v47 = vpop.f32.mrf.mxu0 }
 0x276   : > { %v2264_v15 = vadd.f32 %v3987_v26, %v2225_v60  ;;  %v1881_v31 = vadd.f32 %v3023_v19, %v2911_v43  ;;  %v2190_v60 = vpop.permute.xlu1 %2189 }
 0x277   : > { %v2913_v27 = vpop.f32.mrf.mxu1  ;;  %v3025_v17 = vpop.f32.mrf.mxu0 }
 0x278   : > { %v2296_v56 = vmax.f32 %v2264_v15, 0.0  ;;  %v2226_v36 = vmul.f32 %v2165_v11, %v1881_v31  ;;  %v2914_v16 = vadd.f32 %v2913_v27, %v2912_v55  ;;  %v3026_v14 = vadd.f32 %v3025_v17, %v3024_v47 }
 0x279   : > { %v2915_v13 = vpop.f32.mrf.mxu1  ;;  %v3027_v7 = vpop.f32.mrf.mxu0 }
 0x27a   : > { %v2744_v40 = vpack.c.bf16 %v2296_v56, %v2295_v35  ;;  %v1884_v49 = vadd.f32 %v3026_v14, %v2914_v16  ;;  %v2265_v18 = vadd.f32 %v3987_v26, %v2226_v36  ;;  %v2195_v56 = vpop.permute.xlu0 %2194 }
 0x27b   : > { %v2916_v53 = vpop.f32.mrf.mxu1  ;;  %v3028_v24 = vpop.f32.mrf.mxu0 }
 0x27c   : > { %2776 = vst [vmem:[%s3995_s28 + $0x58] sm:$0xff] %v2744_v40   ;;  %v2227_v23 = vmul.f32 %v2170_v20, %v1884_v49  ;;  %v2917_v42 = vadd.f32 %v2916_v53, %v2915_v13  ;;  %v3029_v41 = vadd.f32 %v3028_v24, %v3027_v7  ;;  %v2297_v34 = vmax.f32 %v2265_v18, 0.0 }
 0x27d   : > { %v2918_v44 = vpop.f32.mrf.mxu1  ;;  %v3030_v46 = vpop.f32.mrf.mxu0 }
 0x27e   : > { %v2266_v50 = vadd.f32 %v3987_v26, %v2227_v23  ;;  %v1889_v54 = vadd.f32 %v3029_v41, %v2917_v42  ;;  %v2200_v23 = vpop.permute.xlu1 %2199 }
 0x27f   : > { %v2919_v58 = vpop.f32.mrf.mxu1  ;;  %v3031_v62 = vpop.f32.mrf.mxu0 }
 0x280   : > { %v2298_v57 = vmax.f32 %v2266_v50, 0.0  ;;  %v2228_v61 = vmul.f32 %v2175_v45, %v1889_v54  ;;  %v2920_v1 = vadd.f32 %v2919_v58, %v2918_v44  ;;  %v3032_v5 = vadd.f32 %v3031_v62, %v3030_v46 }
 0x281   : > { %v2921_v9 = vpop.f32.mrf.mxu1  ;;  %v3033_v38 = vpop.f32.mrf.mxu0 }
 0x282   : > { %v2749_v28 = vpack.c.bf16 %v2298_v57, %v2297_v34  ;;  %v1892_v2 = vadd.f32 %v3032_v5, %v2920_v1  ;;  %v2267_v6 = vadd.f32 %v3987_v26, %v2228_v61 }
 0x283   : > { %v2922_v10 = vpop.f32.mrf.mxu1  ;;  %v3034_v8 = vpop.f32.mrf.mxu0 }
 0x284   : > { %2777 = vst [vmem:[%s3995_s28 + $0x60] sm:$0xff] %v2749_v28   ;;  %v2229_v21 = vmul.f32 %v2180_v48, %v1892_v2  ;;  %v2923_v25 = vadd.f32 %v2922_v10, %v2921_v9  ;;  %v3035_v29 = vadd.f32 %v3034_v8, %v3033_v38  ;;  %v2299_v30 = vmax.f32 %v2267_v6, 0.0 }
 0x285   : > { %v2924_v22 = vpop.f32.mrf.mxu1  ;;  %v3036_v39 = vpop.f32.mrf.mxu0 }
 0x286   : > { %v2268_v63 = vadd.f32 %v3987_v26, %v2229_v21  ;;  %v1897_v51 = vadd.f32 %v3035_v29, %v2923_v25 }
 0x287   : > { %v2925_v32 = vpop.f32.mrf.mxu1  ;;  %v3037_v59 = vpop.f32.mrf.mxu0 }
 0x288   : > { %v2300_v12 = vmax.f32 %v2268_v63, 0.0  ;;  %v2230_v3 = vmul.f32 %v2185_v0, %v1897_v51  ;;  %v2926_v52 = vadd.f32 %v2925_v32, %v2924_v22  ;;  %v3038_v33 = vadd.f32 %v3037_v59, %v3036_v39 }
 0x289   : > { %v2927_v37 = vpop.f32.mrf.mxu1  ;;  %v3039_v4 = vpop.f32.mrf.mxu0 }
 0x28a   : > { %v2754_v43 = vpack.c.bf16 %v2300_v12, %v2299_v30  ;;  %v1900_v19 = vadd.f32 %v3038_v33, %v2926_v52  ;;  %v2269_v55 = vadd.f32 %v3987_v26, %v2230_v3 }
 0x28b   : > { %v2928_v47 = vpop.f32.mrf.mxu1  ;;  %v3040_v11 = vpop.f32.mrf.mxu0 }
 0x28c   : > { %2778 = vst [vmem:[%s3995_s28 + $0x68] sm:$0xff] %v2754_v43   ;;  %v2231_v15 = vmul.f32 %v2190_v60, %v1900_v19  ;;  %v2929_v31 = vadd.f32 %v2928_v47, %v2927_v37  ;;  %v3041_v35 = vadd.f32 %v3040_v11, %v3039_v4  ;;  %v2301_v14 = vmax.f32 %v2269_v55, 0.0 }
 0x28d   : > { %v2930_v27 = vpop.f32.mrf.mxu1  ;;  %v3042_v17 = vpop.f32.mrf.mxu0 }
 0x28e   : > { %v2270_v36 = vadd.f32 %v3987_v26, %v2231_v15  ;;  %v1905_v16 = vadd.f32 %v3041_v35, %v2929_v31 }
 0x28f   : > { %v2931_v13 = vpop.f32.mrf.mxu1  ;;  %v3043_v7 = vpop.f32.mrf.mxu0 }
 0x290   : > { %v2302_v20 = vmax.f32 %v2270_v36, 0.0  ;;  %v2232_v40 = vmul.f32 %v2195_v56, %v1905_v16  ;;  %v2932_v49 = vadd.f32 %v2931_v13, %v2930_v27  ;;  %v3044_v18 = vadd.f32 %v3043_v7, %v3042_v17 }
 0x292   : > { %v2759_v53 = vpack.c.bf16 %v2302_v20, %v2301_v14  ;;  %v1908_v24 = vadd.f32 %v3044_v18, %v2932_v49  ;;  %v2271_v42 = vadd.f32 %v3987_v26, %v2232_v40 }
 0x294   : > { %2779 = vst [vmem:[%s3995_s28 + $0x70] sm:$0xff] %v2759_v53   ;;  %v2233_v41 = vmul.f32 %v2200_v23, %v1908_v24  ;;  %v2303_v46 = vmax.f32 %v2271_v42, 0.0 }
 0x296   : > { %v2272_v44 = vadd.f32 %v3987_v26, %v2233_v41 }
 0x298   : > { %v2304_v45 = vmax.f32 %v2272_v44, 0.0 }
 0x29a   : > { %v2764_v50 = vpack.c.bf16 %v2304_v45, %v2303_v46 }
 0x29c   : > { %2780 = vst [vmem:[%s3995_s28 + $0x78] sm:$0xff] %v2764_v50  }
 0x29d PF: > { %s16_s23 = sadd.s32 1, %s3230_s23   ;;  %s4194_s21 = smov %s3226_s22 }
 0x29e   : > { %p13_p6 = scmp.ge.s32.totalorder %s16_s23, 4   ;;  %s4195_s22 = smov %s4197_s24 }
 0x2a0   :  { %15 = sbr.rel (!%p13_p6) target bundleno = 2 (0x2), region = 89 }

</bundles_post_ra>
